<compile_context>
chip_gen: v5e
topology: v5e:2x2
jax: 0.10.0
libtpu: 0.0.40
codegen_flags: <defaults>
</compile_context>

<pallas_src>
import jax
import jax.numpy as jnp
from jax.experimental import pallas as pl
from jax.experimental.pallas import tpu as pltpu


# Row/col fold of the 3x3 taps onto the 2x2 source taps, per output phase offset.
#   phase offset 0: tap u=0 <- {kh=0},   tap u=1 <- {kh=1, kh=2}
#   phase offset 1: tap u=0 <- {kh=0,1}, tap u=1 <- {kh=2}
_FOLD = (((0,), (1, 2)),
         ((0, 1), (2,)))


def _fold_phase_weights(w_hwio):
    """(3,3,Cin,Cout) HWIO -> (4, Cout, 4*Cin); phase = a*2+b, k = (u*2+v)*Cin+cin."""
    slabs = []
    for a in (0, 1):
        for b in (0, 1):
            taps = []
            for u in (0, 1):
                for v in (0, 1):
                    wk = jnp.zeros_like(w_hwio[0, 0])            # (Cin, Cout)
                    for kh in _FOLD[a][u]:
                        for kw in _FOLD[b][v]:
                            wk = wk + w_hwio[kh, kw]
                    taps.append(wk)
            slab = jnp.concatenate(taps, axis=0)                 # (4*Cin, Cout)
            slabs.append(slab.T)                                 # (Cout, 4*Cin)
    return jnp.stack(slabs, axis=0)                              # (4, Cout, 4*Cin)


def _upsample_conv_kernel(xa_ref, xh_ref, w_ref, b_ref, s_ref, o_ref):
    # xa_ref: (TH, Wp, C)    bf16 main rows of the 1-pixel-padded source
    # xh_ref: (2,  Wp, C)    bf16 2-row halo just below the main rows
    # w_ref : (4, C, 4C)     bf16 folded per-phase weights, phase = 2*a + b
    # b_ref : (C, 1)         f32  bias
    # s_ref : (2, W, 2W)     f32  exact 0/1 column-spread matrices, S[b][x, 2x+b]=1
    # o_ref : (C, 2*TH, 2*W) f32  NCHW output rows of this tile (fully interleaved)
    TH, Wp, C = xa_ref.shape
    W = Wp - 2

    xfull = jnp.concatenate([xa_ref[...], xh_ref[...]], axis=0)  # (TH+2, Wp, C)
    w = w_ref[...]                                               # one weight load/step
    bias = b_ref[...]                                            # (C, 1)
    s = s_ref[...]
    s0, s1 = s[0], s[1]                                          # (W, 2W) each

    # Column-shifted, spatially-flattened input slabs, built once per step
    # (replaces 16 per-tap slice/cast/reshape copies).
    xs = [xfull[:, v:v + W, :].reshape((TH + 2) * W, C) for v in range(3)]

    for a in (0, 1):
        accs = []
        for b in (0, 1):
            # One K = 4C matmul per phase: 2x2 taps stacked on the contraction axis.
            rhs = jnp.concatenate(
                [xs[b + v][(a + u) * W:(a + u) * W + TH * W, :]
                 for u in (0, 1) for v in (0, 1)], axis=1)       # (TH*W, 4C) bf16
            acc = jax.lax.dot_general(
                w[2 * a + b], rhs,
                dimension_numbers=(((1,), (1,)), ((), ())),
                preferred_element_type=jnp.float32)              # (C, TH*W) f32
            acc = acc + bias                                     # bias per out channel
            acc = jnp.where(acc > 0, acc, 0.2 * acc)             # LeakyReLU(0.2)
            accs.append(acc)

        # Interleave the two column phases (exact 0/1 spread on the MXU) and write
        # each output row 2*y + a of this tile directly at its final NCHW position.
        for y in range(TH):
            e0 = accs[0][:, y * W:(y + 1) * W]                   # (C, W)
            e1 = accs[1][:, y * W:(y + 1) * W]                   # (C, W)
            row = (jax.lax.dot_general(e0, s0, (((1,), (0,)), ((), ())),
                                       preferred_element_type=jnp.float32)
                   + jax.lax.dot_general(e1, s1, (((1,), (0,)), ((), ())),
                                         preferred_element_type=jnp.float32))
            o_ref[:, 2 * y + a, :] = row.astype(o_ref.dtype)     # (C, 2W) store


def _round_up(x, m):
    return (x + m - 1) // m * m


def _block_vmem_bytes(shape, dtype):
    """VMEM bytes of one block, honoring (sublane, 128)-lane tile padding."""
    itemsize = jnp.dtype(dtype).itemsize
    subl = 8 * (4 // itemsize) if itemsize < 4 else 8
    dims = list(shape)
    if len(dims) < 2:
        dims = [1] * (2 - len(dims)) + dims
    lead = 1
    for d in dims[:-2]:
        lead *= d
    return lead * _round_up(dims[-2], subl) * _round_up(dims[-1], 128) * itemsize


def upsample_block_forward(x_nchw, weight_hwio, bias, *, scale_factor=2,
                           row_tile=None):
    """x_nchw: (N, C, H, W) f32.  Returns (N, C, 2H, 2W) f32."""
    assert scale_factor == 2, "phase decomposition implemented for scale_factor=2"
    N, C, H, W = x_nchw.shape

    if row_tile is None:
        if H <= 32:
            TH = H                                     # whole image rows per step
        else:
            TH = next((t for t in (32, 16, 8, 4, 2) if H % t == 0), None)
            assert TH is not None, "H must have a small even divisor"
    else:
        TH = row_tile
    # TODO(synk): add a pad/fallback path; the PyTorch module accepts shapes
    # that violate these divisibility constraints.
    assert H % TH == 0 and TH % 2 == 0 and W % 8 == 0
    assert (2 * TH) % 8 == 0 or TH == H
    nt = H // TH
    Hp, Wp = H + 2, W + 2

    # Layout glue at ORIGINAL resolution only: NHWC, 1-pixel zero border, bf16.
    x = jnp.transpose(x_nchw, (0, 2, 3, 1)).astype(jnp.bfloat16)
    x = jnp.pad(x, ((0, 0), (1, 1), (1, 1), (0, 0)))             # (N, Hp, Wp, C)

    w_slab = _fold_phase_weights(
        weight_hwio.astype(jnp.float32)).astype(jnp.bfloat16)    # (4, C, 4C)
    b_col = bias.reshape(C, 1).astype(jnp.float32)

    # Exact 0/1 column-spread matrices: S[b][x, 2*x + b] = 1.
    eye = jnp.eye(W, dtype=jnp.float32)
    s0 = jnp.zeros((W, 2 * W), jnp.float32).at[:, 0::2].set(eye)
    s1 = jnp.zeros((W, 2 * W), jnp.float32).at[:, 1::2].set(eye)
    spread = jnp.stack([s0, s1], axis=0)                         # (2, W, 2W)

    # Per-step VMEM with real tile padding, x2 for the pipeline's double
    # buffering, capped at 64 MiB so the tile also fits v7x.
    blocks = [((TH, Wp, C), jnp.bfloat16), ((2, Wp, C), jnp.bfloat16),
              ((4, C, 4 * C), jnp.bfloat16), ((C, 1), jnp.float32),
              ((2, W, 2 * W), jnp.float32), ((C, 2 * TH, 2 * W), jnp.float32)]
    step_bytes = sum(_block_vmem_bytes(s, d) for s, d in blocks)
    vmem_limit = int(min(64 * 2 ** 20, max(16 * 2 ** 20,
                                           2 * step_bytes + 8 * 2 ** 20)))

    out = pl.pallas_call(
        _upsample_conv_kernel,
        out_shape=jax.ShapeDtypeStruct((N, C, 2 * H, 2 * W), x_nchw.dtype),
        grid_spec=pltpu.PrefetchScalarGridSpec(
            num_scalar_prefetch=0,
            grid=(N, nt),
            in_specs=[
                # TH-row main block of the padded source (rows [t*TH, t*TH+TH)).
                pl.BlockSpec((None, TH, Wp, C), lambda n, t: (n, t, 0, 0)),
                # 2-row halo starting at padded row (t+1)*TH.
                pl.BlockSpec((None, 2, Wp, C),
                             lambda n, t: (n, (t + 1) * (TH // 2), 0, 0)),
                # Folded weights, bias, spread matrices: same block every step.
                pl.BlockSpec((4, C, 4 * C), lambda n, t: (0, 0, 0)),
                pl.BlockSpec((C, 1), lambda n, t: (0, 0)),
                pl.BlockSpec((2, W, 2 * W), lambda n, t: (0, 0, 0)),
            ],
            out_specs=pl.BlockSpec((None, C, 2 * TH, 2 * W),
                                   lambda n, t: (n, 0, t, 0)),
        ),
        compiler_params=pltpu.CompilerParams(
            dimension_semantics=("parallel", "parallel"),
            vmem_limit_bytes=vmem_limit),
    )(x, x, w_slab, b_col, spread)
    return out


def _reference(x_nchw, weight_hwio, bias, scale_factor=2):
    # Pure f32 reference matching the PyTorch module.
    s = scale_factor
    x = jnp.transpose(x_nchw, (0, 2, 3, 1))
    x = jnp.repeat(jnp.repeat(x, s, axis=1), s, axis=2)
    y = jax.lax.conv_general_dilated(
        x, weight_hwio, window_strides=(1, 1), padding="SAME",
        dimension_numbers=("NHWC", "HWIO", "NHWC"),
        precision=jax.lax.Precision.HIGHEST)
    y = y + bias.reshape(1, 1, 1, -1)
    y = jnp.where(y > 0, y, 0.2 * y)
    return jnp.transpose(y, (0, 3, 1, 2))


if __name__ == "__main__":
    key = jax.random.PRNGKey(0)
    k_x, k_w, k_b = jax.random.split(key, 3)

    N, C, H, W = 2, 4, 16, 16
    x = jax.random.normal(k_x, (N, C, H, W), dtype=jnp.float32)

    # Conv2d(C, C, 3, 1, 1) parameters (deterministic synthetic init).
    fan_in = C * 3 * 3
    bound = 1.0 / (fan_in ** 0.5)
    w_oihw = jax.random.uniform(k_w, (C, C, 3, 3), jnp.float32, -bound, bound)
    bias = jax.random.uniform(k_b, (C,), jnp.float32, -bound, bound)
    w_hwio = jnp.transpose(w_oihw, (2, 3, 1, 0))          # (kh, kw, in_c, out_c)

    fwd = jax.jit(upsample_block_forward)
    out = jax.block_until_ready(fwd(x, w_hwio, bias))

    ref = _reference(x, w_hwio, bias)
    assert out.shape == (N, C, 2 * H, 2 * W)
    # bf16 MXU operands (weights folded in f32 then cast, exact f32 interleave);
    # tolerance sized for bf16 operand rounding vs. the f32 reference.
    assert jnp.allclose(out, ref, atol=5e-2, rtol=5e-2), "mismatch vs reference"

    print("KERNEL_OK")
</pallas_src>

<mosaic_0001>
module attributes {stable_mosaic.version = 11 : i64} {
  func.func @_upsample_conv_kernel(%arg0: i32, %arg1: i32, %arg2: memref<1x16x18x4xbf16, #tpu.memory_space<vmem>>, %arg3: memref<1x2x18x4xbf16, #tpu.memory_space<vmem>>, %arg4: memref<4x4x16xbf16, #tpu.memory_space<vmem>>, %arg5: memref<4x1xf32, #tpu.memory_space<vmem>>, %arg6: memref<2x16x32xf32, #tpu.memory_space<vmem>>, %arg7: memref<1x4x32x32xf32, #tpu.memory_space<vmem>>) attributes {dimension_semantics = [#tpu.dimension_semantics<parallel>, #tpu.dimension_semantics<parallel>], iteration_bounds = array<i64: 2, 1>, scalar_prefetch = 0 : i64, scratch_operands = 0 : i64, tpu.core_type = #tpu.core_type<tc>, window_params = [{transform_indices = @transform_0, window_bounds = array<i64: 1, 16, 18, 4>}, {transform_indices = @transform_1, window_bounds = array<i64: 1, 2, 18, 4>}, {pipeline_mode = #tpu.pipeline_mode<synchronous>, transform_indices = @transform_2, window_bounds = array<i64: 4, 4, 16>}, {pipeline_mode = #tpu.pipeline_mode<synchronous>, transform_indices = @transform_3, window_bounds = array<i64: 4, 1>}, {pipeline_mode = #tpu.pipeline_mode<synchronous>, transform_indices = @transform_4, window_bounds = array<i64: 2, 16, 32>}, {transform_indices = @transform_5, window_bounds = array<i64: 1, 4, 32, 32>}]} {
    %c0 = arith.constant 0 : index
    %c0_0 = arith.constant 0 : index
    %c0_1 = arith.constant 0 : index
    %c0_2 = arith.constant 0 : index
    %0 = vector.load %arg2[%c0, %c0_0, %c0_1, %c0_2] : memref<1x16x18x4xbf16, #tpu.memory_space<vmem>>, vector<1x16x18x4xbf16>
    %1 = vector.shape_cast %0 : vector<1x16x18x4xbf16> to vector<16x18x4xbf16>
    %c0_3 = arith.constant 0 : index
    %c0_4 = arith.constant 0 : index
    %c0_5 = arith.constant 0 : index
    %c0_6 = arith.constant 0 : index
    %2 = vector.load %arg3[%c0_3, %c0_4, %c0_5, %c0_6] : memref<1x2x18x4xbf16, #tpu.memory_space<vmem>>, vector<1x2x18x4xbf16>
    %3 = vector.shape_cast %2 : vector<1x2x18x4xbf16> to vector<2x18x4xbf16>
    %4 = tpu.concatenate %1, %3 in 0 : vector<16x18x4xbf16>, vector<2x18x4xbf16> -> vector<18x18x4xbf16>
    %c0_7 = arith.constant 0 : index
    %c0_8 = arith.constant 0 : index
    %c0_9 = arith.constant 0 : index
    %5 = vector.load %arg4[%c0_7, %c0_8, %c0_9] : memref<4x4x16xbf16, #tpu.memory_space<vmem>>, vector<4x4x16xbf16>
    %c0_10 = arith.constant 0 : index
    %c0_11 = arith.constant 0 : index
    %6 = vector.load %arg5[%c0_10, %c0_11] : memref<4x1xf32, #tpu.memory_space<vmem>>, vector<4x1xf32>
    %c0_12 = arith.constant 0 : index
    %c0_13 = arith.constant 0 : index
    %c0_14 = arith.constant 0 : index
    %7 = vector.load %arg6[%c0_12, %c0_13, %c0_14] : memref<2x16x32xf32, #tpu.memory_space<vmem>>, vector<2x16x32xf32>
    %8 = vector.extract_strided_slice %7 {offsets = [0, 0, 0], sizes = [1, 16, 32], strides = [1, 1, 1]} : vector<2x16x32xf32> to vector<1x16x32xf32>
    %9 = vector.shape_cast %8 : vector<1x16x32xf32> to vector<16x32xf32>
    %10 = vector.extract_strided_slice %7 {offsets = [1, 0, 0], sizes = [1, 16, 32], strides = [1, 1, 1]} : vector<2x16x32xf32> to vector<1x16x32xf32>
    %11 = vector.shape_cast %10 : vector<1x16x32xf32> to vector<16x32xf32>
    %12 = vector.extract_strided_slice %4 {offsets = [0, 0, 0], sizes = [18, 16, 4], strides = [1, 1, 1]} : vector<18x18x4xbf16> to vector<18x16x4xbf16>
    %13 = vector.shape_cast %12 : vector<18x16x4xbf16> to vector<288x4xbf16>
    %14 = vector.extract_strided_slice %4 {offsets = [0, 1, 0], sizes = [18, 16, 4], strides = [1, 1, 1]} : vector<18x18x4xbf16> to vector<18x16x4xbf16>
    %15 = vector.shape_cast %14 : vector<18x16x4xbf16> to vector<288x4xbf16>
    %16 = vector.extract_strided_slice %4 {offsets = [0, 2, 0], sizes = [18, 16, 4], strides = [1, 1, 1]} : vector<18x18x4xbf16> to vector<18x16x4xbf16>
    %17 = vector.shape_cast %16 : vector<18x16x4xbf16> to vector<288x4xbf16>
    %18 = vector.extract_strided_slice %13 {offsets = [0, 0], sizes = [256, 4], strides = [1, 1]} : vector<288x4xbf16> to vector<256x4xbf16>
    %19 = vector.extract_strided_slice %15 {offsets = [0, 0], sizes = [256, 4], strides = [1, 1]} : vector<288x4xbf16> to vector<256x4xbf16>
    %20 = vector.extract_strided_slice %13 {offsets = [16, 0], sizes = [256, 4], strides = [1, 1]} : vector<288x4xbf16> to vector<256x4xbf16>
    %21 = vector.extract_strided_slice %15 {offsets = [16, 0], sizes = [256, 4], strides = [1, 1]} : vector<288x4xbf16> to vector<256x4xbf16>
    %22 = tpu.concatenate %18, %19, %20, %21 in 1 : vector<256x4xbf16>, vector<256x4xbf16>, vector<256x4xbf16>, vector<256x4xbf16> -> vector<256x16xbf16>
    %23 = vector.extract_strided_slice %5 {offsets = [0, 0, 0], sizes = [1, 4, 16], strides = [1, 1, 1]} : vector<4x4x16xbf16> to vector<1x4x16xbf16>
    %24 = vector.shape_cast %23 : vector<1x4x16xbf16> to vector<4x16xbf16>
    %cst = arith.constant dense<0.000000e+00> : vector<4x256xf32>
    %25 = tpu.matmul %24, %22, %cst {dimension_numbers = #tpu.dot_dimension_numbers<[1], [1], [0], [0], [0, 0, 1, 0], [], []>} : vector<4x16xbf16>, vector<256x16xbf16>, vector<4x256xf32> -> vector<4x256xf32>
    %26 = vector.broadcast %6 : vector<4x1xf32> to vector<4x256xf32>
    %27 = arith.addf %25, %26 : vector<4x256xf32>
    %cst_15 = arith.constant 0.000000e+00 : f32
    %28 = vector.broadcast %cst_15 : f32 to vector<4x256xf32>
    %29 = arith.cmpf ogt, %27, %28 : vector<4x256xf32>
    %cst_16 = arith.constant 2.000000e-01 : f32
    %30 = vector.broadcast %cst_16 : f32 to vector<4x256xf32>
    %31 = arith.mulf %30, %27 : vector<4x256xf32>
    %32 = arith.select %29, %27, %31 : vector<4x256xi1>, vector<4x256xf32>
    %33 = vector.extract_strided_slice %15 {offsets = [0, 0], sizes = [256, 4], strides = [1, 1]} : vector<288x4xbf16> to vector<256x4xbf16>
    %34 = vector.extract_strided_slice %17 {offsets = [0, 0], sizes = [256, 4], strides = [1, 1]} : vector<288x4xbf16> to vector<256x4xbf16>
    %35 = vector.extract_strided_slice %15 {offsets = [16, 0], sizes = [256, 4], strides = [1, 1]} : vector<288x4xbf16> to vector<256x4xbf16>
    %36 = vector.extract_strided_slice %17 {offsets = [16, 0], sizes = [256, 4], strides = [1, 1]} : vector<288x4xbf16> to vector<256x4xbf16>
    %37 = tpu.concatenate %33, %34, %35, %36 in 1 : vector<256x4xbf16>, vector<256x4xbf16>, vector<256x4xbf16>, vector<256x4xbf16> -> vector<256x16xbf16>
    %38 = vector.extract_strided_slice %5 {offsets = [1, 0, 0], sizes = [1, 4, 16], strides = [1, 1, 1]} : vector<4x4x16xbf16> to vector<1x4x16xbf16>
    %39 = vector.shape_cast %38 : vector<1x4x16xbf16> to vector<4x16xbf16>
    %cst_17 = arith.constant dense<0.000000e+00> : vector<4x256xf32>
    %40 = tpu.matmul %39, %37, %cst_17 {dimension_numbers = #tpu.dot_dimension_numbers<[1], [1], [0], [0], [0, 0, 1, 0], [], []>} : vector<4x16xbf16>, vector<256x16xbf16>, vector<4x256xf32> -> vector<4x256xf32>
    %41 = vector.broadcast %6 : vector<4x1xf32> to vector<4x256xf32>
    %42 = arith.addf %40, %41 : vector<4x256xf32>
    %cst_18 = arith.constant 0.000000e+00 : f32
    %43 = vector.broadcast %cst_18 : f32 to vector<4x256xf32>
    %44 = arith.cmpf ogt, %42, %43 : vector<4x256xf32>
    %cst_19 = arith.constant 2.000000e-01 : f32
    %45 = vector.broadcast %cst_19 : f32 to vector<4x256xf32>
    %46 = arith.mulf %45, %42 : vector<4x256xf32>
    %47 = arith.select %44, %42, %46 : vector<4x256xi1>, vector<4x256xf32>
    %48 = vector.extract_strided_slice %32 {offsets = [0, 0], sizes = [4, 16], strides = [1, 1]} : vector<4x256xf32> to vector<4x16xf32>
    %49 = vector.extract_strided_slice %47 {offsets = [0, 0], sizes = [4, 16], strides = [1, 1]} : vector<4x256xf32> to vector<4x16xf32>
    %cst_20 = arith.constant dense<0.000000e+00> : vector<4x32xf32>
    %50 = tpu.matmul %48, %9, %cst_20 {dimension_numbers = #tpu.dot_dimension_numbers<[1], [0], [0], [1], [0, 0, 1, 1], [], []>} : vector<4x16xf32>, vector<16x32xf32>, vector<4x32xf32> -> vector<4x32xf32>
    %cst_21 = arith.constant dense<0.000000e+00> : vector<4x32xf32>
    %51 = tpu.matmul %49, %11, %cst_21 {dimension_numbers = #tpu.dot_dimension_numbers<[1], [0], [0], [1], [0, 0, 1, 1], [], []>} : vector<4x16xf32>, vector<16x32xf32>, vector<4x32xf32> -> vector<4x32xf32>
    %52 = arith.addf %50, %51 : vector<4x32xf32>
    %c0_22 = arith.constant 0 : index
    %c0_23 = arith.constant 0 : index
    %c0_24 = arith.constant 0 : index
    %c0_25 = arith.constant 0 : index
    %53 = vector.load %arg7[%c0_22, %c0_23, %c0_24, %c0_25] : memref<1x4x32x32xf32, #tpu.memory_space<vmem>>, vector<1x4x1x32xf32>
    %54 = vector.shape_cast %53 : vector<1x4x1x32xf32> to vector<4x32xf32>
    %55 = vector.shape_cast %52 : vector<4x32xf32> to vector<1x4x1x32xf32>
    tpu.vector_store %arg7[%c0_22, %c0_23, %c0_24, %c0_25], %55 {strides = array<i32>} : memref<1x4x32x32xf32, #tpu.memory_space<vmem>>, vector<1x4x1x32xf32>,
    %56 = vector.extract_strided_slice %32 {offsets = [0, 16], sizes = [4, 16], strides = [1, 1]} : vector<4x256xf32> to vector<4x16xf32>
    %57 = vector.extract_strided_slice %47 {offsets = [0, 16], sizes = [4, 16], strides = [1, 1]} : vector<4x256xf32> to vector<4x16xf32>
    %cst_26 = arith.constant dense<0.000000e+00> : vector<4x32xf32>
    %58 = tpu.matmul %56, %9, %cst_26 {dimension_numbers = #tpu.dot_dimension_numbers<[1], [0], [0], [1], [0, 0, 1, 1], [], []>} : vector<4x16xf32>, vector<16x32xf32>, vector<4x32xf32> -> vector<4x32xf32>
    %cst_27 = arith.constant dense<0.000000e+00> : vector<4x32xf32>
    %59 = tpu.matmul %57, %11, %cst_27 {dimension_numbers = #tpu.dot_dimension_numbers<[1], [0], [0], [1], [0, 0, 1, 1], [], []>} : vector<4x16xf32>, vector<16x32xf32>, vector<4x32xf32> -> vector<4x32xf32>
    %60 = arith.addf %58, %59 : vector<4x32xf32>
    %c0_28 = arith.constant 0 : index
    %c0_29 = arith.constant 0 : index
    %c2 = arith.constant 2 : index
    %c0_30 = arith.constant 0 : index
    %61 = vector.load %arg7[%c0_28, %c0_29, %c2, %c0_30] : memref<1x4x32x32xf32, #tpu.memory_space<vmem>>, vector<1x4x1x32xf32>
    %62 = vector.shape_cast %61 : vector<1x4x1x32xf32> to vector<4x32xf32>
    %63 = vector.shape_cast %60 : vector<4x32xf32> to vector<1x4x1x32xf32>
    tpu.vector_store %arg7[%c0_28, %c0_29, %c2, %c0_30], %63 {strides = array<i32>} : memref<1x4x32x32xf32, #tpu.memory_space<vmem>>, vector<1x4x1x32xf32>,
    %64 = vector.extract_strided_slice %32 {offsets = [0, 32], sizes = [4, 16], strides = [1, 1]} : vector<4x256xf32> to vector<4x16xf32>
    %65 = vector.extract_strided_slice %47 {offsets = [0, 32], sizes = [4, 16], strides = [1, 1]} : vector<4x256xf32> to vector<4x16xf32>
    %cst_31 = arith.constant dense<0.000000e+00> : vector<4x32xf32>
    %66 = tpu.matmul %64, %9, %cst_31 {dimension_numbers = #tpu.dot_dimension_numbers<[1], [0], [0], [1], [0, 0, 1, 1], [], []>} : vector<4x16xf32>, vector<16x32xf32>, vector<4x32xf32> -> vector<4x32xf32>
    %cst_32 = arith.constant dense<0.000000e+00> : vector<4x32xf32>
    %67 = tpu.matmul %65, %11, %cst_32 {dimension_numbers = #tpu.dot_dimension_numbers<[1], [0], [0], [1], [0, 0, 1, 1], [], []>} : vector<4x16xf32>, vector<16x32xf32>, vector<4x32xf32> -> vector<4x32xf32>
    %68 = arith.addf %66, %67 : vector<4x32xf32>
    %c0_33 = arith.constant 0 : index
    %c0_34 = arith.constant 0 : index
    %c4 = arith.constant 4 : index
    %c0_35 = arith.constant 0 : index
    %69 = vector.load %arg7[%c0_33, %c0_34, %c4, %c0_35] : memref<1x4x32x32xf32, #tpu.memory_space<vmem>>, vector<1x4x1x32xf32>
    %70 = vector.shape_cast %69 : vector<1x4x1x32xf32> to vector<4x32xf32>
    %71 = vector.shape_cast %68 : vector<4x32xf32> to vector<1x4x1x32xf32>
    tpu.vector_store %arg7[%c0_33, %c0_34, %c4, %c0_35], %71 {strides = array<i32>} : memref<1x4x32x32xf32, #tpu.memory_space<vmem>>, vector<1x4x1x32xf32>,
    %72 = vector.extract_strided_slice %32 {offsets = [0, 48], sizes = [4, 16], strides = [1, 1]} : vector<4x256xf32> to vector<4x16xf32>
    %73 = vector.extract_strided_slice %47 {offsets = [0, 48], sizes = [4, 16], strides = [1, 1]} : vector<4x256xf32> to vector<4x16xf32>
    %cst_36 = arith.constant dense<0.000000e+00> : vector<4x32xf32>
    %74 = tpu.matmul %72, %9, %cst_36 {dimension_numbers = #tpu.dot_dimension_numbers<[1], [0], [0], [1], [0, 0, 1, 1], [], []>} : vector<4x16xf32>, vector<16x32xf32>, vector<4x32xf32> -> vector<4x32xf32>
    %cst_37 = arith.constant dense<0.000000e+00> : vector<4x32xf32>
    %75 = tpu.matmul %73, %11, %cst_37 {dimension_numbers = #tpu.dot_dimension_numbers<[1], [0], [0], [1], [0, 0, 1, 1], [], []>} : vector<4x16xf32>, vector<16x32xf32>, vector<4x32xf32> -> vector<4x32xf32>
    %76 = arith.addf %74, %75 : vector<4x32xf32>
    %c0_38 = arith.constant 0 : index
    %c0_39 = arith.constant 0 : index
    %c6 = arith.constant 6 : index
    %c0_40 = arith.constant 0 : index
    %77 = vector.load %arg7[%c0_38, %c0_39, %c6, %c0_40] : memref<1x4x32x32xf32, #tpu.memory_space<vmem>>, vector<1x4x1x32xf32>
    %78 = vector.shape_cast %77 : vector<1x4x1x32xf32> to vector<4x32xf32>
    %79 = vector.shape_cast %76 : vector<4x32xf32> to vector<1x4x1x32xf32>
    tpu.vector_store %arg7[%c0_38, %c0_39, %c6, %c0_40], %79 {strides = array<i32>} : memref<1x4x32x32xf32, #tpu.memory_space<vmem>>, vector<1x4x1x32xf32>,
    %80 = vector.extract_strided_slice %32 {offsets = [0, 64], sizes = [4, 16], strides = [1, 1]} : vector<4x256xf32> to vector<4x16xf32>
    %81 = vector.extract_strided_slice %47 {offsets = [0, 64], sizes = [4, 16], strides = [1, 1]} : vector<4x256xf32> to vector<4x16xf32>
    %cst_41 = arith.constant dense<0.000000e+00> : vector<4x32xf32>
    %82 = tpu.matmul %80, %9, %cst_41 {dimension_numbers = #tpu.dot_dimension_numbers<[1], [0], [0], [1], [0, 0, 1, 1], [], []>} : vector<4x16xf32>, vector<16x32xf32>, vector<4x32xf32> -> vector<4x32xf32>
    %cst_42 = arith.constant dense<0.000000e+00> : vector<4x32xf32>
    %83 = tpu.matmul %81, %11, %cst_42 {dimension_numbers = #tpu.dot_dimension_numbers<[1], [0], [0], [1], [0, 0, 1, 1], [], []>} : vector<4x16xf32>, vector<16x32xf32>, vector<4x32xf32> -> vector<4x32xf32>
    %84 = arith.addf %82, %83 : vector<4x32xf32>
    %c0_43 = arith.constant 0 : index
    %c0_44 = arith.constant 0 : index
    %c8 = arith.constant 8 : index
    %c0_45 = arith.constant 0 : index
    %85 = vector.load %arg7[%c0_43, %c0_44, %c8, %c0_45] : memref<1x4x32x32xf32, #tpu.memory_space<vmem>>, vector<1x4x1x32xf32>
    %86 = vector.shape_cast %85 : vector<1x4x1x32xf32> to vector<4x32xf32>
    %87 = vector.shape_cast %84 : vector<4x32xf32> to vector<1x4x1x32xf32>
    tpu.vector_store %arg7[%c0_43, %c0_44, %c8, %c0_45], %87 {strides = array<i32>} : memref<1x4x32x32xf32, #tpu.memory_space<vmem>>, vector<1x4x1x32xf32>,
    %88 = vector.extract_strided_slice %32 {offsets = [0, 80], sizes = [4, 16], strides = [1, 1]} : vector<4x256xf32> to vector<4x16xf32>
    %89 = vector.extract_strided_slice %47 {offsets = [0, 80], sizes = [4, 16], strides = [1, 1]} : vector<4x256xf32> to vector<4x16xf32>
    %cst_46 = arith.constant dense<0.000000e+00> : vector<4x32xf32>
    %90 = tpu.matmul %88, %9, %cst_46 {dimension_numbers = #tpu.dot_dimension_numbers<[1], [0], [0], [1], [0, 0, 1, 1], [], []>} : vector<4x16xf32>, vector<16x32xf32>, vector<4x32xf32> -> vector<4x32xf32>
    %cst_47 = arith.constant dense<0.000000e+00> : vector<4x32xf32>
    %91 = tpu.matmul %89, %11, %cst_47 {dimension_numbers = #tpu.dot_dimension_numbers<[1], [0], [0], [1], [0, 0, 1, 1], [], []>} : vector<4x16xf32>, vector<16x32xf32>, vector<4x32xf32> -> vector<4x32xf32>
    %92 = arith.addf %90, %91 : vector<4x32xf32>
    %c0_48 = arith.constant 0 : index
    %c0_49 = arith.constant 0 : index
    %c10 = arith.constant 10 : index
    %c0_50 = arith.constant 0 : index
    %93 = vector.load %arg7[%c0_48, %c0_49, %c10, %c0_50] : memref<1x4x32x32xf32, #tpu.memory_space<vmem>>, vector<1x4x1x32xf32>
    %94 = vector.shape_cast %93 : vector<1x4x1x32xf32> to vector<4x32xf32>
    %95 = vector.shape_cast %92 : vector<4x32xf32> to vector<1x4x1x32xf32>
    tpu.vector_store %arg7[%c0_48, %c0_49, %c10, %c0_50], %95 {strides = array<i32>} : memref<1x4x32x32xf32, #tpu.memory_space<vmem>>, vector<1x4x1x32xf32>,
    %96 = vector.extract_strided_slice %32 {offsets = [0, 96], sizes = [4, 16], strides = [1, 1]} : vector<4x256xf32> to vector<4x16xf32>
    %97 = vector.extract_strided_slice %47 {offsets = [0, 96], sizes = [4, 16], strides = [1, 1]} : vector<4x256xf32> to vector<4x16xf32>
    %cst_51 = arith.constant dense<0.000000e+00> : vector<4x32xf32>
    %98 = tpu.matmul %96, %9, %cst_51 {dimension_numbers = #tpu.dot_dimension_numbers<[1], [0], [0], [1], [0, 0, 1, 1], [], []>} : vector<4x16xf32>, vector<16x32xf32>, vector<4x32xf32> -> vector<4x32xf32>
    %cst_52 = arith.constant dense<0.000000e+00> : vector<4x32xf32>
    %99 = tpu.matmul %97, %11, %cst_52 {dimension_numbers = #tpu.dot_dimension_numbers<[1], [0], [0], [1], [0, 0, 1, 1], [], []>} : vector<4x16xf32>, vector<16x32xf32>, vector<4x32xf32> -> vector<4x32xf32>
    %100 = arith.addf %98, %99 : vector<4x32xf32>
    %c0_53 = arith.constant 0 : index
    %c0_54 = arith.constant 0 : index
    %c12 = arith.constant 12 : index
    %c0_55 = arith.constant 0 : index
    %101 = vector.load %arg7[%c0_53, %c0_54, %c12, %c0_55] : memref<1x4x32x32xf32, #tpu.memory_space<vmem>>, vector<1x4x1x32xf32>
    %102 = vector.shape_cast %101 : vector<1x4x1x32xf32> to vector<4x32xf32>
    %103 = vector.shape_cast %100 : vector<4x32xf32> to vector<1x4x1x32xf32>
    tpu.vector_store %arg7[%c0_53, %c0_54, %c12, %c0_55], %103 {strides = array<i32>} : memref<1x4x32x32xf32, #tpu.memory_space<vmem>>, vector<1x4x1x32xf32>,
    %104 = vector.extract_strided_slice %32 {offsets = [0, 112], sizes = [4, 16], strides = [1, 1]} : vector<4x256xf32> to vector<4x16xf32>
    %105 = vector.extract_strided_slice %47 {offsets = [0, 112], sizes = [4, 16], strides = [1, 1]} : vector<4x256xf32> to vector<4x16xf32>
    %cst_56 = arith.constant dense<0.000000e+00> : vector<4x32xf32>
    %106 = tpu.matmul %104, %9, %cst_56 {dimension_numbers = #tpu.dot_dimension_numbers<[1], [0], [0], [1], [0, 0, 1, 1], [], []>} : vector<4x16xf32>, vector<16x32xf32>, vector<4x32xf32> -> vector<4x32xf32>
    %cst_57 = arith.constant dense<0.000000e+00> : vector<4x32xf32>
    %107 = tpu.matmul %105, %11, %cst_57 {dimension_numbers = #tpu.dot_dimension_numbers<[1], [0], [0], [1], [0, 0, 1, 1], [], []>} : vector<4x16xf32>, vector<16x32xf32>, vector<4x32xf32> -> vector<4x32xf32>
    %108 = arith.addf %106, %107 : vector<4x32xf32>
    %c0_58 = arith.constant 0 : index
    %c0_59 = arith.constant 0 : index
    %c14 = arith.constant 14 : index
    %c0_60 = arith.constant 0 : index
    %109 = vector.load %arg7[%c0_58, %c0_59, %c14, %c0_60] : memref<1x4x32x32xf32, #tpu.memory_space<vmem>>, vector<1x4x1x32xf32>
    %110 = vector.shape_cast %109 : vector<1x4x1x32xf32> to vector<4x32xf32>
    %111 = vector.shape_cast %108 : vector<4x32xf32> to vector<1x4x1x32xf32>
    tpu.vector_store %arg7[%c0_58, %c0_59, %c14, %c0_60], %111 {strides = array<i32>} : memref<1x4x32x32xf32, #tpu.memory_space<vmem>>, vector<1x4x1x32xf32>,
    %112 = vector.extract_strided_slice %32 {offsets = [0, 128], sizes = [4, 16], strides = [1, 1]} : vector<4x256xf32> to vector<4x16xf32>
    %113 = vector.extract_strided_slice %47 {offsets = [0, 128], sizes = [4, 16], strides = [1, 1]} : vector<4x256xf32> to vector<4x16xf32>
    %cst_61 = arith.constant dense<0.000000e+00> : vector<4x32xf32>
    %114 = tpu.matmul %112, %9, %cst_61 {dimension_numbers = #tpu.dot_dimension_numbers<[1], [0], [0], [1], [0, 0, 1, 1], [], []>} : vector<4x16xf32>, vector<16x32xf32>, vector<4x32xf32> -> vector<4x32xf32>
    %cst_62 = arith.constant dense<0.000000e+00> : vector<4x32xf32>
    %115 = tpu.matmul %113, %11, %cst_62 {dimension_numbers = #tpu.dot_dimension_numbers<[1], [0], [0], [1], [0, 0, 1, 1], [], []>} : vector<4x16xf32>, vector<16x32xf32>, vector<4x32xf32> -> vector<4x32xf32>
    %116 = arith.addf %114, %115 : vector<4x32xf32>
    %c0_63 = arith.constant 0 : index
    %c0_64 = arith.constant 0 : index
    %c16 = arith.constant 16 : index
    %c0_65 = arith.constant 0 : index
    %117 = vector.load %arg7[%c0_63, %c0_64, %c16, %c0_65] : memref<1x4x32x32xf32, #tpu.memory_space<vmem>>, vector<1x4x1x32xf32>
    %118 = vector.shape_cast %117 : vector<1x4x1x32xf32> to vector<4x32xf32>
    %119 = vector.shape_cast %116 : vector<4x32xf32> to vector<1x4x1x32xf32>
    tpu.vector_store %arg7[%c0_63, %c0_64, %c16, %c0_65], %119 {strides = array<i32>} : memref<1x4x32x32xf32, #tpu.memory_space<vmem>>, vector<1x4x1x32xf32>,
    %120 = vector.extract_strided_slice %32 {offsets = [0, 144], sizes = [4, 16], strides = [1, 1]} : vector<4x256xf32> to vector<4x16xf32>
    %121 = vector.extract_strided_slice %47 {offsets = [0, 144], sizes = [4, 16], strides = [1, 1]} : vector<4x256xf32> to vector<4x16xf32>
    %cst_66 = arith.constant dense<0.000000e+00> : vector<4x32xf32>
    %122 = tpu.matmul %120, %9, %cst_66 {dimension_numbers = #tpu.dot_dimension_numbers<[1], [0], [0], [1], [0, 0, 1, 1], [], []>} : vector<4x16xf32>, vector<16x32xf32>, vector<4x32xf32> -> vector<4x32xf32>
    %cst_67 = arith.constant dense<0.000000e+00> : vector<4x32xf32>
    %123 = tpu.matmul %121, %11, %cst_67 {dimension_numbers = #tpu.dot_dimension_numbers<[1], [0], [0], [1], [0, 0, 1, 1], [], []>} : vector<4x16xf32>, vector<16x32xf32>, vector<4x32xf32> -> vector<4x32xf32>
    %124 = arith.addf %122, %123 : vector<4x32xf32>
    %c0_68 = arith.constant 0 : index
    %c0_69 = arith.constant 0 : index
    %c18 = arith.constant 18 : index
    %c0_70 = arith.constant 0 : index
    %125 = vector.load %arg7[%c0_68, %c0_69, %c18, %c0_70] : memref<1x4x32x32xf32, #tpu.memory_space<vmem>>, vector<1x4x1x32xf32>
    %126 = vector.shape_cast %125 : vector<1x4x1x32xf32> to vector<4x32xf32>
    %127 = vector.shape_cast %124 : vector<4x32xf32> to vector<1x4x1x32xf32>
    tpu.vector_store %arg7[%c0_68, %c0_69, %c18, %c0_70], %127 {strides = array<i32>} : memref<1x4x32x32xf32, #tpu.memory_space<vmem>>, vector<1x4x1x32xf32>,
    %128 = vector.extract_strided_slice %32 {offsets = [0, 160], sizes = [4, 16], strides = [1, 1]} : vector<4x256xf32> to vector<4x16xf32>
    %129 = vector.extract_strided_slice %47 {offsets = [0, 160], sizes = [4, 16], strides = [1, 1]} : vector<4x256xf32> to vector<4x16xf32>
    %cst_71 = arith.constant dense<0.000000e+00> : vector<4x32xf32>
    %130 = tpu.matmul %128, %9, %cst_71 {dimension_numbers = #tpu.dot_dimension_numbers<[1], [0], [0], [1], [0, 0, 1, 1], [], []>} : vector<4x16xf32>, vector<16x32xf32>, vector<4x32xf32> -> vector<4x32xf32>
    %cst_72 = arith.constant dense<0.000000e+00> : vector<4x32xf32>
    %131 = tpu.matmul %129, %11, %cst_72 {dimension_numbers = #tpu.dot_dimension_numbers<[1], [0], [0], [1], [0, 0, 1, 1], [], []>} : vector<4x16xf32>, vector<16x32xf32>, vector<4x32xf32> -> vector<4x32xf32>
    %132 = arith.addf %130, %131 : vector<4x32xf32>
    %c0_73 = arith.constant 0 : index
    %c0_74 = arith.constant 0 : index
    %c20 = arith.constant 20 : index
    %c0_75 = arith.constant 0 : index
    %133 = vector.load %arg7[%c0_73, %c0_74, %c20, %c0_75] : memref<1x4x32x32xf32, #tpu.memory_space<vmem>>, vector<1x4x1x32xf32>
    %134 = vector.shape_cast %133 : vector<1x4x1x32xf32> to vector<4x32xf32>
    %135 = vector.shape_cast %132 : vector<4x32xf32> to vector<1x4x1x32xf32>
    tpu.vector_store %arg7[%c0_73, %c0_74, %c20, %c0_75], %135 {strides = array<i32>} : memref<1x4x32x32xf32, #tpu.memory_space<vmem>>, vector<1x4x1x32xf32>,
    %136 = vector.extract_strided_slice %32 {offsets = [0, 176], sizes = [4, 16], strides = [1, 1]} : vector<4x256xf32> to vector<4x16xf32>
    %137 = vector.extract_strided_slice %47 {offsets = [0, 176], sizes = [4, 16], strides = [1, 1]} : vector<4x256xf32> to vector<4x16xf32>
    %cst_76 = arith.constant dense<0.000000e+00> : vector<4x32xf32>
    %138 = tpu.matmul %136, %9, %cst_76 {dimension_numbers = #tpu.dot_dimension_numbers<[1], [0], [0], [1], [0, 0, 1, 1], [], []>} : vector<4x16xf32>, vector<16x32xf32>, vector<4x32xf32> -> vector<4x32xf32>
    %cst_77 = arith.constant dense<0.000000e+00> : vector<4x32xf32>
    %139 = tpu.matmul %137, %11, %cst_77 {dimension_numbers = #tpu.dot_dimension_numbers<[1], [0], [0], [1], [0, 0, 1, 1], [], []>} : vector<4x16xf32>, vector<16x32xf32>, vector<4x32xf32> -> vector<4x32xf32>
    %140 = arith.addf %138, %139 : vector<4x32xf32>
    %c0_78 = arith.constant 0 : index
    %c0_79 = arith.constant 0 : index
    %c22 = arith.constant 22 : index
    %c0_80 = arith.constant 0 : index
    %141 = vector.load %arg7[%c0_78, %c0_79, %c22, %c0_80] : memref<1x4x32x32xf32, #tpu.memory_space<vmem>>, vector<1x4x1x32xf32>
    %142 = vector.shape_cast %141 : vector<1x4x1x32xf32> to vector<4x32xf32>
    %143 = vector.shape_cast %140 : vector<4x32xf32> to vector<1x4x1x32xf32>
    tpu.vector_store %arg7[%c0_78, %c0_79, %c22, %c0_80], %143 {strides = array<i32>} : memref<1x4x32x32xf32, #tpu.memory_space<vmem>>, vector<1x4x1x32xf32>,
    %144 = vector.extract_strided_slice %32 {offsets = [0, 192], sizes = [4, 16], strides = [1, 1]} : vector<4x256xf32> to vector<4x16xf32>
    %145 = vector.extract_strided_slice %47 {offsets = [0, 192], sizes = [4, 16], strides = [1, 1]} : vector<4x256xf32> to vector<4x16xf32>
    %cst_81 = arith.constant dense<0.000000e+00> : vector<4x32xf32>
    %146 = tpu.matmul %144, %9, %cst_81 {dimension_numbers = #tpu.dot_dimension_numbers<[1], [0], [0], [1], [0, 0, 1, 1], [], []>} : vector<4x16xf32>, vector<16x32xf32>, vector<4x32xf32> -> vector<4x32xf32>
    %cst_82 = arith.constant dense<0.000000e+00> : vector<4x32xf32>
    %147 = tpu.matmul %145, %11, %cst_82 {dimension_numbers = #tpu.dot_dimension_numbers<[1], [0], [0], [1], [0, 0, 1, 1], [], []>} : vector<4x16xf32>, vector<16x32xf32>, vector<4x32xf32> -> vector<4x32xf32>
    %148 = arith.addf %146, %147 : vector<4x32xf32>
    %c0_83 = arith.constant 0 : index
    %c0_84 = arith.constant 0 : index
    %c24 = arith.constant 24 : index
    %c0_85 = arith.constant 0 : index
    %149 = vector.load %arg7[%c0_83, %c0_84, %c24, %c0_85] : memref<1x4x32x32xf32, #tpu.memory_space<vmem>>, vector<1x4x1x32xf32>
    %150 = vector.shape_cast %149 : vector<1x4x1x32xf32> to vector<4x32xf32>
    %151 = vector.shape_cast %148 : vector<4x32xf32> to vector<1x4x1x32xf32>
    tpu.vector_store %arg7[%c0_83, %c0_84, %c24, %c0_85], %151 {strides = array<i32>} : memref<1x4x32x32xf32, #tpu.memory_space<vmem>>, vector<1x4x1x32xf32>,
    %152 = vector.extract_strided_slice %32 {offsets = [0, 208], sizes = [4, 16], strides = [1, 1]} : vector<4x256xf32> to vector<4x16xf32>
    %153 = vector.extract_strided_slice %47 {offsets = [0, 208], sizes = [4, 16], strides = [1, 1]} : vector<4x256xf32> to vector<4x16xf32>
    %cst_86 = arith.constant dense<0.000000e+00> : vector<4x32xf32>
    %154 = tpu.matmul %152, %9, %cst_86 {dimension_numbers = #tpu.dot_dimension_numbers<[1], [0], [0], [1], [0, 0, 1, 1], [], []>} : vector<4x16xf32>, vector<16x32xf32>, vector<4x32xf32> -> vector<4x32xf32>
    %cst_87 = arith.constant dense<0.000000e+00> : vector<4x32xf32>
    %155 = tpu.matmul %153, %11, %cst_87 {dimension_numbers = #tpu.dot_dimension_numbers<[1], [0], [0], [1], [0, 0, 1, 1], [], []>} : vector<4x16xf32>, vector<16x32xf32>, vector<4x32xf32> -> vector<4x32xf32>
    %156 = arith.addf %154, %155 : vector<4x32xf32>
    %c0_88 = arith.constant 0 : index
    %c0_89 = arith.constant 0 : index
    %c26 = arith.constant 26 : index
    %c0_90 = arith.constant 0 : index
    %157 = vector.load %arg7[%c0_88, %c0_89, %c26, %c0_90] : memref<1x4x32x32xf32, #tpu.memory_space<vmem>>, vector<1x4x1x32xf32>
    %158 = vector.shape_cast %157 : vector<1x4x1x32xf32> to vector<4x32xf32>
    %159 = vector.shape_cast %156 : vector<4x32xf32> to vector<1x4x1x32xf32>
    tpu.vector_store %arg7[%c0_88, %c0_89, %c26, %c0_90], %159 {strides = array<i32>} : memref<1x4x32x32xf32, #tpu.memory_space<vmem>>, vector<1x4x1x32xf32>,
    %160 = vector.extract_strided_slice %32 {offsets = [0, 224], sizes = [4, 16], strides = [1, 1]} : vector<4x256xf32> to vector<4x16xf32>
    %161 = vector.extract_strided_slice %47 {offsets = [0, 224], sizes = [4, 16], strides = [1, 1]} : vector<4x256xf32> to vector<4x16xf32>
    %cst_91 = arith.constant dense<0.000000e+00> : vector<4x32xf32>
    %162 = tpu.matmul %160, %9, %cst_91 {dimension_numbers = #tpu.dot_dimension_numbers<[1], [0], [0], [1], [0, 0, 1, 1], [], []>} : vector<4x16xf32>, vector<16x32xf32>, vector<4x32xf32> -> vector<4x32xf32>
    %cst_92 = arith.constant dense<0.000000e+00> : vector<4x32xf32>
    %163 = tpu.matmul %161, %11, %cst_92 {dimension_numbers = #tpu.dot_dimension_numbers<[1], [0], [0], [1], [0, 0, 1, 1], [], []>} : vector<4x16xf32>, vector<16x32xf32>, vector<4x32xf32> -> vector<4x32xf32>
    %164 = arith.addf %162, %163 : vector<4x32xf32>
    %c0_93 = arith.constant 0 : index
    %c0_94 = arith.constant 0 : index
    %c28 = arith.constant 28 : index
    %c0_95 = arith.constant 0 : index
    %165 = vector.load %arg7[%c0_93, %c0_94, %c28, %c0_95] : memref<1x4x32x32xf32, #tpu.memory_space<vmem>>, vector<1x4x1x32xf32>
    %166 = vector.shape_cast %165 : vector<1x4x1x32xf32> to vector<4x32xf32>
    %167 = vector.shape_cast %164 : vector<4x32xf32> to vector<1x4x1x32xf32>
    tpu.vector_store %arg7[%c0_93, %c0_94, %c28, %c0_95], %167 {strides = array<i32>} : memref<1x4x32x32xf32, #tpu.memory_space<vmem>>, vector<1x4x1x32xf32>,
    %168 = vector.extract_strided_slice %32 {offsets = [0, 240], sizes = [4, 16], strides = [1, 1]} : vector<4x256xf32> to vector<4x16xf32>
    %169 = vector.extract_strided_slice %47 {offsets = [0, 240], sizes = [4, 16], strides = [1, 1]} : vector<4x256xf32> to vector<4x16xf32>
    %cst_96 = arith.constant dense<0.000000e+00> : vector<4x32xf32>
    %170 = tpu.matmul %168, %9, %cst_96 {dimension_numbers = #tpu.dot_dimension_numbers<[1], [0], [0], [1], [0, 0, 1, 1], [], []>} : vector<4x16xf32>, vector<16x32xf32>, vector<4x32xf32> -> vector<4x32xf32>
    %cst_97 = arith.constant dense<0.000000e+00> : vector<4x32xf32>
    %171 = tpu.matmul %169, %11, %cst_97 {dimension_numbers = #tpu.dot_dimension_numbers<[1], [0], [0], [1], [0, 0, 1, 1], [], []>} : vector<4x16xf32>, vector<16x32xf32>, vector<4x32xf32> -> vector<4x32xf32>
    %172 = arith.addf %170, %171 : vector<4x32xf32>
    %c0_98 = arith.constant 0 : index
    %c0_99 = arith.constant 0 : index
    %c30 = arith.constant 30 : index
    %c0_100 = arith.constant 0 : index
    %173 = vector.load %arg7[%c0_98, %c0_99, %c30, %c0_100] : memref<1x4x32x32xf32, #tpu.memory_space<vmem>>, vector<1x4x1x32xf32>
    %174 = vector.shape_cast %173 : vector<1x4x1x32xf32> to vector<4x32xf32>
    %175 = vector.shape_cast %172 : vector<4x32xf32> to vector<1x4x1x32xf32>
    tpu.vector_store %arg7[%c0_98, %c0_99, %c30, %c0_100], %175 {strides = array<i32>} : memref<1x4x32x32xf32, #tpu.memory_space<vmem>>, vector<1x4x1x32xf32>,
    %176 = vector.extract_strided_slice %13 {offsets = [16, 0], sizes = [256, 4], strides = [1, 1]} : vector<288x4xbf16> to vector<256x4xbf16>
    %177 = vector.extract_strided_slice %15 {offsets = [16, 0], sizes = [256, 4], strides = [1, 1]} : vector<288x4xbf16> to vector<256x4xbf16>
    %178 = vector.extract_strided_slice %13 {offsets = [32, 0], sizes = [256, 4], strides = [1, 1]} : vector<288x4xbf16> to vector<256x4xbf16>
    %179 = vector.extract_strided_slice %15 {offsets = [32, 0], sizes = [256, 4], strides = [1, 1]} : vector<288x4xbf16> to vector<256x4xbf16>
    %180 = tpu.concatenate %176, %177, %178, %179 in 1 : vector<256x4xbf16>, vector<256x4xbf16>, vector<256x4xbf16>, vector<256x4xbf16> -> vector<256x16xbf16>
    %181 = vector.extract_strided_slice %5 {offsets = [2, 0, 0], sizes = [1, 4, 16], strides = [1, 1, 1]} : vector<4x4x16xbf16> to vector<1x4x16xbf16>
    %182 = vector.shape_cast %181 : vector<1x4x16xbf16> to vector<4x16xbf16>
    %cst_101 = arith.constant dense<0.000000e+00> : vector<4x256xf32>
    %183 = tpu.matmul %182, %180, %cst_101 {dimension_numbers = #tpu.dot_dimension_numbers<[1], [1], [0], [0], [0, 0, 1, 0], [], []>} : vector<4x16xbf16>, vector<256x16xbf16>, vector<4x256xf32> -> vector<4x256xf32>
    %184 = vector.broadcast %6 : vector<4x1xf32> to vector<4x256xf32>
    %185 = arith.addf %183, %184 : vector<4x256xf32>
    %cst_102 = arith.constant 0.000000e+00 : f32
    %186 = vector.broadcast %cst_102 : f32 to vector<4x256xf32>
    %187 = arith.cmpf ogt, %185, %186 : vector<4x256xf32>
    %cst_103 = arith.constant 2.000000e-01 : f32
    %188 = vector.broadcast %cst_103 : f32 to vector<4x256xf32>
    %189 = arith.mulf %188, %185 : vector<4x256xf32>
    %190 = arith.select %187, %185, %189 : vector<4x256xi1>, vector<4x256xf32>
    %191 = vector.extract_strided_slice %15 {offsets = [16, 0], sizes = [256, 4], strides = [1, 1]} : vector<288x4xbf16> to vector<256x4xbf16>
    %192 = vector.extract_strided_slice %17 {offsets = [16, 0], sizes = [256, 4], strides = [1, 1]} : vector<288x4xbf16> to vector<256x4xbf16>
    %193 = vector.extract_strided_slice %15 {offsets = [32, 0], sizes = [256, 4], strides = [1, 1]} : vector<288x4xbf16> to vector<256x4xbf16>
    %194 = vector.extract_strided_slice %17 {offsets = [32, 0], sizes = [256, 4], strides = [1, 1]} : vector<288x4xbf16> to vector<256x4xbf16>
    %195 = tpu.concatenate %191, %192, %193, %194 in 1 : vector<256x4xbf16>, vector<256x4xbf16>, vector<256x4xbf16>, vector<256x4xbf16> -> vector<256x16xbf16>
    %196 = vector.extract_strided_slice %5 {offsets = [3, 0, 0], sizes = [1, 4, 16], strides = [1, 1, 1]} : vector<4x4x16xbf16> to vector<1x4x16xbf16>
    %197 = vector.shape_cast %196 : vector<1x4x16xbf16> to vector<4x16xbf16>
    %cst_104 = arith.constant dense<0.000000e+00> : vector<4x256xf32>
    %198 = tpu.matmul %197, %195, %cst_104 {dimension_numbers = #tpu.dot_dimension_numbers<[1], [1], [0], [0], [0, 0, 1, 0], [], []>} : vector<4x16xbf16>, vector<256x16xbf16>, vector<4x256xf32> -> vector<4x256xf32>
    %199 = vector.broadcast %6 : vector<4x1xf32> to vector<4x256xf32>
    %200 = arith.addf %198, %199 : vector<4x256xf32>
    %cst_105 = arith.constant 0.000000e+00 : f32
    %201 = vector.broadcast %cst_105 : f32 to vector<4x256xf32>
    %202 = arith.cmpf ogt, %200, %201 : vector<4x256xf32>
    %cst_106 = arith.constant 2.000000e-01 : f32
    %203 = vector.broadcast %cst_106 : f32 to vector<4x256xf32>
    %204 = arith.mulf %203, %200 : vector<4x256xf32>
    %205 = arith.select %202, %200, %204 : vector<4x256xi1>, vector<4x256xf32>
    %206 = vector.extract_strided_slice %190 {offsets = [0, 0], sizes = [4, 16], strides = [1, 1]} : vector<4x256xf32> to vector<4x16xf32>
    %207 = vector.extract_strided_slice %205 {offsets = [0, 0], sizes = [4, 16], strides = [1, 1]} : vector<4x256xf32> to vector<4x16xf32>
    %cst_107 = arith.constant dense<0.000000e+00> : vector<4x32xf32>
    %208 = tpu.matmul %206, %9, %cst_107 {dimension_numbers = #tpu.dot_dimension_numbers<[1], [0], [0], [1], [0, 0, 1, 1], [], []>} : vector<4x16xf32>, vector<16x32xf32>, vector<4x32xf32> -> vector<4x32xf32>
    %cst_108 = arith.constant dense<0.000000e+00> : vector<4x32xf32>
    %209 = tpu.matmul %207, %11, %cst_108 {dimension_numbers = #tpu.dot_dimension_numbers<[1], [0], [0], [1], [0, 0, 1, 1], [], []>} : vector<4x16xf32>, vector<16x32xf32>, vector<4x32xf32> -> vector<4x32xf32>
    %210 = arith.addf %208, %209 : vector<4x32xf32>
    %c0_109 = arith.constant 0 : index
    %c0_110 = arith.constant 0 : index
    %c1 = arith.constant 1 : index
    %c0_111 = arith.constant 0 : index
    %211 = vector.load %arg7[%c0_109, %c0_110, %c1, %c0_111] : memref<1x4x32x32xf32, #tpu.memory_space<vmem>>, vector<1x4x1x32xf32>
    %212 = vector.shape_cast %211 : vector<1x4x1x32xf32> to vector<4x32xf32>
    %213 = vector.shape_cast %210 : vector<4x32xf32> to vector<1x4x1x32xf32>
    tpu.vector_store %arg7[%c0_109, %c0_110, %c1, %c0_111], %213 {strides = array<i32>} : memref<1x4x32x32xf32, #tpu.memory_space<vmem>>, vector<1x4x1x32xf32>,
    %214 = vector.extract_strided_slice %190 {offsets = [0, 16], sizes = [4, 16], strides = [1, 1]} : vector<4x256xf32> to vector<4x16xf32>
    %215 = vector.extract_strided_slice %205 {offsets = [0, 16], sizes = [4, 16], strides = [1, 1]} : vector<4x256xf32> to vector<4x16xf32>
    %cst_112 = arith.constant dense<0.000000e+00> : vector<4x32xf32>
    %216 = tpu.matmul %214, %9, %cst_112 {dimension_numbers = #tpu.dot_dimension_numbers<[1], [0], [0], [1], [0, 0, 1, 1], [], []>} : vector<4x16xf32>, vector<16x32xf32>, vector<4x32xf32> -> vector<4x32xf32>
    %cst_113 = arith.constant dense<0.000000e+00> : vector<4x32xf32>
    %217 = tpu.matmul %215, %11, %cst_113 {dimension_numbers = #tpu.dot_dimension_numbers<[1], [0], [0], [1], [0, 0, 1, 1], [], []>} : vector<4x16xf32>, vector<16x32xf32>, vector<4x32xf32> -> vector<4x32xf32>
    %218 = arith.addf %216, %217 : vector<4x32xf32>
    %c0_114 = arith.constant 0 : index
    %c0_115 = arith.constant 0 : index
    %c3 = arith.constant 3 : index
    %c0_116 = arith.constant 0 : index
    %219 = vector.load %arg7[%c0_114, %c0_115, %c3, %c0_116] : memref<1x4x32x32xf32, #tpu.memory_space<vmem>>, vector<1x4x1x32xf32>
    %220 = vector.shape_cast %219 : vector<1x4x1x32xf32> to vector<4x32xf32>
    %221 = vector.shape_cast %218 : vector<4x32xf32> to vector<1x4x1x32xf32>
    tpu.vector_store %arg7[%c0_114, %c0_115, %c3, %c0_116], %221 {strides = array<i32>} : memref<1x4x32x32xf32, #tpu.memory_space<vmem>>, vector<1x4x1x32xf32>,
    %222 = vector.extract_strided_slice %190 {offsets = [0, 32], sizes = [4, 16], strides = [1, 1]} : vector<4x256xf32> to vector<4x16xf32>
    %223 = vector.extract_strided_slice %205 {offsets = [0, 32], sizes = [4, 16], strides = [1, 1]} : vector<4x256xf32> to vector<4x16xf32>
    %cst_117 = arith.constant dense<0.000000e+00> : vector<4x32xf32>
    %224 = tpu.matmul %222, %9, %cst_117 {dimension_numbers = #tpu.dot_dimension_numbers<[1], [0], [0], [1], [0, 0, 1, 1], [], []>} : vector<4x16xf32>, vector<16x32xf32>, vector<4x32xf32> -> vector<4x32xf32>
    %cst_118 = arith.constant dense<0.000000e+00> : vector<4x32xf32>
    %225 = tpu.matmul %223, %11, %cst_118 {dimension_numbers = #tpu.dot_dimension_numbers<[1], [0], [0], [1], [0, 0, 1, 1], [], []>} : vector<4x16xf32>, vector<16x32xf32>, vector<4x32xf32> -> vector<4x32xf32>
    %226 = arith.addf %224, %225 : vector<4x32xf32>
    %c0_119 = arith.constant 0 : index
    %c0_120 = arith.constant 0 : index
    %c5 = arith.constant 5 : index
    %c0_121 = arith.constant 0 : index
    %227 = vector.load %arg7[%c0_119, %c0_120, %c5, %c0_121] : memref<1x4x32x32xf32, #tpu.memory_space<vmem>>, vector<1x4x1x32xf32>
    %228 = vector.shape_cast %227 : vector<1x4x1x32xf32> to vector<4x32xf32>
    %229 = vector.shape_cast %226 : vector<4x32xf32> to vector<1x4x1x32xf32>
    tpu.vector_store %arg7[%c0_119, %c0_120, %c5, %c0_121], %229 {strides = array<i32>} : memref<1x4x32x32xf32, #tpu.memory_space<vmem>>, vector<1x4x1x32xf32>,
    %230 = vector.extract_strided_slice %190 {offsets = [0, 48], sizes = [4, 16], strides = [1, 1]} : vector<4x256xf32> to vector<4x16xf32>
    %231 = vector.extract_strided_slice %205 {offsets = [0, 48], sizes = [4, 16], strides = [1, 1]} : vector<4x256xf32> to vector<4x16xf32>
    %cst_122 = arith.constant dense<0.000000e+00> : vector<4x32xf32>
    %232 = tpu.matmul %230, %9, %cst_122 {dimension_numbers = #tpu.dot_dimension_numbers<[1], [0], [0], [1], [0, 0, 1, 1], [], []>} : vector<4x16xf32>, vector<16x32xf32>, vector<4x32xf32> -> vector<4x32xf32>
    %cst_123 = arith.constant dense<0.000000e+00> : vector<4x32xf32>
    %233 = tpu.matmul %231, %11, %cst_123 {dimension_numbers = #tpu.dot_dimension_numbers<[1], [0], [0], [1], [0, 0, 1, 1], [], []>} : vector<4x16xf32>, vector<16x32xf32>, vector<4x32xf32> -> vector<4x32xf32>
    %234 = arith.addf %232, %233 : vector<4x32xf32>
    %c0_124 = arith.constant 0 : index
    %c0_125 = arith.constant 0 : index
    %c7 = arith.constant 7 : index
    %c0_126 = arith.constant 0 : index
    %235 = vector.load %arg7[%c0_124, %c0_125, %c7, %c0_126] : memref<1x4x32x32xf32, #tpu.memory_space<vmem>>, vector<1x4x1x32xf32>
    %236 = vector.shape_cast %235 : vector<1x4x1x32xf32> to vector<4x32xf32>
    %237 = vector.shape_cast %234 : vector<4x32xf32> to vector<1x4x1x32xf32>
    tpu.vector_store %arg7[%c0_124, %c0_125, %c7, %c0_126], %237 {strides = array<i32>} : memref<1x4x32x32xf32, #tpu.memory_space<vmem>>, vector<1x4x1x32xf32>,
    %238 = vector.extract_strided_slice %190 {offsets = [0, 64], sizes = [4, 16], strides = [1, 1]} : vector<4x256xf32> to vector<4x16xf32>
    %239 = vector.extract_strided_slice %205 {offsets = [0, 64], sizes = [4, 16], strides = [1, 1]} : vector<4x256xf32> to vector<4x16xf32>
    %cst_127 = arith.constant dense<0.000000e+00> : vector<4x32xf32>
    %240 = tpu.matmul %238, %9, %cst_127 {dimension_numbers = #tpu.dot_dimension_numbers<[1], [0], [0], [1], [0, 0, 1, 1], [], []>} : vector<4x16xf32>, vector<16x32xf32>, vector<4x32xf32> -> vector<4x32xf32>
    %cst_128 = arith.constant dense<0.000000e+00> : vector<4x32xf32>
    %241 = tpu.matmul %239, %11, %cst_128 {dimension_numbers = #tpu.dot_dimension_numbers<[1], [0], [0], [1], [0, 0, 1, 1], [], []>} : vector<4x16xf32>, vector<16x32xf32>, vector<4x32xf32> -> vector<4x32xf32>
    %242 = arith.addf %240, %241 : vector<4x32xf32>
    %c0_129 = arith.constant 0 : index
    %c0_130 = arith.constant 0 : index
    %c9 = arith.constant 9 : index
    %c0_131 = arith.constant 0 : index
    %243 = vector.load %arg7[%c0_129, %c0_130, %c9, %c0_131] : memref<1x4x32x32xf32, #tpu.memory_space<vmem>>, vector<1x4x1x32xf32>
    %244 = vector.shape_cast %243 : vector<1x4x1x32xf32> to vector<4x32xf32>
    %245 = vector.shape_cast %242 : vector<4x32xf32> to vector<1x4x1x32xf32>
    tpu.vector_store %arg7[%c0_129, %c0_130, %c9, %c0_131], %245 {strides = array<i32>} : memref<1x4x32x32xf32, #tpu.memory_space<vmem>>, vector<1x4x1x32xf32>,
    %246 = vector.extract_strided_slice %190 {offsets = [0, 80], sizes = [4, 16], strides = [1, 1]} : vector<4x256xf32> to vector<4x16xf32>
    %247 = vector.extract_strided_slice %205 {offsets = [0, 80], sizes = [4, 16], strides = [1, 1]} : vector<4x256xf32> to vector<4x16xf32>
    %cst_132 = arith.constant dense<0.000000e+00> : vector<4x32xf32>
    %248 = tpu.matmul %246, %9, %cst_132 {dimension_numbers = #tpu.dot_dimension_numbers<[1], [0], [0], [1], [0, 0, 1, 1], [], []>} : vector<4x16xf32>, vector<16x32xf32>, vector<4x32xf32> -> vector<4x32xf32>
    %cst_133 = arith.constant dense<0.000000e+00> : vector<4x32xf32>
    %249 = tpu.matmul %247, %11, %cst_133 {dimension_numbers = #tpu.dot_dimension_numbers<[1], [0], [0], [1], [0, 0, 1, 1], [], []>} : vector<4x16xf32>, vector<16x32xf32>, vector<4x32xf32> -> vector<4x32xf32>
    %250 = arith.addf %248, %249 : vector<4x32xf32>
    %c0_134 = arith.constant 0 : index
    %c0_135 = arith.constant 0 : index
    %c11 = arith.constant 11 : index
    %c0_136 = arith.constant 0 : index
    %251 = vector.load %arg7[%c0_134, %c0_135, %c11, %c0_136] : memref<1x4x32x32xf32, #tpu.memory_space<vmem>>, vector<1x4x1x32xf32>
    %252 = vector.shape_cast %251 : vector<1x4x1x32xf32> to vector<4x32xf32>
    %253 = vector.shape_cast %250 : vector<4x32xf32> to vector<1x4x1x32xf32>
    tpu.vector_store %arg7[%c0_134, %c0_135, %c11, %c0_136], %253 {strides = array<i32>} : memref<1x4x32x32xf32, #tpu.memory_space<vmem>>, vector<1x4x1x32xf32>,
    %254 = vector.extract_strided_slice %190 {offsets = [0, 96], sizes = [4, 16], strides = [1, 1]} : vector<4x256xf32> to vector<4x16xf32>
    %255 = vector.extract_strided_slice %205 {offsets = [0, 96], sizes = [4, 16], strides = [1, 1]} : vector<4x256xf32> to vector<4x16xf32>
    %cst_137 = arith.constant dense<0.000000e+00> : vector<4x32xf32>
    %256 = tpu.matmul %254, %9, %cst_137 {dimension_numbers = #tpu.dot_dimension_numbers<[1], [0], [0], [1], [0, 0, 1, 1], [], []>} : vector<4x16xf32>, vector<16x32xf32>, vector<4x32xf32> -> vector<4x32xf32>
    %cst_138 = arith.constant dense<0.000000e+00> : vector<4x32xf32>
    %257 = tpu.matmul %255, %11, %cst_138 {dimension_numbers = #tpu.dot_dimension_numbers<[1], [0], [0], [1], [0, 0, 1, 1], [], []>} : vector<4x16xf32>, vector<16x32xf32>, vector<4x32xf32> -> vector<4x32xf32>
    %258 = arith.addf %256, %257 : vector<4x32xf32>
    %c0_139 = arith.constant 0 : index
    %c0_140 = arith.constant 0 : index
    %c13 = arith.constant 13 : index
    %c0_141 = arith.constant 0 : index
    %259 = vector.load %arg7[%c0_139, %c0_140, %c13, %c0_141] : memref<1x4x32x32xf32, #tpu.memory_space<vmem>>, vector<1x4x1x32xf32>
    %260 = vector.shape_cast %259 : vector<1x4x1x32xf32> to vector<4x32xf32>
    %261 = vector.shape_cast %258 : vector<4x32xf32> to vector<1x4x1x32xf32>
    tpu.vector_store %arg7[%c0_139, %c0_140, %c13, %c0_141], %261 {strides = array<i32>} : memref<1x4x32x32xf32, #tpu.memory_space<vmem>>, vector<1x4x1x32xf32>,
    %262 = vector.extract_strided_slice %190 {offsets = [0, 112], sizes = [4, 16], strides = [1, 1]} : vector<4x256xf32> to vector<4x16xf32>
    %263 = vector.extract_strided_slice %205 {offsets = [0, 112], sizes = [4, 16], strides = [1, 1]} : vector<4x256xf32> to vector<4x16xf32>
    %cst_142 = arith.constant dense<0.000000e+00> : vector<4x32xf32>
    %264 = tpu.matmul %262, %9, %cst_142 {dimension_numbers = #tpu.dot_dimension_numbers<[1], [0], [0], [1], [0, 0, 1, 1], [], []>} : vector<4x16xf32>, vector<16x32xf32>, vector<4x32xf32> -> vector<4x32xf32>
    %cst_143 = arith.constant dense<0.000000e+00> : vector<4x32xf32>
    %265 = tpu.matmul %263, %11, %cst_143 {dimension_numbers = #tpu.dot_dimension_numbers<[1], [0], [0], [1], [0, 0, 1, 1], [], []>} : vector<4x16xf32>, vector<16x32xf32>, vector<4x32xf32> -> vector<4x32xf32>
    %266 = arith.addf %264, %265 : vector<4x32xf32>
    %c0_144 = arith.constant 0 : index
    %c0_145 = arith.constant 0 : index
    %c15 = arith.constant 15 : index
    %c0_146 = arith.constant 0 : index
    %267 = vector.load %arg7[%c0_144, %c0_145, %c15, %c0_146] : memref<1x4x32x32xf32, #tpu.memory_space<vmem>>, vector<1x4x1x32xf32>
    %268 = vector.shape_cast %267 : vector<1x4x1x32xf32> to vector<4x32xf32>
    %269 = vector.shape_cast %266 : vector<4x32xf32> to vector<1x4x1x32xf32>
    tpu.vector_store %arg7[%c0_144, %c0_145, %c15, %c0_146], %269 {strides = array<i32>} : memref<1x4x32x32xf32, #tpu.memory_space<vmem>>, vector<1x4x1x32xf32>,
    %270 = vector.extract_strided_slice %190 {offsets = [0, 128], sizes = [4, 16], strides = [1, 1]} : vector<4x256xf32> to vector<4x16xf32>
    %271 = vector.extract_strided_slice %205 {offsets = [0, 128], sizes = [4, 16], strides = [1, 1]} : vector<4x256xf32> to vector<4x16xf32>
    %cst_147 = arith.constant dense<0.000000e+00> : vector<4x32xf32>
    %272 = tpu.matmul %270, %9, %cst_147 {dimension_numbers = #tpu.dot_dimension_numbers<[1], [0], [0], [1], [0, 0, 1, 1], [], []>} : vector<4x16xf32>, vector<16x32xf32>, vector<4x32xf32> -> vector<4x32xf32>
    %cst_148 = arith.constant dense<0.000000e+00> : vector<4x32xf32>
    %273 = tpu.matmul %271, %11, %cst_148 {dimension_numbers = #tpu.dot_dimension_numbers<[1], [0], [0], [1], [0, 0, 1, 1], [], []>} : vector<4x16xf32>, vector<16x32xf32>, vector<4x32xf32> -> vector<4x32xf32>
    %274 = arith.addf %272, %273 : vector<4x32xf32>
    %c0_149 = arith.constant 0 : index
    %c0_150 = arith.constant 0 : index
    %c17 = arith.constant 17 : index
    %c0_151 = arith.constant 0 : index
    %275 = vector.load %arg7[%c0_149, %c0_150, %c17, %c0_151] : memref<1x4x32x32xf32, #tpu.memory_space<vmem>>, vector<1x4x1x32xf32>
    %276 = vector.shape_cast %275 : vector<1x4x1x32xf32> to vector<4x32xf32>
    %277 = vector.shape_cast %274 : vector<4x32xf32> to vector<1x4x1x32xf32>
    tpu.vector_store %arg7[%c0_149, %c0_150, %c17, %c0_151], %277 {strides = array<i32>} : memref<1x4x32x32xf32, #tpu.memory_space<vmem>>, vector<1x4x1x32xf32>,
    %278 = vector.extract_strided_slice %190 {offsets = [0, 144], sizes = [4, 16], strides = [1, 1]} : vector<4x256xf32> to vector<4x16xf32>
    %279 = vector.extract_strided_slice %205 {offsets = [0, 144], sizes = [4, 16], strides = [1, 1]} : vector<4x256xf32> to vector<4x16xf32>
    %cst_152 = arith.constant dense<0.000000e+00> : vector<4x32xf32>
    %280 = tpu.matmul %278, %9, %cst_152 {dimension_numbers = #tpu.dot_dimension_numbers<[1], [0], [0], [1], [0, 0, 1, 1], [], []>} : vector<4x16xf32>, vector<16x32xf32>, vector<4x32xf32> -> vector<4x32xf32>
    %cst_153 = arith.constant dense<0.000000e+00> : vector<4x32xf32>
    %281 = tpu.matmul %279, %11, %cst_153 {dimension_numbers = #tpu.dot_dimension_numbers<[1], [0], [0], [1], [0, 0, 1, 1], [], []>} : vector<4x16xf32>, vector<16x32xf32>, vector<4x32xf32> -> vector<4x32xf32>
    %282 = arith.addf %280, %281 : vector<4x32xf32>
    %c0_154 = arith.constant 0 : index
    %c0_155 = arith.constant 0 : index
    %c19 = arith.constant 19 : index
    %c0_156 = arith.constant 0 : index
    %283 = vector.load %arg7[%c0_154, %c0_155, %c19, %c0_156] : memref<1x4x32x32xf32, #tpu.memory_space<vmem>>, vector<1x4x1x32xf32>
    %284 = vector.shape_cast %283 : vector<1x4x1x32xf32> to vector<4x32xf32>
    %285 = vector.shape_cast %282 : vector<4x32xf32> to vector<1x4x1x32xf32>
    tpu.vector_store %arg7[%c0_154, %c0_155, %c19, %c0_156], %285 {strides = array<i32>} : memref<1x4x32x32xf32, #tpu.memory_space<vmem>>, vector<1x4x1x32xf32>,
    %286 = vector.extract_strided_slice %190 {offsets = [0, 160], sizes = [4, 16], strides = [1, 1]} : vector<4x256xf32> to vector<4x16xf32>
    %287 = vector.extract_strided_slice %205 {offsets = [0, 160], sizes = [4, 16], strides = [1, 1]} : vector<4x256xf32> to vector<4x16xf32>
    %cst_157 = arith.constant dense<0.000000e+00> : vector<4x32xf32>
    %288 = tpu.matmul %286, %9, %cst_157 {dimension_numbers = #tpu.dot_dimension_numbers<[1], [0], [0], [1], [0, 0, 1, 1], [], []>} : vector<4x16xf32>, vector<16x32xf32>, vector<4x32xf32> -> vector<4x32xf32>
    %cst_158 = arith.constant dense<0.000000e+00> : vector<4x32xf32>
    %289 = tpu.matmul %287, %11, %cst_158 {dimension_numbers = #tpu.dot_dimension_numbers<[1], [0], [0], [1], [0, 0, 1, 1], [], []>} : vector<4x16xf32>, vector<16x32xf32>, vector<4x32xf32> -> vector<4x32xf32>
    %290 = arith.addf %288, %289 : vector<4x32xf32>
    %c0_159 = arith.constant 0 : index
    %c0_160 = arith.constant 0 : index
    %c21 = arith.constant 21 : index
    %c0_161 = arith.constant 0 : index
    %291 = vector.load %arg7[%c0_159, %c0_160, %c21, %c0_161] : memref<1x4x32x32xf32, #tpu.memory_space<vmem>>, vector<1x4x1x32xf32>
    %292 = vector.shape_cast %291 : vector<1x4x1x32xf32> to vector<4x32xf32>
    %293 = vector.shape_cast %290 : vector<4x32xf32> to vector<1x4x1x32xf32>
    tpu.vector_store %arg7[%c0_159, %c0_160, %c21, %c0_161], %293 {strides = array<i32>} : memref<1x4x32x32xf32, #tpu.memory_space<vmem>>, vector<1x4x1x32xf32>,
    %294 = vector.extract_strided_slice %190 {offsets = [0, 176], sizes = [4, 16], strides = [1, 1]} : vector<4x256xf32> to vector<4x16xf32>
    %295 = vector.extract_strided_slice %205 {offsets = [0, 176], sizes = [4, 16], strides = [1, 1]} : vector<4x256xf32> to vector<4x16xf32>
    %cst_162 = arith.constant dense<0.000000e+00> : vector<4x32xf32>
    %296 = tpu.matmul %294, %9, %cst_162 {dimension_numbers = #tpu.dot_dimension_numbers<[1], [0], [0], [1], [0, 0, 1, 1], [], []>} : vector<4x16xf32>, vector<16x32xf32>, vector<4x32xf32> -> vector<4x32xf32>
    %cst_163 = arith.constant dense<0.000000e+00> : vector<4x32xf32>
    %297 = tpu.matmul %295, %11, %cst_163 {dimension_numbers = #tpu.dot_dimension_numbers<[1], [0], [0], [1], [0, 0, 1, 1], [], []>} : vector<4x16xf32>, vector<16x32xf32>, vector<4x32xf32> -> vector<4x32xf32>
    %298 = arith.addf %296, %297 : vector<4x32xf32>
    %c0_164 = arith.constant 0 : index
    %c0_165 = arith.constant 0 : index
    %c23 = arith.constant 23 : index
    %c0_166 = arith.constant 0 : index
    %299 = vector.load %arg7[%c0_164, %c0_165, %c23, %c0_166] : memref<1x4x32x32xf32, #tpu.memory_space<vmem>>, vector<1x4x1x32xf32>
    %300 = vector.shape_cast %299 : vector<1x4x1x32xf32> to vector<4x32xf32>
    %301 = vector.shape_cast %298 : vector<4x32xf32> to vector<1x4x1x32xf32>
    tpu.vector_store %arg7[%c0_164, %c0_165, %c23, %c0_166], %301 {strides = array<i32>} : memref<1x4x32x32xf32, #tpu.memory_space<vmem>>, vector<1x4x1x32xf32>,
    %302 = vector.extract_strided_slice %190 {offsets = [0, 192], sizes = [4, 16], strides = [1, 1]} : vector<4x256xf32> to vector<4x16xf32>
    %303 = vector.extract_strided_slice %205 {offsets = [0, 192], sizes = [4, 16], strides = [1, 1]} : vector<4x256xf32> to vector<4x16xf32>
    %cst_167 = arith.constant dense<0.000000e+00> : vector<4x32xf32>
    %304 = tpu.matmul %302, %9, %cst_167 {dimension_numbers = #tpu.dot_dimension_numbers<[1], [0], [0], [1], [0, 0, 1, 1], [], []>} : vector<4x16xf32>, vector<16x32xf32>, vector<4x32xf32> -> vector<4x32xf32>
    %cst_168 = arith.constant dense<0.000000e+00> : vector<4x32xf32>
    %305 = tpu.matmul %303, %11, %cst_168 {dimension_numbers = #tpu.dot_dimension_numbers<[1], [0], [0], [1], [0, 0, 1, 1], [], []>} : vector<4x16xf32>, vector<16x32xf32>, vector<4x32xf32> -> vector<4x32xf32>
    %306 = arith.addf %304, %305 : vector<4x32xf32>
    %c0_169 = arith.constant 0 : index
    %c0_170 = arith.constant 0 : index
    %c25 = arith.constant 25 : index
    %c0_171 = arith.constant 0 : index
    %307 = vector.load %arg7[%c0_169, %c0_170, %c25, %c0_171] : memref<1x4x32x32xf32, #tpu.memory_space<vmem>>, vector<1x4x1x32xf32>
    %308 = vector.shape_cast %307 : vector<1x4x1x32xf32> to vector<4x32xf32>
    %309 = vector.shape_cast %306 : vector<4x32xf32> to vector<1x4x1x32xf32>
    tpu.vector_store %arg7[%c0_169, %c0_170, %c25, %c0_171], %309 {strides = array<i32>} : memref<1x4x32x32xf32, #tpu.memory_space<vmem>>, vector<1x4x1x32xf32>,
    %310 = vector.extract_strided_slice %190 {offsets = [0, 208], sizes = [4, 16], strides = [1, 1]} : vector<4x256xf32> to vector<4x16xf32>
    %311 = vector.extract_strided_slice %205 {offsets = [0, 208], sizes = [4, 16], strides = [1, 1]} : vector<4x256xf32> to vector<4x16xf32>
    %cst_172 = arith.constant dense<0.000000e+00> : vector<4x32xf32>
    %312 = tpu.matmul %310, %9, %cst_172 {dimension_numbers = #tpu.dot_dimension_numbers<[1], [0], [0], [1], [0, 0, 1, 1], [], []>} : vector<4x16xf32>, vector<16x32xf32>, vector<4x32xf32> -> vector<4x32xf32>
    %cst_173 = arith.constant dense<0.000000e+00> : vector<4x32xf32>
    %313 = tpu.matmul %311, %11, %cst_173 {dimension_numbers = #tpu.dot_dimension_numbers<[1], [0], [0], [1], [0, 0, 1, 1], [], []>} : vector<4x16xf32>, vector<16x32xf32>, vector<4x32xf32> -> vector<4x32xf32>
    %314 = arith.addf %312, %313 : vector<4x32xf32>
    %c0_174 = arith.constant 0 : index
    %c0_175 = arith.constant 0 : index
    %c27 = arith.constant 27 : index
    %c0_176 = arith.constant 0 : index
    %315 = vector.load %arg7[%c0_174, %c0_175, %c27, %c0_176] : memref<1x4x32x32xf32, #tpu.memory_space<vmem>>, vector<1x4x1x32xf32>
    %316 = vector.shape_cast %315 : vector<1x4x1x32xf32> to vector<4x32xf32>
    %317 = vector.shape_cast %314 : vector<4x32xf32> to vector<1x4x1x32xf32>
    tpu.vector_store %arg7[%c0_174, %c0_175, %c27, %c0_176], %317 {strides = array<i32>} : memref<1x4x32x32xf32, #tpu.memory_space<vmem>>, vector<1x4x1x32xf32>,
    %318 = vector.extract_strided_slice %190 {offsets = [0, 224], sizes = [4, 16], strides = [1, 1]} : vector<4x256xf32> to vector<4x16xf32>
    %319 = vector.extract_strided_slice %205 {offsets = [0, 224], sizes = [4, 16], strides = [1, 1]} : vector<4x256xf32> to vector<4x16xf32>
    %cst_177 = arith.constant dense<0.000000e+00> : vector<4x32xf32>
    %320 = tpu.matmul %318, %9, %cst_177 {dimension_numbers = #tpu.dot_dimension_numbers<[1], [0], [0], [1], [0, 0, 1, 1], [], []>} : vector<4x16xf32>, vector<16x32xf32>, vector<4x32xf32> -> vector<4x32xf32>
    %cst_178 = arith.constant dense<0.000000e+00> : vector<4x32xf32>
    %321 = tpu.matmul %319, %11, %cst_178 {dimension_numbers = #tpu.dot_dimension_numbers<[1], [0], [0], [1], [0, 0, 1, 1], [], []>} : vector<4x16xf32>, vector<16x32xf32>, vector<4x32xf32> -> vector<4x32xf32>
    %322 = arith.addf %320, %321 : vector<4x32xf32>
    %c0_179 = arith.constant 0 : index
    %c0_180 = arith.constant 0 : index
    %c29 = arith.constant 29 : index
    %c0_181 = arith.constant 0 : index
    %323 = vector.load %arg7[%c0_179, %c0_180, %c29, %c0_181] : memref<1x4x32x32xf32, #tpu.memory_space<vmem>>, vector<1x4x1x32xf32>
    %324 = vector.shape_cast %323 : vector<1x4x1x32xf32> to vector<4x32xf32>
    %325 = vector.shape_cast %322 : vector<4x32xf32> to vector<1x4x1x32xf32>
    tpu.vector_store %arg7[%c0_179, %c0_180, %c29, %c0_181], %325 {strides = array<i32>} : memref<1x4x32x32xf32, #tpu.memory_space<vmem>>, vector<1x4x1x32xf32>,
    %326 = vector.extract_strided_slice %190 {offsets = [0, 240], sizes = [4, 16], strides = [1, 1]} : vector<4x256xf32> to vector<4x16xf32>
    %327 = vector.extract_strided_slice %205 {offsets = [0, 240], sizes = [4, 16], strides = [1, 1]} : vector<4x256xf32> to vector<4x16xf32>
    %cst_182 = arith.constant dense<0.000000e+00> : vector<4x32xf32>
    %328 = tpu.matmul %326, %9, %cst_182 {dimension_numbers = #tpu.dot_dimension_numbers<[1], [0], [0], [1], [0, 0, 1, 1], [], []>} : vector<4x16xf32>, vector<16x32xf32>, vector<4x32xf32> -> vector<4x32xf32>
    %cst_183 = arith.constant dense<0.000000e+00> : vector<4x32xf32>
    %329 = tpu.matmul %327, %11, %cst_183 {dimension_numbers = #tpu.dot_dimension_numbers<[1], [0], [0], [1], [0, 0, 1, 1], [], []>} : vector<4x16xf32>, vector<16x32xf32>, vector<4x32xf32> -> vector<4x32xf32>
    %330 = arith.addf %328, %329 : vector<4x32xf32>
    %c0_184 = arith.constant 0 : index
    %c0_185 = arith.constant 0 : index
    %c31 = arith.constant 31 : index
    %c0_186 = arith.constant 0 : index
    %331 = vector.load %arg7[%c0_184, %c0_185, %c31, %c0_186] : memref<1x4x32x32xf32, #tpu.memory_space<vmem>>, vector<1x4x1x32xf32>
    %332 = vector.shape_cast %331 : vector<1x4x1x32xf32> to vector<4x32xf32>
    %333 = vector.shape_cast %330 : vector<4x32xf32> to vector<1x4x1x32xf32>
    tpu.vector_store %arg7[%c0_184, %c0_185, %c31, %c0_186], %333 {strides = array<i32>} : memref<1x4x32x32xf32, #tpu.memory_space<vmem>>, vector<1x4x1x32xf32>,
    return
  }
  func.func @transform_0(%arg0: i32, %arg1: i32) -> (i32, i32, i32, i32) {
    %c0_i32 = arith.constant 0 : i32
    %c0_i32_0 = arith.constant 0 : i32
    %c0_i32_1 = arith.constant 0 : i32
    return %arg0, %arg1, %c0_i32, %c0_i32_0 : i32, i32, i32, i32
  }
  func.func @transform_1(%arg0: i32, %arg1: i32) -> (i32, i32, i32, i32) {
    %c1_i32 = arith.constant 1 : i32
    %0 = arith.addi %arg1, %c1_i32 : i32
    %c8_i32 = arith.constant 8 : i32
    %1 = arith.muli %0, %c8_i32 : i32
    %c0_i32 = arith.constant 0 : i32
    %c0_i32_0 = arith.constant 0 : i32
    %c0_i32_1 = arith.constant 0 : i32
    return %arg0, %1, %c0_i32, %c0_i32_0 : i32, i32, i32, i32
  }
  func.func @transform_2(%arg0: i32, %arg1: i32) -> (i32, i32, i32) {
    %c0_i32 = arith.constant 0 : i32
    %c0_i32_0 = arith.constant 0 : i32
    %c0_i32_1 = arith.constant 0 : i32
    %c0_i32_2 = arith.constant 0 : i32
    return %c0_i32, %c0_i32_0, %c0_i32_1 : i32, i32, i32
  }
  func.func @transform_3(%arg0: i32, %arg1: i32) -> (i32, i32) {
    %c0_i32 = arith.constant 0 : i32
    %c0_i32_0 = arith.constant 0 : i32
    %c0_i32_1 = arith.constant 0 : i32
    return %c0_i32, %c0_i32_0 : i32, i32
  }
  func.func @transform_4(%arg0: i32, %arg1: i32) -> (i32, i32, i32) {
    %c0_i32 = arith.constant 0 : i32
    %c0_i32_0 = arith.constant 0 : i32
    %c0_i32_1 = arith.constant 0 : i32
    %c0_i32_2 = arith.constant 0 : i32
    return %c0_i32, %c0_i32_0, %c0_i32_1 : i32, i32, i32
  }
  func.func @transform_5(%arg0: i32, %arg1: i32) -> (i32, i32, i32, i32) {
    %c0_i32 = arith.constant 0 : i32
    %c0_i32_0 = arith.constant 0 : i32
    %c0_i32_1 = arith.constant 0 : i32
    return %arg0, %c0_i32, %arg1, %c0_i32_0 : i32, i32, i32, i32
  }
}

</mosaic_0001>

<bundles_post_ra>
// kernel: upsample_block_forward.1
= control target key start
LH: loop header
LB: loop body
LE: loop exit
PB: predicated region body
PF: predicated region fallthrough
CT: control target
= control target key end

     0   :  { %10 = vsyncpa [#allocation3], 0  ;;  %s5949_s0 = inlined_call_operand.vmem [shape: bf16[2,18,18,4], index: 0, kind: input, shape index: {}, may-alias: {0,1}]   ;;  %s5950_s1 = inlined_call_operand.vmem [shape: bf16[2,18,18,4], index: 1, kind: input, shape index: {}, may-alias: {0,1}]   ;;  %s5951_s2 = inlined_call_operand.vmem [shape: bf16[4,4,16], index: 2, kind: input, shape index: {}]   ;;  %s5952_s3 = inlined_call_operand.vmem [shape: f32[4,1], index: 3, kind: input, shape index: {}]   ;;  %s5953_s4 = inlined_call_operand.vmem [shape: f32[2,16,32], index: 4, kind: input, shape index: {}]   ;;  %s5954_s5 = inlined_call_operand.hbm [shape: f32[2,4,32,32], index: 5, kind: output, shape index: {}]  }
   0x1   :  { %12 = vsyncpa [#allocation3 + $0x1], 0  ;;  %s4234_s18 = smov 0   ;;  %s4236_s19 = smov 0  }
   0x2   :  { %s4238_s20 = smov 0   ;;  %s4240_s21 = smov 0  }
   0x3   :  { %s4242_s22 = smov 0   ;;  %s4244_s23 = smov 0  }
   0x4 LB: > { %s3839_s24 = sadd.s32 4294967295, %s4190_s23   ;;  %s3840_s25 = sadd.s32 4294967294, %s4190_s23   ;;  %s4190_s23 = sphi %s4244_s23, %s18_s23   ;;  %s4186_s22 = sphi %s4242_s22, %s5965_s22   ;;  %s4182_s21 = sphi %s4240_s21, %s5964_s21   ;;  %s4178_s20 = sphi %s4238_s20, %s5963_s20   ;;  %s4174_s19 = sphi %s4236_s19, %s5962_s19   ;;  %s4170_s18 = sphi %s4234_s18, %s5961_s18  }
   0x5   : > { %s30_s26 = sadd.s32 1, %s4186_s22  ;;  %s162_s27 = sadd.s32 1, %s4178_s20 }
   0x6   : > { %p32_p0 = scmp.ge.s32.totalorder %s30_s26, 2  ;;  %p172_p1 = scmp.ne.s32.totalorder %s4178_s20, %s4174_s19 }
   0x7   : > { %p173_p2 = scmp.eq.s32.totalorder %s3839_s24, 1  ;;  %p178_p3 = scmp.ne.s32.totalorder %s4174_s19, %s4170_s18 }
   0x8   : > { %s5967_s26 = smov (%p32_p0, %s30_s26), 0  ;;  %p179_p5 = scmp.eq.s32.totalorder %s3840_s25, 1 }
   0x9   : > { %p4274_p4 = por %p173_p2, %p172_p1  ;;  %s157_s29 = ssub.s32 %s4186_s22, %s5967_s26 }
   0xa   : > { %p3843_p6 = scmp.ge.s32.totalorder %s4190_s23, 1  ;;  %p160_p7 = scmp.eq.s32.totalorder %s157_s29, 0 }
   0xb   : > { %p4281_p8 = por %p179_p5, %p178_p3  ;;  %p248_p9 = scmp.lt.s32.totalorder %s4190_s23, 3 }
   0xc   : > { %s4287_s6 = scalar_select %p160_p7, %s4178_s20, %s162_s27  }
   0xd   : > { %p249_p10 = pnand %p3843_p6, %p248_p9 }
   0xe   : > { %p304_p11 = scmp.lt.s32.totalorder (!%p249_p10), %s4182_s21, 1  ;;  %s4192_s12 = smov (!%p249_p10), 12  }
   0xf   : > { %252 = sbr.rel (%p249_p10) target bundleno = 1173 (0x495), region = 40  ;;  %s4193_s13 = smov (!%p249_p10), 4  }
  0x10   : > { %s4194_s14 = smov (!%p249_p10), 8   ;;  %s4197_s25 = smov (!%p249_p10), 64  }
  0x11   : > { %s4198_s27 = smov (!%p249_p10), 80   ;;  %s4199_s29 = smov (!%p249_p10), 96  }
  0x12   : > { %s4202_s9 = smov (!%p249_p10), 32  }
  0x14   : > { %s4291_s7 = scalar_select %p304_p11, %s4182_s21, 1  ;;  %vm887_vm0 = vcmask 1042432   ;;  %vm888_vm1 = vcmask 1046532   ;;  %vm398_vm3 = vsmask.f32 3328  ;;  %vm1214_vm6 = vcmask 31744  }
  0x15   : > { %vm4304_vm2 = vmor %vm887_vm0, %vm888_vm1  ;;  %vm399_vm4 = vsmask.f32 7440  ;;  %vm1263_vm7 = vcmask 64512   ;;  %vm1296_vm8 = vcmask 97280   ;;  %vm1334_vm9 = vcmask 130048  }
  0x16   : > { %s4035_s8 = smul.u32 216, %s4291_s7  ;;  %vm4356_vm5 = vmor %vm398_vm3, %vm399_vm4  ;;  %s4200_s7 = smov 48   ;;  %vm1781_vm14 = vcmask 253952  }
  0x18   : > { %s4299_s11 = scalar_lea.vmem %s5949_s0, %s4035_s8  ;;  %s4015_s15 = sadd.s32 192, %s4035_s8 }
  0x19   : > { %v359_v0 = vld [vmem:[%s4299_s11 + $0x60] sm:$0xf]  ;;  %v360_v1 = vld [vmem:[%s4299_s11 + $0x64] sm:$0xf]  ;;  %v361_v2 = vld [vmem:[%s4299_s11 + $0x68] sm:$0x1]  ;;  %s4440_s24 = scalar_lea.vmem %s5950_s1, %s4015_s15 }
  0x1a   : > { %v3855_v4 = vrot.slane %v359_v0, 9  ;;  %v948_v5 = vrot.slane %v360_v1, 5  ;;  %v951_v6 = vrot.slane %v361_v2, 5  ;;  %v4309_v7 = vld [vmem:[%s4299_s11 + $0x54] sm:$0xf]  ;;  %v603_v10 = vshll.u32 %v360_v1, 16 }
  0x1b   : > { %v4312_v8 = vld [vmem:[%s4299_s11 + $0x58] sm:$0xf]  ;;  %v4315_v9 = vld [vmem:[%s4299_s11 + $0x5c] sm:$0x1]  ;;  %v607_v13 = vshrl.u32 %v360_v1, 16  ;;  %v613_v14 = vshll.u32 %v361_v2, 16 }
  0x1c   : > { %v949_v11 = vsel %vm4304_vm2, %v3855_v4, %v948_v5  ;;  %v950_v12 = vrot.slane %v948_v5, 4  ;;  %v594_v16 = vshrl.u32 %v359_v0, 16  ;;  %v3854_v18 = vrot.slane %v4309_v7, 9  ;;  %v353_v23 = vld [vmem:[%s4299_s11 + $0x48] sm:$0xf]  ;;  %s4201_s8 = smov 16  }
  0x1d   : > { %v1418_v15 = vunpack.c.l.b16 %v949_v11  ;;  %v941_v19 = vrot.slane %v4312_v8, 5  ;;  %v944_v20 = vrot.slane %v4315_v9, 5  ;;  %v597_v22 = vshll.u32 %v359_v0, 16  ;;  %v354_v24 = vld [vmem:[%s4299_s11 + $0x4c] sm:$0xf] }
  0x1e   : > { %v952_v17 = vsel %vm4304_vm2, %v950_v12, %v951_v6  ;;  %v4326_v25 = vrot.slane %v603_v10, 5  ;;  %v355_v28 = vld [vmem:[%s4299_s11 + $0x50] sm:$0x1]  ;;  %v559_v29 = vshrl.u32 %v354_v24, 16  ;;  %v4331_v30 = vrot.slane %v607_v13, 4 }
  0x1f   : > { %v1419_v21 = vunpack.c.l.b16 %v952_v17  ;;  %v942_v26 = vsel %vm4304_vm2, %v3854_v18, %v941_v19  ;;  %v943_v27 = vrot.slane %v941_v19, 4  ;;  %v565_v33 = vshll.u32 %v355_v28, 16  ;;  %v350_v38 = vld [vmem:[%s4299_s11 + $0x3c] sm:$0xf]  ;;  %v351_v43 = vld [vmem:[%s4299_s11 + $0x40] sm:$0xf] }
  0x20   : > { %v1416_v32 = vunpack.c.l.b16 %v942_v26  ;;  %v4335_v34 = vrot.slane %v613_v14, 5  ;;  %v596_v35 = vrot.slane %v594_v16, 4  ;;  %v3853_v37 = vrot.slane %v353_v23, 9  ;;  %v352_v48 = vld [vmem:[%s4299_s11 + $0x44] sm:$0x1] }
  0x21   : > { %v4333_v31 = vpack.c.b16 %v1419_v21, %v1418_v15  ;;  %v945_v36 = vsel %vm4304_vm2, %v943_v27, %v944_v20  ;;  %v599_v39 = vrot.slane %v597_v22, 5  ;;  %v934_v41 = vrot.slane %v354_v24, 5  ;;  %v4371_v27 = vld [vmem:[%s4299_s11 + $0x34] sm:$0xf] }
  0x22   : > { %v1417_v40 = vunpack.c.l.b16 %v945_v36  ;;  %v937_v42 = vrot.slane %v355_v28, 5  ;;  %v561_v44 = vrot.slane %v559_v29, 4  ;;  %v4343_v45 = vrot.slane %v565_v33, 5 }
  0x23   : > { %1531 = vrot.lane.b32.xlu1 %v4333_v31, %s4192_s12  ;;  %v546_v46 = vshrl.u32 %v353_v23, 16  ;;  %v549_v47 = vshll.u32 %v353_v23, 16  ;;  %v935_v50 = vsel %vm4304_vm2, %v3853_v37, %v934_v41  ;;  %v936_v51 = vrot.slane %v934_v41, 4 }
  0x24   : > { %v1441_v49 = vpack.c.b16 %v1417_v40, %v1416_v32  ;;  %v3852_v52 = vrot.slane %v350_v38, 9  ;;  %v1414_v53 = vunpack.c.l.b16 %v935_v50  ;;  %v535_v56 = vshrl.u32 %v351_v43, 16  ;;  %v4376_v32 = vld [vmem:[%s4299_s11 + $0x30] sm:$0xf] }
  0x25   : > { %v548_v54 = vrot.slane %v546_v46, 4  ;;  %v551_v55 = vrot.slane %v549_v47, 5  ;;  %v938_v57 = vsel %vm4304_vm2, %v936_v51, %v937_v42  ;;  %v541_v58 = vshll.u32 %v352_v48, 16 }
  0x26   : > { %1464 = vrot.lane.b32.xlu0 %v1441_v49, %s4193_s13  ;;  %v927_v59 = vrot.slane %v351_v43, 5  ;;  %v930_v60 = vrot.slane %v352_v48, 5  ;;  %1529 = vrot.lane.b32.xlu2 %v1441_v49, %s4192_s12  ;;  %v1415_v61 = vunpack.c.l.b16 %v938_v57  ;;  %v522_v62 = vshrl.u32 %v350_v38, 16  ;;  %v4409_v57 = vld [vmem:[%s4299_s11 + $0xb4] sm:$0xf] }
  0x27   : > { %v525_v63 = vshll.u32 %v350_v38, 16  ;;  %v552_v0 = vor.u32 %v551_v55, %v548_v54  ;;  %v555_v4 = vshll.u32 %v354_v24, 16  ;;  %v600_v5 = vor.u32 %v599_v39, %v596_v35  ;;  %v4385_v39 = vld [vmem:[%s4299_s11 + $0x38] sm:$0x1] }
  0x28   : > { %v928_v1 = vsel %vm4304_vm2, %v3852_v52, %v927_v59  ;;  %v929_v2 = vrot.slane %v927_v59, 4  ;;  %v1440_v6 = vpack.c.b16 %v1415_v61, %v1414_v53  ;;  %v524_v11 = vrot.slane %v522_v62, 4  ;;  %v4418_v61 = vld [vmem:[%s4299_s11 + $0xbc] sm:$0x1] }
  0x29   : > { %v1412_v10 = vunpack.c.l.b16 %v928_v1  ;;  %v527_v12 = vrot.slane %v525_v63, 5  ;;  %v553_v15 = vrot.slane %v552_v0, 4  ;;  %v557_v16 = vrot.slane %v555_v4, 5  ;;  %v4423_v63 = vld [vmem:[%s4299_s11 + $0x24] sm:$0xf] }
  0x2a   : > { %v931_v14 = vsel %vm4304_vm2, %v929_v2, %v930_v60  ;;  %v601_v17 = vrot.slane %v600_v5, 4  ;;  %v610_v19 = vor.u32 %v4331_v30, %v4326_v25  ;;  %v531_v21 = vshll.u32 %v351_v43, 16  ;;  %v4430_v4 = vld [vmem:[%s4299_s11 + $0x28] sm:$0xf]  ;;  %v4433_v5 = vld [vmem:[%s4299_s11 + $0x2c] sm:$0x1] }
  0x2b   : > { %1462 = vrot.lane.b32.xlu1 %v1440_v6, %s4193_s13  ;;  %v1413_v18 = vunpack.c.l.b16 %v931_v14  ;;  %v528_v20 = vor.u32 %v527_v12, %v524_v11  ;;  %v537_v22 = vrot.slane %v535_v56, 4  ;;  %v558_v23 = vsel %vm4356_vm5, %v553_v15, %v557_v16 }
  0x2c   : > { %v562_v24 = vor.u32 %v561_v44, %v557_v16  ;;  %v606_v26 = vsel %vm4356_vm5, %v601_v17, %v4326_v25  ;;  %v611_v29 = vrot.slane %v610_v19, 4  ;;  %v543_v30 = vrot.slane %v541_v58, 5  ;;  %v4412_v58 = vld [vmem:[%s4299_s11 + $0xb8] sm:$0xf] }
  0x2d   : > { %v4373_v28 = vpack.c.b16 %v1413_v18, %v1412_v10  ;;  %v529_v35 = vrot.slane %v528_v20, 4  ;;  %v533_v36 = vrot.slane %v531_v21, 5  ;;  %v1076_v37 = vunpack.c.l.b16 %v558_v23 }
  0x2e   : > { %v563_v33 = vrot.slane %v562_v24, 4  ;;  %1527 = vrot.lane.b32.xlu2 %v1440_v6, %s4192_s12  ;;  %v616_v25 = vsel %vm4356_vm5, %v611_v29, %v4335_v34  ;;  %v1080_v38 = vunpack.c.l.b16 %v606_v26  ;;  %v920_v40 = vrot.slane %v4371_v27, 5  ;;  %v4459_v29 = vld [vmem:[%s4440_s24 + $0x4] sm:$0xf] }
  0x2f   : > { %1460 = vrot.lane.b32.xlu0 %v4373_v28, %s4193_s13  ;;  %v1081_v42 = vunpack.c.l.b16 %v616_v25  ;;  %v538_v43 = vor.u32 %v537_v22, %v533_v36  ;;  %v3851_v44 = vrot.slane %v4376_v32, 9  ;;  %v579_v46 = vshll.u32 %v4312_v8, 16  ;;  %v4454_v22 = vld [vmem:[%s4440_s24] sm:$0xf] }
  0x30   : > { %v568_v41 = vsel %vm4356_vm5, %v563_v33, %v4343_v45  ;;  %v534_v34 = vsel %vm4356_vm5, %v529_v35, %v533_v36  ;;  %v922_v49 = vrot.slane %v920_v40, 4  ;;  %v923_v50 = vrot.slane %v4385_v39, 5 }
  0x31   : > { %v1077_v47 = vunpack.c.l.b16 %v568_v41  ;;  %v539_v48 = vrot.slane %v538_v43, 4  ;;  %v570_v45 = vshrl.u32 %v4309_v7, 16  ;;  %v4399_v52 = vpack.c.b16 %v1081_v42, %v1080_v38 }
  0x32   : > { %v573_v53 = vshll.u32 %v4309_v7, 16  ;;  %v921_v55 = vsel %vm4304_vm2, %v3851_v44, %v920_v40  ;;  %v924_v56 = vsel %vm4304_vm2, %v922_v49, %v923_v50  ;;  %v583_v59 = vshrl.u32 %v4312_v8, 16 }
  0x33   : > { %v4397_v51 = vpack.c.b16 %v1077_v47, %v1076_v37  ;;  %v544_v54 = vsel %vm4356_vm5, %v539_v48, %v543_v30  ;;  %v1074_v7 = vunpack.c.l.b16 %v534_v34  ;;  %v581_v62 = vrot.slane %v579_v46, 5  ;;  %v4464_v37 = vld [vmem:[%s4440_s24 + $0x8] sm:$0x1] }
  0x34   : > { %v1075_v60 = vunpack.c.l.b16 %v544_v54  ;;  %v1410_v0 = vunpack.c.l.b16 %v921_v55  ;;  %v1411_v1 = vunpack.c.l.b16 %v924_v56  ;;  %v3862_v8 = vrot.slane %v4409_v57, 9 }
  0x35   : > { %1492 = vrot.lane.b32.xlu1 %v4397_v51, %s4194_s14  ;;  %v997_v2 = vrot.slane %v4412_v58, 5  ;;  %v589_v6 = vshll.u32 %v4315_v9, 16  ;;  %v572_v10 = vrot.slane %v570_v45, 4  ;;  %v575_v11 = vrot.slane %v573_v53, 5 }
  0x36   : > { %v1000_v12 = vrot.slane %v4418_v61, 5  ;;  %v585_v14 = vrot.slane %v583_v59, 4  ;;  %v4442_v15 = vpack.c.b16 %v1075_v60, %v1074_v7  ;;  %v3850_v17 = vrot.slane %v4423_v63, 9 }
  0x37   : > { %1496 = vrot.lane.b32.xlu0 %v4399_v52, %s4194_s14  ;;  %v999_v16 = vrot.slane %v997_v2, 4  ;;  %v998_v9 = vsel %vm4304_vm2, %v3862_v8, %v997_v2  ;;  %v913_v18 = vrot.slane %v4430_v4, 5  ;;  %v916_v19 = vrot.slane %v4433_v5, 5 }
  0x38   : > { %v4449_v20 = vpack.c.b16 %v1411_v1, %v1410_v0  ;;  %v576_v26 = vor.u32 %v575_v11, %v572_v10  ;;  %v591_v30 = vrot.slane %v589_v6, 5  ;;  %v1432_v33 = vunpack.c.l.b16 %v998_v9 }
  0x39   : > { %v1001_v21 = vsel %vm4304_vm2, %v999_v16, %v1000_v12  ;;  %v914_v23 = vsel %vm4304_vm2, %v3850_v17, %v913_v18  ;;  %v915_v24 = vrot.slane %v913_v18, 4  ;;  %v586_v36 = vor.u32 %v585_v14, %v581_v62 }
  0x3a   : > { %v1433_v35 = vunpack.c.l.b16 %v1001_v21  ;;  %v1408_v38 = vunpack.c.l.b16 %v914_v23  ;;  %v577_v40 = vrot.slane %v576_v26, 4  ;;  %v786_v41 = vshrl.u32 %v4454_v22, 16 }
  0x3b   : > { %v917_v25 = vsel %vm4304_vm2, %v915_v24, %v916_v19  ;;  %v587_v43 = vrot.slane %v586_v36, 4  ;;  %v789_v44 = vshll.u32 %v4454_v22, 16  ;;  %v795_v46 = vshll.u32 %v4459_v29, 16  ;;  %v4504_v24 = vld [vmem:[%s4299_s11 + $0x1c] sm:$0xf] }
  0x3c   : > { %v1409_v42 = vunpack.c.l.b16 %v917_v25  ;;  %v582_v47 = vsel %vm4356_vm5, %v577_v40, %v581_v62  ;;  %v788_v34 = vrot.slane %v786_v41, 4  ;;  %v799_v48 = vshrl.u32 %v4459_v29, 16  ;;  %v4518_v40 = vld [vmem:[%s4299_s11 + $0x18] sm:$0xf]  ;;  %v4521_v41 = vld [vmem:[%s4299_s11 + $0x20] sm:$0x1] }
  0x3d   : > { %1490 = vrot.lane.b32.xlu1 %v4442_v15, %s4194_s14  ;;  %v805_v49 = vshll.u32 %v4464_v37, 16  ;;  %v4477_v50 = vpack.c.b16 %v1433_v35, %v1432_v33  ;;  %v592_v45 = vsel %vm4356_vm5, %v587_v43, %v591_v30  ;;  %v1078_v53 = vunpack.c.l.b16 %v582_v47  ;;  %v4509_v30 = vld [vmem:[%s4299_s11 + $0xa8] sm:$0xf]  ;;  %v4512_v33 = vld [vmem:[%s4299_s11 + $0xb0] sm:$0x1] }
  0x3e   : > { %v791_v54 = vrot.slane %v789_v44, 5  ;;  %v1079_v55 = vunpack.c.l.b16 %v592_v45  ;;  %v797_v56 = vrot.slane %v795_v46, 5  ;;  %v801_v59 = vrot.slane %v799_v48, 4 }
  0x3f   : > { %1458 = vrot.lane.b32.xlu0 %v4449_v20, %s4193_s13  ;;  %v498_v7 = vshrl.u32 %v4376_v32, 16  ;;  %v501_v60 = vshll.u32 %v4376_v32, 16  ;;  %v4483_v62 = vpack.c.b16 %v1409_v42, %v1408_v38  ;;  %v807_v2 = vrot.slane %v805_v49, 5  ;;  %v4493_v32 = vld [vmem:[%s4299_s11 + $0xac] sm:$0xf] }
  0x40   : > { %v792_v0 = vor.u32 %v791_v54, %v788_v34  ;;  %v4485_v1 = vpack.c.b16 %v1079_v55, %v1078_v53  ;;  %v802_v8 = vor.u32 %v801_v59, %v797_v56  ;;  %v511_v6 = vshrl.u32 %v4371_v27, 16 }
  0x41   : > { %v517_v12 = vshll.u32 %v4385_v39, 16  ;;  %v500_v14 = vrot.slane %v498_v7, 4  ;;  %v503_v16 = vrot.slane %v501_v60, 5  ;;  %v990_v23 = vrot.slane %v4493_v32, 5 }
  0x42   : > { %v793_v10 = vrot.slane %v792_v0, 4  ;;  %1494 = vrot.lane.b32.xlu2 %v4485_v1, %s4194_s14  ;;  %v803_v11 = vrot.slane %v802_v8, 4  ;;  %v513_v19 = vrot.slane %v511_v6, 4  ;;  %v762_v39 = vshrl.u32 %v4409_v57, 16 }
  0x43   : > { %v765_v26 = vshll.u32 %v4409_v57, 16  ;;  %v519_v35 = vrot.slane %v517_v12, 5  ;;  %v775_v36 = vshrl.u32 %v4412_v58, 16  ;;  %v504_v38 = vor.u32 %v503_v16, %v500_v14 }
  0x44   : > { %v798_v17 = vsel %vm4356_vm5, %v793_v10, %v797_v56  ;;  %v808_v9 = vsel %vm4356_vm5, %v803_v11, %v807_v2  ;;  %v906_v42 = vrot.slane %v4504_v24, 5  ;;  %v507_v43 = vshll.u32 %v4371_v27, 16 }
  0x45   : > { %1480 = vrot.lane.b32.xlu1 %v4477_v50, %s4193_s13  ;;  %v1179_v18 = vunpack.c.l.b16 %v798_v17  ;;  %v1180_v21 = vunpack.c.l.b16 %v808_v9  ;;  %v3861_v57 = vrot.slane %v4509_v30, 9  ;;  %v992_v44 = vrot.slane %v990_v23, 4 }
  0x46   : > { %v993_v46 = vrot.slane %v4512_v33, 5  ;;  %v505_v47 = vrot.slane %v504_v38, 4  ;;  %v764_v34 = vrot.slane %v762_v39, 4  ;;  %v767_v48 = vrot.slane %v765_v26, 5 }
  0x47   : > { %1456 = vrot.lane.b32.xlu0 %v4483_v62, %s4193_s13  ;;  %v4515_v25 = vpack.c.b16 %v1180_v21, %v1179_v18  ;;  %v509_v49 = vrot.slane %v507_v43, 5  ;;  %v771_v45 = vshll.u32 %v4412_v58, 16  ;;  %v777_v53 = vrot.slane %v775_v36, 4 }
  0x48   : > { %v3849_v27 = vrot.slane %v4518_v40, 9  ;;  %v1004_v54 = vrot.slane %v4459_v29, 5  ;;  %v908_v55 = vrot.slane %v906_v42, 4  ;;  %v991_v58 = vsel %vm4304_vm2, %v3861_v57, %v990_v23 }
  0x49   : > { %v510_v56 = vsel %vm4356_vm5, %v505_v47, %v509_v49  ;;  %v514_v59 = vor.u32 %v513_v19, %v509_v49  ;;  %v773_v7 = vrot.slane %v771_v45, 5  ;;  %v994_v60 = vsel %vm4304_vm2, %v992_v44, %v993_v46 }
  0x4a   : > { %1525 = vrot.lane.b32.xlu2 %v4373_v28, %s4192_s12  ;;  %v4024_v28 = vld [vmem:[%s4299_s11 + $0x60] sm:$0xff]  ;;  %v3863_v8 = vrot.slane %v4454_v22, 9  ;;  %v1006_v2 = vrot.slane %v1004_v54, 4  ;;  %v1007_v6 = vrot.slane %v4464_v37, 5  ;;  %v781_v29 = vshll.u32 %v4418_v61, 16 }
  0x4b   : > { %v515_v0 = vrot.slane %v514_v59, 4  ;;  %v907_v10 = vsel %vm4304_vm2, %v3849_v27, %v906_v42  ;;  %v1072_v11 = vunpack.c.l.b16 %v510_v56  ;;  %v768_v16 = vor.u32 %v767_v48, %v764_v34  ;;  %v4584_v56 = vld [vmem:[%s4299_s11 + $0xa0] sm:$0xf] }
  0x4c   : > { %v778_v17 = vor.u32 %v777_v53, %v773_v7  ;;  %v1430_v22 = vunpack.c.l.b16 %v991_v58  ;;  %v1431_v9 = vunpack.c.l.b16 %v994_v60  ;;  %v474_v37 = vshrl.u32 %v4423_v63, 16  ;;  %v4593_v58 = vld [vmem:[%s4299_s11 + $0x9c] sm:$0xf] }
  0x4d   : > { %1523 = vrot.lane.b32.xlu1 %v4449_v20, %s4192_s12  ;;  %v909_v20 = vrot.slane %v4521_v41, 5  ;;  %v520_v14 = vsel %vm4356_vm5, %v515_v0, %v519_v35  ;;  %v477_v61 = vshll.u32 %v4423_v63, 16  ;;  %v1005_v19 = vsel %vm4304_vm2, %v3863_v8, %v1004_v54 }
  0x4e   : > { %v1073_v18 = vunpack.c.l.b16 %v520_v14  ;;  %v1008_v21 = vsel %vm4304_vm2, %v1006_v2, %v1007_v6  ;;  %v1406_v23 = vunpack.c.l.b16 %v907_v10  ;;  %v783_v35 = vrot.slane %v781_v29, 5  ;;  %v4601_v29 = vld [vmem:[%s4299_s11 + $0xa4] sm:$0x1] }
  0x4f   : > { %1512 = vrot.lane.b32.xlu0 %v4515_v25, %s4194_s14  ;;  %v910_v12 = vsel %vm4304_vm2, %v908_v55, %v909_v20  ;;  %v769_v36 = vrot.slane %v768_v16, 4  ;;  %v779_v38 = vrot.slane %v778_v17, 4  ;;  %v487_v42 = vshrl.u32 %v4430_v4, 16  ;;  %v4609_v16 = vld [vmem:[%s4299_s11 + $0xc] sm:$0xf] }
  0x50   : > { %v1407_v39 = vunpack.c.l.b16 %v910_v12  ;;  %v4562_v26 = vpack.c.b16 %v1073_v18, %v1072_v11  ;;  %v4565_v43 = vpack.c.b16 %v1431_v9, %v1430_v22  ;;  %v1514_v63 = vunpack.c.l.b16 %v1005_v19 }
  0x51   : > { %v1515_v57 = vunpack.c.l.b16 %v1008_v21  ;;  %v476_v44 = vrot.slane %v474_v37, 4  ;;  %v479_v46 = vrot.slane %v477_v61, 5  ;;  %v774_v34 = vsel %vm4356_vm5, %v769_v36, %v773_v7  ;;  %v4589_v7 = vld [vmem:[%s4299_s11 + $0x10] sm:$0xf] }
  0x52   : > { %1488 = vrot.lane.b32.xlu2 %v4562_v26, %s4194_s14  ;;  %v4569_v47 = vpack.c.b16 %v1407_v39, %v1406_v23  ;;  %v784_v48 = vsel %vm4356_vm5, %v779_v38, %v783_v35  ;;  %v489_v49 = vrot.slane %v487_v42, 4  ;;  %v483_v53 = vshll.u32 %v4430_v4, 16  ;;  %v4624_v39 = vld [vmem:[%s4299_s11 + $0x54] sm:$0xff] }
  0x53   : > { %v4577_v45 = vpack.c.b16 %v1515_v57, %v1514_v63  ;;  %v493_v27 = vshll.u32 %v4433_v5, 16  ;;  %v480_v20 = vor.u32 %v479_v46, %v476_v44  ;;  %v1094_v54 = vunpack.c.l.b16 %v774_v34 }
  0x54   : > { %v1095_v55 = vunpack.c.l.b16 %v784_v48  ;;  %v485_v59 = vrot.slane %v483_v53, 5  ;;  %v738_v5 = vshrl.u32 %v4509_v30, 16  ;;  %v983_v60 = vrot.slane %v4584_v56, 5 }
  0x55   : > { %1161 = vrot.lane.b32.xlu1 %v4024_v28, %s4194_s14  ;;  %v495_v4 = vrot.slane %v493_v27, 5  ;;  %v481_v0 = vrot.slane %v480_v20, 4  ;;  %v741_v8 = vshll.u32 %v4509_v30, 16  ;;  %v751_v2 = vshrl.u32 %v4493_v32, 16  ;;  %v4612_v30 = vld [vmem:[%s4299_s11 + $0x14] sm:$0x1] }
  0x56   : > { %v490_v28 = vor.u32 %v489_v49, %v485_v59  ;;  %v4598_v6 = vpack.c.b16 %v1095_v55, %v1094_v54  ;;  %v899_v11 = vrot.slane %v4589_v7, 5  ;;  %v747_v12 = vshll.u32 %v4493_v32, 16 }
  0x57   : > { %1126 = vrot.lane.b32.xlu0 %v4485_v1, %s4193_s13  ;;  %v3860_v14 = vrot.slane %v4593_v58, 9  ;;  %v985_v17 = vrot.slane %v983_v60, 4  ;;  %v986_v22 = vrot.slane %v4601_v29, 5  ;;  %v486_v9 = vsel %vm4356_vm5, %v481_v0, %v485_v59 }
  0x58   : > { %v491_v10 = vrot.slane %v490_v28, 4  ;;  %v740_v32 = vrot.slane %v738_v5, 4  ;;  %v743_v37 = vrot.slane %v741_v8, 5  ;;  %v753_v61 = vrot.slane %v751_v2, 4 }
  0x59   : > { %v901_v19 = vrot.slane %v899_v11, 4  ;;  %v902_v21 = vrot.slane %v4612_v30, 5  ;;  %v749_v23 = vrot.slane %v747_v12, 5  ;;  %v1070_v35 = vunpack.c.l.b16 %v486_v9 }
  0x5a   : > { %1547 = vrot.lane.b32.xlu2 %v4577_v45, %s4192_s12  ;;  %v496_v18 = vsel %vm4356_vm5, %v491_v10, %v495_v4  ;;  %v984_v38 = vsel %vm4304_vm2, %v3860_v14, %v983_v60  ;;  %v987_v42 = vsel %vm4304_vm2, %v985_v17, %v986_v22  ;;  %v757_v63 = vshll.u32 %v4512_v33, 16 }
  0x5b   : > { %v1071_v36 = vunpack.c.l.b16 %v496_v18  ;;  %v903_v44 = vsel %vm4304_vm2, %v901_v19, %v902_v21  ;;  %v744_v46 = vor.u32 %v743_v37, %v740_v32  ;;  %v754_v34 = vor.u32 %v753_v61, %v749_v23  ;;  %v4663_v18 = vld [vmem:[%s4299_s11 + $0x94] sm:$0xf]  ;;  %v4668_v32 = vld [vmem:[%s4299_s11 + $0x4] sm:$0xf]  ;;  %v4671_v61 = vld [vmem:[%s4299_s11 + $0x90] sm:$0xf] }
  0x5c   : > { %v1428_v48 = vunpack.c.l.b16 %v984_v38  ;;  %v1429_v49 = vunpack.c.l.b16 %v987_v42  ;;  %v463_v27 = vshrl.u32 %v4504_v24, 16  ;;  %v450_v20 = vshrl.u32 %v4518_v40, 16 }
  0x5d   : > { %1478 = vrot.lane.b32.xlu1 %v4565_v43, %s4193_s13  ;;  %v4639_v53 = vpack.c.b16 %v1071_v36, %v1070_v35  ;;  %v453_v33 = vshll.u32 %v4518_v40, 16  ;;  %v459_v54 = vshll.u32 %v4504_v24, 16  ;;  %v1405_v59 = vunpack.c.l.b16 %v903_v44  ;;  %v4691_v44 = vld [vmem:[%s4299_s11 + $0x8] sm:$0x1] }
  0x5e   : > { %v759_v28 = vrot.slane %v757_v63, 5  ;;  %v745_v4 = vrot.slane %v744_v46, 4  ;;  %v755_v5 = vrot.slane %v754_v34, 4  ;;  %v4647_v60 = vpack.c.b16 %v1429_v49, %v1428_v48 }
  0x5f   : > { %1454 = vrot.lane.b32.xlu0 %v4569_v47, %s4193_s13  ;;  %v465_v0 = vrot.slane %v463_v27, 4  ;;  %v452_v8 = vrot.slane %v450_v20, 4  ;;  %v455_v40 = vrot.slane %v453_v33, 5  ;;  %v461_v24 = vrot.slane %v459_v54, 5 }
  0x60   : > { %v750_v10 = vsel %vm4356_vm5, %v745_v4, %v749_v23  ;;  %v469_v12 = vshll.u32 %v4521_v41, 16  ;;  %v976_v41 = vrot.slane %v4663_v18, 5  ;;  %v714_v21 = vshrl.u32 %v4593_v58, 16 }
  0x61   : > { %v456_v14 = vor.u32 %v455_v40, %v452_v8  ;;  %v466_v17 = vor.u32 %v465_v0, %v461_v24  ;;  %v1092_v22 = vunpack.c.l.b16 %v750_v10  ;;  %v717_v23 = vshll.u32 %v4593_v58, 16 }
  0x62   : > { %1196 = vrot.lane.b32.xlu2 %v4399_v52, %s4192_s12  ;;  %v471_v37 = vrot.slane %v469_v12, 5  ;;  %v727_v35 = vshrl.u32 %v4584_v56, 16  ;;  %v892_v38 = vrot.slane %v4668_v32, 5  ;;  %v723_v42 = vshll.u32 %v4584_v56, 16 }
  0x63   : > { %v467_v19 = vrot.slane %v466_v17, 4  ;;  %v3859_v63 = vrot.slane %v4671_v61, 9  ;;  %v978_v58 = vrot.slane %v976_v41, 4  ;;  %v716_v56 = vrot.slane %v714_v21, 4 }
  0x64   : > { %v719_v49 = vrot.slane %v717_v23, 5  ;;  %v729_v27 = vrot.slane %v727_v35, 4  ;;  %v894_v20 = vrot.slane %v892_v38, 4  ;;  %v895_v33 = vrot.slane %v4691_v44, 5 }
  0x65   : > { %1521 = vrot.lane.b32.xlu1 %v4483_v62, %s4192_s12  ;;  %v3848_v62 = vrot.slane %v4609_v16, 9  ;;  %v472_v48 = vsel %vm4356_vm5, %v467_v19, %v471_v37  ;;  %v725_v54 = vrot.slane %v723_v42, 5  ;;  %v977_v4 = vsel %vm4304_vm2, %v3859_v63, %v976_v41 }
  0x66   : > { %v733_v0 = vshll.u32 %v4601_v29, 16  ;;  %v439_v8 = vshrl.u32 %v4589_v7, 16  ;;  %v720_v10 = vor.u32 %v719_v49, %v716_v56  ;;  %v426_v12 = vshrl.u32 %v4609_v16, 16 }
  0x67   : > { %1510 = vrot.lane.b32.xlu0 %v4598_v6, %s4194_s14  ;;  %v900_v57 = vsel %vm4304_vm2, %v3848_v62, %v899_v11  ;;  %v760_v11 = vsel %vm4356_vm5, %v755_v5, %v759_v28  ;;  %v457_v62 = vrot.slane %v456_v14, 4  ;;  %v1069_v28 = vunpack.c.l.b16 %v472_v48 }
  0x68   : > { %v1404_v55 = vunpack.c.l.b16 %v900_v57  ;;  %v1093_v9 = vunpack.c.l.b16 %v760_v11  ;;  %v4688_v57 = vld [vmem:[%s4299_s11] sm:$0xf]  ;;  %v730_v11 = vor.u32 %v729_v27, %v725_v54  ;;  %v1426_v14 = vunpack.c.l.b16 %v977_v4 }
  0x69   : > { %v462_v34 = vsel %vm4356_vm5, %v457_v62, %v461_v24  ;;  %v896_v24 = vsel %vm4304_vm2, %v894_v20, %v895_v33  ;;  %v429_v29 = vshll.u32 %v4609_v16, 16  ;;  %v735_v62 = vrot.slane %v733_v0, 5 }
  0x6a   : > { %1486 = vrot.lane.b32.xlu2 %v4639_v53, %s4194_s14  ;;  %v4651_v2 = vpack.c.b16 %v1405_v59, %v1404_v55  ;;  %v4677_v36 = vpack.c.b16 %v1093_v9, %v1092_v22  ;;  %v4703_v55 = vld [vmem:[%s4299_s11 + $0x48] sm:$0xff]  ;;  %v1068_v59 = vunpack.c.l.b16 %v462_v34  ;;  %v435_v9 = vshll.u32 %v4589_v7, 16 }
  0x6b   : > { %v1403_v41 = vunpack.c.l.b16 %v896_v24  ;;  %v441_v19 = vrot.slane %v439_v8, 4  ;;  %v721_v21 = vrot.slane %v720_v10, 4  ;;  %v731_v23 = vrot.slane %v730_v11, 4 }
  0x6c   : > { %v4720_v22 = vpack.c.b16 %v1069_v28, %v1068_v59  ;;  %v428_v35 = vrot.slane %v426_v12, 4  ;;  %v703_v42 = vshrl.u32 %v4663_v18, 16  ;;  %v431_v7 = vrot.slane %v429_v29, 5 }
  0x6d   : > { %1159 = vrot.lane.b32.xlu1 %v4624_v39, %s4194_s14  ;;  %v693_v16 = vshll.u32 %v4671_v61, 16  ;;  %v726_v48 = vsel %vm4356_vm5, %v721_v21, %v725_v54  ;;  %v736_v56 = vsel %vm4356_vm5, %v731_v23, %v735_v62  ;;  %v445_v49 = vshll.u32 %v4612_v30, 16  ;;  %v4768_v23 = vld [vmem:[%s4299_s11 + $0x3c] sm:$0xff] }
  0x6e   : > { %v432_v33 = vor.u32 %v431_v7, %v428_v35  ;;  %v1090_v54 = vunpack.c.l.b16 %v726_v48  ;;  %v1091_v28 = vunpack.c.l.b16 %v736_v56 }
  0x6f   : > { %1124 = vrot.lane.b32.xlu0 %v4397_v51, %s4193_s13  ;;  %v447_v4 = vrot.slane %v445_v49, 5 }
  0x70   : > { %v4748_v10 = vpack.c.b16 %v1091_v28, %v1090_v54 }
  0x72   : > { %1545 = vrot.lane.b32.xlu2 %v4477_v50, %s4192_s12  ;;  %v4680_v50 = vld [vmem:[%s4299_s11 + $0x98] sm:$0x1] }
  0x73   : > { %v979_v46 = vrot.slane %v4680_v50, 5  ;;  %v709_v30 = vshll.u32 %v4680_v50, 16  ;;  %v4756_v50 = vld [vmem:[%s4299_s11 + $0x8c] sm:$0x1] }
  0x75   : > { %1476 = vrot.lane.b32.xlu1 %v4647_v60, %s4193_s13  ;;  %v980_v5 = vsel %vm4304_vm2, %v978_v58, %v979_v46  ;;  %v699_v58 = vshll.u32 %v4663_v18, 16  ;;  %v437_v46 = vrot.slane %v435_v9, 5 }
  0x76   : > { %v1427_v17 = vunpack.c.l.b16 %v980_v5  ;;  %v369_v5 = vld [vmem:[%s4299_s11 + $0x88] sm:$0xf] }
  0x77   : > { %1452 = vrot.lane.b32.xlu0 %v4651_v2, %s4193_s13  ;;  %v701_v18 = vrot.slane %v699_v58, 5  ;;  %v442_v59 = vor.u32 %v441_v19, %v437_v46  ;;  %v969_v12 = vrot.slane %v369_v5, 5  ;;  %v679_v54 = vshrl.u32 %v369_v5, 16 }
  0x78   : > { %v4728_v63 = vpack.c.b16 %v1427_v17, %v1426_v14  ;;  %v711_v14 = vrot.slane %v709_v30, 5  ;;  %v368_v17 = vld [vmem:[%s4299_s11 + $0x84] sm:$0xf]  ;;  %v675_v28 = vshll.u32 %v369_v5, 16 }
  0x79   : > { %v443_v24 = vrot.slane %v442_v59, 4  ;;  %v3858_v19 = vrot.slane %v368_v17, 9  ;;  %v971_v21 = vrot.slane %v969_v12, 4  ;;  %v669_v59 = vshll.u32 %v368_v17, 16 }
  0x7a   : > { %1194 = vrot.lane.b32.xlu2 %v4485_v1, %s4192_s12 }
  0x7d   : > { %1519 = vrot.lane.b32.xlu1 %v4569_v47, %s4192_s12  ;;  %v3847_v47 = vrot.slane %v4688_v57, 9 }
  0x7f   : > { %1508 = vrot.lane.b32.xlu0 %v4677_v36, %s4194_s14  ;;  %v893_v40 = vsel %vm4304_vm2, %v3847_v47, %v892_v38  ;;  %v690_v38 = vshrl.u32 %v4671_v61, 16  ;;  %v705_v47 = vrot.slane %v703_v42, 4  ;;  %v695_v61 = vrot.slane %v693_v16, 5 }
  0x80   : > { %v1402_v37 = vunpack.c.l.b16 %v893_v40  ;;  %v4741_v20 = vpop.permute.xlu2 %1529  ;;  %v433_v40 = vrot.slane %v432_v33, 4  ;;  %v970_v16 = vsel %vm4304_vm2, %v3858_v19, %v969_v12  ;;  %v666_v33 = vshrl.u32 %v368_v17, 16  ;;  %v4803_v17 = vld [vmem:[%s4299_s11 + $0x7c] sm:$0xf] }
  0x81   : > { %v692_v27 = vrot.slane %v690_v38, 4  ;;  %v706_v8 = vor.u32 %v705_v47, %v701_v18  ;;  %v1424_v49 = vunpack.c.l.b16 %v970_v16 }
  0x82   : > { %1484 = vrot.lane.b32.xlu2 %v4720_v22, %s4194_s14  ;;  %v1434_v34 = vpack.c.b16 %v1403_v41, %v1402_v37  ;;  %v438_v9 = vsel %vm4356_vm5, %v433_v40, %v437_v46  ;;  %v448_v37 = vsel %vm4356_vm5, %v443_v24, %v447_v4  ;;  %v668_v30 = vrot.slane %v666_v33, 4 }
  0x83   : > { %v696_v0 = vor.u32 %v695_v61, %v692_v27  ;;  %v1066_v35 = vunpack.c.l.b16 %v438_v9  ;;  %v1067_v38 = vunpack.c.l.b16 %v448_v37  ;;  %v677_v40 = vrot.slane %v675_v28, 5 }
  0x85   : > { %1157 = vrot.lane.b32.xlu1 %v4703_v55, %s4194_s14  ;;  %v697_v29 = vrot.slane %v696_v0, 4  ;;  %v4782_v56 = vpack.c.b16 %v1067_v38, %v1066_v35  ;;  %v671_v0 = vrot.slane %v669_v59, 5 }
  0x87   : > { %1122 = vrot.lane.b32.xlu0 %v4442_v15, %s4193_s13  ;;  %v702_v42 = vsel %vm4356_vm5, %v697_v29, %v701_v18  ;;  %v685_v29 = vshll.u32 %v4756_v50, 16  ;;  %v672_v9 = vor.u32 %v671_v0, %v668_v30 }
  0x88   : > { %v4764_v41 = vpop.permute.xlu2 %1527 }
  0x89   : > { %v673_v35 = vrot.slane %v672_v9, 4 }
  0x8a   : > { %1543 = vrot.lane.b32.xlu2 %v4565_v43, %s4192_s12  ;;  %v707_v43 = vrot.slane %v706_v8, 4  ;;  %v681_v8 = vrot.slane %v679_v54, 4 }
  0x8c   : > { %v712_v7 = vsel %vm4356_vm5, %v707_v43, %v711_v14  ;;  %v682_v37 = vor.u32 %v681_v8, %v677_v40 }
  0x8d   : > { %1474 = vrot.lane.b32.xlu1 %v4728_v63, %s4193_s13  ;;  %v1089_v48 = vunpack.c.l.b16 %v712_v7 }
  0x8e   : > { %v683_v38 = vrot.slane %v682_v37, 4 }
  0x8f   : > { %1450 = vrot.lane.b32.xlu0 %v1434_v34, %s4193_s13  ;;  %v1088_v34 = vunpack.c.l.b16 %v702_v42 }
  0x91   : > { %v4786_v18 = vpack.c.b16 %v1089_v48, %v1088_v34  ;;  %v678_v34 = vsel %vm4356_vm5, %v673_v35, %v677_v40 }
  0x92   : > { %1192 = vrot.lane.b32.xlu2 %v4397_v51, %s4192_s12  ;;  %v1086_v54 = vunpack.c.l.b16 %v678_v34 }
  0x95   : > { %v4750_v11 = vpop.permute.xlu1 %1531  ;;  %1517 = vrot.lane.b32.xlu1 %v4651_v2, %s4192_s12  ;;  %v972_v2 = vrot.slane %v4756_v50, 5  ;;  %v365_v50 = vld [vmem:[%s4299_s11 + $0x78] sm:$0xf] }
  0x96   : > { %v3857_v42 = vrot.slane %v365_v50, 9 }
  0x97   : > { %1506 = vrot.lane.b32.xlu0 %v4748_v10, %s4194_s14  ;;  %v973_v58 = vsel %vm4304_vm2, %v971_v21, %v972_v2  ;;  %v4820_v21 = vld [vmem:[%s4299_s11 + $0x80] sm:$0x1]  ;;  %v687_v2 = vrot.slane %v685_v29, 5  ;;  %v645_v29 = vshll.u32 %v365_v50, 16 }
  0x98   : > { %v1465_v62 = vpop.permute.xlu0 %1464  ;;  %v1425_v27 = vunpack.c.l.b16 %v973_v58  ;;  %v965_v16 = vrot.slane %v4820_v21, 5 }
  0x99   : > { %v1572_v12 = vsel %vm1214_vm6, %v4485_v1, %v1465_v62  ;;  %v688_v48 = vsel %vm4356_vm5, %v683_v38, %v687_v2 }
  0x9a   : > { %1482 = vrot.lane.b32.xlu2 %v4782_v56, %s4194_s14  ;;  %v4790_v4 = vpack.c.b16 %v1425_v27, %v1424_v49  ;;  %v4032_v49 = vld [vmem:[%s4440_s24] sm:$0xff]  ;;  %v1087_v28 = vunpack.c.l.b16 %v688_v48 }
  0x9c   : > { %v1495_v61 = vpop.permute.xlu2 %1494 }
  0x9d   : > { %1155 = vrot.lane.b32.xlu1 %v4768_v23, %s4194_s14  ;;  %v1463_v46 = vpop.permute.xlu1 %1462 }
  0x9e   : > { %v1569_v1 = vsel %vm1214_vm6, %v4397_v51, %v1463_v46 }
  0x9f   : > { %1120 = vrot.lane.b32.xlu0 %v4562_v26, %s4193_s13  ;;  %v1610_v51 = vsel %vm1263_vm7, %v1569_v1, %v1495_v61  ;;  %v651_v1 = vshll.u32 %v4803_v17, 16 }
  0xa0   : > { %v1642_v46 = vsel %vm1296_vm8, %v1610_v51, %v4741_v20 }
  0xa1   : > { %v1461_v47 = vpop.permute.xlu0 %1460  ;;  %v4836_v61 = vsel %vm1334_vm9, %v1642_v46, 0  ;;  %v653_v51 = vrot.slane %v651_v1, 5 }
  0xa2   : > { %1541 = vrot.lane.b32.xlu2 %v4647_v60, %s4192_s12  ;;  %v962_v60 = vrot.slane %v4803_v17, 5  ;;  %v1566_v59 = vsel %vm1214_vm6, %v4442_v15, %v1461_v47  ;;  %v642_v47 = vshrl.u32 %v365_v50, 16 }
  0xa4   : > { %v4800_v14 = vpop.permute.xlu2 %1525  ;;  %v964_v7 = vrot.slane %v962_v60, 4  ;;  %v963_v33 = vsel %vm4304_vm2, %v3857_v42, %v962_v60  ;;  %v647_v60 = vrot.slane %v645_v29, 5 }
  0xa5   : > { %1504 = vrot.lane.b32.xlu1 %v4786_v18, %s4194_s14  ;;  %v1422_v8 = vunpack.c.l.b16 %v963_v33 }
  0xa6   : > { %v966_v20 = vsel %vm4304_vm2, %v964_v7, %v965_v16  ;;  %v661_v7 = vshll.u32 %v4820_v21, 16  ;;  %v362_v21 = vld [vmem:[%s4299_s11 + $0x6c] sm:$0xf] }
  0xa7   : > { %1472 = vrot.lane.b32.xlu0 %v4790_v4, %s4193_s13  ;;  %v1493_v24 = vpop.permute.xlu1 %1492  ;;  %v1423_v40 = vunpack.c.l.b16 %v966_v20  ;;  %v4898_v20 = vld [vmem:[%s4299_s11 + $0x74] sm:$0x1] }
  0xa8   : > { %v1608_v30 = vsel %vm1263_vm7, %v1566_v59, %v1493_v24  ;;  %v663_v59 = vrot.slane %v661_v7, 5 }
  0xa9   : > { %v1497_v5 = vpop.permute.xlu0 %1496  ;;  %v4858_v9 = vpack.c.b16 %v1423_v40, %v1422_v8  ;;  %v3856_v8 = vrot.slane %v362_v21, 9 }
  0xaa   : > { %v1612_v43 = vsel %vm1263_vm7, %v1572_v12, %v1497_v5  ;;  %1190 = vrot.lane.b32.xlu2 %v4442_v15, %s4192_s12  ;;  %v1640_v5 = vsel %vm1296_vm8, %v1608_v30, %v4764_v41  ;;  %v4851_v15 = vpack.c.b16 %v1087_v28, %v1086_v54 }
  0xab   : > { %v1644_v62 = vsel %vm1296_vm8, %v1612_v43, %v4750_v11  ;;  %v655_v43 = vshrl.u32 %v4803_v17, 16  ;;  %v4862_v41 = vsel %vm1334_vm9, %v1640_v5, 0 }
  0xac   : > { %v4812_v19 = vsel %vm1334_vm9, %v1644_v62, 0  ;;  %v1489_v27 = vpop.permute.xlu2 %1488  ;;  %v644_v62 = vrot.slane %v642_v47, 4 }
  0xad   : > { %1696 = vmatpush.bf16.xpose.msra.mxu2 %v4812_v19  ;;  %1142 = vrot.lane.b32.xlu1 %v4598_v6, %s4193_s13  ;;  %v657_v50 = vrot.slane %v655_v43, 4  ;;  %v4913_v43 = vld [vmem:[%s4299_s11 + $0xb4] sm:$0xff] }
  0xae   : > { %v648_v46 = vor.u32 %v647_v60, %v644_v62 }
  0xaf   : > { %1118 = vrot.lane.b32.xlu0 %v4639_v53, %s4193_s13  ;;  %v1491_v11 = vpop.permute.xlu1 %1490  ;;  %v658_v34 = vor.u32 %v657_v50, %v653_v51 }
  0xb0   : > { %v649_v28 = vrot.slane %v648_v46, 4 }
  0xb1   : > { %v1459_v58 = vpop.permute.xlu0 %1458  ;;  %v659_v30 = vrot.slane %v658_v34, 4 }
  0xb2   : > { %1539 = vrot.lane.b32.xlu2 %v4728_v63, %s4192_s12  ;;  %v1563_v24 = vsel %vm1214_vm6, %v4562_v26, %v1459_v58  ;;  %v4868_v63 = vld [vmem:[%s4299_s11 + $0x30] sm:$0xff] }
  0xb3   : > { %v664_v1 = vsel %vm4356_vm5, %v659_v30, %v663_v59  ;;  %v4947_v59 = vld [vmem:[%s4299_s11 + $0x24] sm:$0xff] }
  0xb4   : > { %v1548_v37 = vpop.permute.xlu2 %1547 }
  0xb5   : > { %1697 = vmatpush.bf16.xpose.msra.mxu2 %v4836_v61  ;;  %1188 = vrot.lane.b32.xlu1 %v4562_v26, %s4192_s12  ;;  %v1606_v26 = vsel %vm1263_vm7, %v1563_v24, %v1491_v11  ;;  %v4880_v11 = vld [vmem:[%s4299_s11 + $0x70] sm:$0xf] }
  0xb6   : > { %v1638_v38 = vsel %vm1296_vm8, %v1606_v26, %v4800_v14  ;;  %v631_v46 = vshrl.u32 %v4880_v11, 16 }
  0xb7   : > { %1177 = vrot.lane.b32.xlu0 %v4032_v49, %s4194_s14  ;;  %v1481_v0 = vpop.permute.xlu1 %1480  ;;  %v4886_v48 = vsel %vm1334_vm9, %v1638_v38, 0  ;;  %v955_v49 = vrot.slane %v4880_v11, 5 }
  0xb8   : > { %v1596_v2 = vsel %vm1214_vm6, %v4598_v6, %v1481_v0 }
  0xb9   : > { %v1457_v12 = vpop.permute.xlu0 %1456  ;;  %v957_v40 = vrot.slane %v955_v49, 4  ;;  %v956_v60 = vsel %vm4304_vm2, %v3856_v8, %v955_v49  ;;  %v627_v49 = vshll.u32 %v4880_v11, 16 }
  0xba   : > { %1153 = vrot.lane.b32.xlu2 %v4868_v63, %s4194_s14  ;;  %v1560_v33 = vsel %vm1214_vm6, %v4639_v53, %v1457_v12  ;;  %v958_v12 = vrot.slane %v4898_v20, 5 }
  0xbb   : > { %v1604_v0 = vsel %vm1263_vm7, %v1560_v33, %v1489_v27  ;;  %v654_v27 = vsel %vm4356_vm5, %v649_v28, %v653_v51  ;;  %v1085_v51 = vunpack.c.l.b16 %v664_v1  ;;  %v402_v1 = vshrl.u32 %v4688_v57, 16 }
  0xbc   : > { %v1197_v58 = vpop.permute.xlu2 %1196 }
  0xbd   : > { %1698 = vmatpush.bf16.xpose.msra.mxu2 %v4862_v41  ;;  %1502 = vrot.lane.b32.xlu1 %v4851_v15, %s4194_s14 }
  0xbf   : > { %1470 = vrot.lane.b32.xlu0 %v4858_v9, %s4193_s13  ;;  %v1524_v17 = vpop.permute.xlu1 %1523 }
  0xc0   : > { %v1636_v47 = vsel %vm1296_vm8, %v1604_v0, %v1524_v17  ;;  %v1084_v17 = vunpack.c.l.b16 %v654_v27  ;;  %v629_v0 = vrot.slane %v627_v49, 5 }
  0xc1   : > { %v1513_v35 = vpop.permute.xlu0 %1512  ;;  %v4920_v26 = vsel %vm1334_vm9, %v1636_v47, 0 }
  0xc2   : > { %v1628_v42 = vsel %vm1263_vm7, %v1596_v2, %v1513_v35  ;;  %1212 = vrot.lane.b32.xlu2 %v4515_v25, %s4192_s12  ;;  %v1420_v35 = vunpack.c.l.b16 %v956_v60  ;;  %v4938_v7 = vpack.c.b16 %v1085_v51, %v1084_v17  ;;  %v405_v60 = vshll.u32 %v4688_v57, 16 }
  0xc3   : > { %v1660_v16 = vsel %vm1296_vm8, %v1628_v42, %v1548_v37 }
  0xc4   : > { %v4889_v14 = vsel %vm1334_vm9, %v1660_v16, 0  ;;  %v1487_v37 = vpop.permute.xlu2 %1486  ;;  %v618_v16 = vshrl.u32 %v362_v21, 16 }
  0xc5   : > { %1699 = vmatpush.bf16.xpose.msra.mxu2 %v4886_v48  ;;  %1709 = vmatpush.bf16.xpose.msra.mxu3 %v4889_v14 }
  0xc6   : > { %1140 = vrot.lane.b32.xlu1 %v4677_v36, %s4193_s13 }
  0xc7   : > { %1116 = vrot.lane.b32.xlu0 %v4720_v22, %s4193_s13  ;;  %v1162_v54 = vpop.permute.xlu1 %1161 }
  0xc9   : > { %v1127_v5 = vpop.permute.xlu0 %1126 }
  0xca   : > { %v1238_v29 = vsel %vm1214_vm6, %v4624_v39, %v1127_v5  ;;  %v959_v39 = vsel %vm4304_vm2, %v957_v40, %v958_v12  ;;  %1537 = vrot.lane.b32.xlu2 %v4790_v4, %s4192_s12  ;;  %v620_v4 = vrot.slane %v618_v16, 4  ;;  %v637_v5 = vshll.u32 %v4898_v20, 16 }
  0xcb   : > { %v1279_v24 = vsel %vm1263_vm7, %v1238_v29, %v1162_v54  ;;  %v1421_v38 = vunpack.c.l.b16 %v959_v39  ;;  %v411_v39 = vshll.u32 %v4668_v32, 16  ;;  %v415_v20 = vshrl.u32 %v4668_v32, 16 }
  0xcc   : > { %v1312_v62 = vsel %vm1296_vm8, %v1279_v24, %v1197_v58  ;;  %v621_v58 = vshll.u32 %v362_v21, 16  ;;  %v1546_v34 = vpop.permute.xlu2 %1545  ;;  %v633_v21 = vrot.slane %v631_v46, 4  ;;  %v639_v17 = vrot.slane %v637_v5, 5 }
  0xcd   : > { %1700 = vmatpush.bf16.xpose.msra.mxu2 %v4920_v26  ;;  %v4929_v50 = vsel %vm1334_vm9, %v1312_v62, 0  ;;  %v413_v57 = vrot.slane %v411_v39, 5  ;;  %v417_v16 = vrot.slane %v415_v20, 4 }
  0xce   : > { %1370 = vmatpush.bf16.xpose.msra.mxu0 %v4929_v50  ;;  %1186 = vrot.lane.b32.xlu1 %v4639_v53, %s4192_s12  ;;  %v4941_v53 = vpack.c.b16 %v1421_v38, %v1420_v35  ;;  %v623_v28 = vrot.slane %v621_v58, 5  ;;  %v634_v27 = vor.u32 %v633_v21, %v629_v0  ;;  %v404_v38 = vrot.slane %v402_v1, 4 }
  0xcf   : > { %1175 = vrot.lane.b32.xlu0 %v4913_v43, %s4194_s14  ;;  %v1479_v2 = vpop.permute.xlu1 %1478  ;;  %v418_v21 = vor.u32 %v417_v16, %v413_v57 }
  0xd0   : > { %v1593_v8 = vsel %vm1214_vm6, %v4677_v36, %v1479_v2  ;;  %v635_v35 = vrot.slane %v634_v27, 4  ;;  %v5011_v27 = vld [vmem:[%s4299_s11 + $0x18] sm:$0xff] }
  0xd1   : > { %v1455_v42 = vpop.permute.xlu0 %1454 }
  0xd2   : > { %v1557_v33 = vsel %vm1214_vm6, %v4720_v22, %v1455_v42  ;;  %1151 = vrot.lane.b32.xlu2 %v4947_v59, %s4194_s14  ;;  %v407_v42 = vrot.slane %v405_v60, 5 }
  0xd3   : > { %v1602_v54 = vsel %vm1263_vm7, %v1557_v33, %v1487_v37  ;;  %v624_v37 = vor.u32 %v623_v28, %v620_v4  ;;  %v640_v4 = vsel %vm4356_vm5, %v635_v35, %v639_v17 }
  0xd4   : > { %v1195_v24 = vpop.permute.xlu2 %1194  ;;  %v408_v28 = vor.u32 %v407_v42, %v404_v38 }
  0xd5   : > { %v625_v2 = vrot.slane %v624_v37, 4 }
  0xd6   : > { %1500 = vrot.lane.b32.xlu1 %v4938_v7, %s4194_s14 }
  0xd7   : > { %1468 = vrot.lane.b32.xlu0 %v4941_v53, %s4193_s13  ;;  %v1522_v30 = vpop.permute.xlu1 %1521  ;;  %v630_v33 = vsel %vm4356_vm5, %v625_v2, %v629_v0  ;;  %v1083_v0 = vunpack.c.l.b16 %v640_v4 }
  0xd8   : > { %v1634_v11 = vsel %vm1296_vm8, %v1602_v54, %v1522_v30 }
  0xd9   : > { %v1511_v40 = vpop.permute.xlu0 %1510  ;;  %v4958_v12 = vsel %vm1334_vm9, %v1634_v11, 0 }
  0xda   : > { %v1626_v47 = vsel %vm1263_vm7, %v1593_v8, %v1511_v40  ;;  %1701 = vmatpush.bf16.xpose.msra.mxu2 %v4958_v12  ;;  %1210 = vrot.lane.b32.xlu2 %v4598_v6, %s4192_s12  ;;  %v421_v6 = vshll.u32 %v4691_v44, 16  ;;  %v409_v8 = vrot.slane %v408_v28, 4  ;;  %v419_v40 = vrot.slane %v418_v21, 4  ;;  %v5056_v28 = vld [vmem:[%s4299_s11 + $0x90] sm:$0xff] }
  0xdb   : > { %v1658_v29 = vsel %vm1296_vm8, %v1626_v47, %v1546_v34  ;;  %v4984_v34 = vld [vmem:[%s4299_s11 + $0xa8] sm:$0xff] }
  0xdc   : > { %v4968_v62 = vsel %vm1334_vm9, %v1658_v29, 0  ;;  %v1485_v49 = vpop.permute.xlu2 %1484  ;;  %v423_v5 = vrot.slane %v421_v6, 5 }
  0xdd   : > { %1710 = vmatpush.bf16.xpose.msra.mxu3 %v4968_v62 }
  0xde   : > { %1138 = vrot.lane.b32.xlu1 %v4748_v10, %s4193_s13  ;;  %v424_v37 = vsel %vm4356_vm5, %v419_v40, %v423_v5 }
  0xdf   : > { %1114 = vrot.lane.b32.xlu0 %v4782_v56, %s4193_s13  ;;  %v1160_v51 = vpop.permute.xlu1 %1159  ;;  %v1065_v39 = vunpack.c.l.b16 %v424_v37 }
  0xe1   : > { %v1125_v58 = vpop.permute.xlu0 %1124 }
  0xe2   : > { %v1235_v32 = vsel %vm1214_vm6, %v4703_v55, %v1125_v58  ;;  %v1082_v55 = vunpack.c.l.b16 %v630_v33  ;;  %1535 = vrot.lane.b32.xlu2 %v4858_v9, %s4192_s12 }
  0xe3   : > { %v1277_v46 = vsel %vm1263_vm7, %v1235_v32, %v1160_v51 }
  0xe4   : > { %v1310_v54 = vsel %vm1296_vm8, %v1277_v46, %v1195_v24  ;;  %v5002_v44 = vpack.c.b16 %v1083_v0, %v1082_v55  ;;  %v1544_v29 = vpop.permute.xlu2 %1543  ;;  %v4195_v55 = vmov 0   ;;  %v5060_v0 = vld [vmem:[%s4299_s11 + $0xc] sm:$0xff] }
  0xe5   : > { %v4993_v30 = vsel %vm1334_vm9, %v1310_v54, 0  ;;  %4105 = vset.pattern.permute.xlu0 %v4195_v55 }
  0xe6   : > { %1371 = vmatpush.bf16.xpose.msra.mxu0 %v4993_v30  ;;  %1184 = vrot.lane.b32.xlu1 %v4720_v22, %s4192_s12  ;;  %v414_v22 = vsel %vm4356_vm5, %v409_v8, %v413_v57 }
  0xe7   : > { %1173 = vrot.lane.b32.xlu0 %v4984_v34, %s4194_s14  ;;  %v1477_v11 = vpop.permute.xlu1 %1476  ;;  %v1064_v60 = vunpack.c.l.b16 %v414_v22 }
  0xe8   : > { %v1590_v17 = vsel %vm1214_vm6, %v4748_v10, %v1477_v11 }
  0xe9   : > { %v1453_v47 = vpop.permute.xlu0 %1452  ;;  %v1096_v38 = vpack.c.b16 %v1065_v39, %v1064_v60 }
  0xea   : > { %v1554_v24 = vsel %vm1214_vm6, %v4782_v56, %v1453_v47  ;;  %1149 = vrot.lane.b32.xlu2 %v5011_v27, %s4194_s14 }
  0xeb   : > { %v1600_v1 = vsel %vm1263_vm7, %v1554_v24, %v1485_v49  ;;  %v5042_v49 = vld [vmem:[%s4299_s11 + $0x9c] sm:$0xff] }
  0xec   : > { %v1193_v42 = vpop.permute.xlu2 %1192 }
  0xee   : > { %1498 = vrot.lane.b32.xlu1 %v5002_v44, %s4194_s14 }
  0xef   : > { %1466 = vrot.lane.b32.xlu0 %v4333_v31, %s4193_s13  ;;  %v1520_v9 = vpop.permute.xlu1 %1519 }
  0xf0   : > { %v1632_v20 = vsel %vm1296_vm8, %v1600_v1, %v1520_v9  ;;  %v5087_v1 = vld [vmem:[%s5951_s2 + $0x2] sm:$0x3] }
  0xf1   : > { %v1509_v51 = vpop.permute.xlu0 %1508  ;;  %v5022_v2 = vsel %vm1334_vm9, %v1632_v20, 0  ;;  %v5098_v20 = vld [vmem:[%s4299_s11 + $0x78] sm:$0xff] }
  0xf2   : > { %v1624_v35 = vsel %vm1263_vm7, %v1590_v17, %v1509_v51  ;;  %1702 = vmatpush.bf16.xpose.msra.mxu2 %v5022_v2  ;;  %1208 = vrot.lane.b32.xlu2 %v4677_v36, %s4192_s12 }
  0xf3   : > { %v1656_v31 = vsel %vm1296_vm8, %v1624_v35, %v1544_v29  ;;  %v5075_v29 = vld [vmem:[%s4299_s11 + $0x84] sm:$0xff] }
  0xf4   : > { %v5030_v57 = vsel %vm1334_vm9, %v1656_v31, 0  ;;  %v1483_v33 = vpop.permute.xlu2 %1482 }
  0xf5   : > { %1711 = vmatpush.bf16.xpose.msra.mxu3 %v5030_v57 }
  0xf6   : > { %1136 = vrot.lane.b32.xlu1 %v4786_v18, %s4193_s13 }
  0xf7   : > { %1112 = vrot.lane.b32.xlu0 %v1096_v38, %s4193_s13  ;;  %v1158_v16 = vpop.permute.xlu1 %1157 }
  0xf9   : > { %v1123_v58 = vpop.permute.xlu0 %1122 }
  0xfa   : > { %v1232_v32 = vsel %vm1214_vm6, %v4768_v23, %v1123_v58  ;;  %1533 = vrot.lane.b32.xlu2 %v4941_v53, %s4192_s12 }
  0xfb   : > { %v1275_v46 = vsel %vm1263_vm7, %v1232_v32, %v1158_v16 }
  0xfc   : > { %v1308_v4 = vsel %vm1296_vm8, %v1275_v46, %v1193_v42  ;;  %v1542_v21 = vpop.permute.xlu2 %1541  ;;  %v5115_v42 = vld [vmem:[%s4299_s11 + $0x6c] sm:$0xff] }
  0xfd   : > { %v5046_v54 = vsel %vm1334_vm9, %v1308_v4, 0 }
  0xfe   : > { %1372 = vmatpush.bf16.xpose.msra.mxu0 %v5046_v54  ;;  %1182 = vrot.lane.b32.xlu1 %v4782_v56, %s4192_s12 }
  0xff   : > { %1171 = vrot.lane.b32.xlu0 %v5042_v49, %s4194_s14  ;;  %v1475_v36 = vpop.permute.xlu1 %1474 }
 0x100   : > { %v1587_v8 = vsel %vm1214_vm6, %v4786_v18, %v1475_v36 }
 0x101   : > { %v1451_v23 = vpop.permute.xlu0 %1450 }
 0x102   : > { %v1551_v6 = vsel %vm1214_vm6, %v1096_v38, %v1451_v23  ;;  %1147 = vrot.lane.b32.xlu2 %v5060_v0, %s4194_s14  ;;  %v393_v23 = vld [vmem:[%s5952_s3] sm:$0xf] }
 0x103   : > { %v1598_v56 = vsel %vm1263_vm7, %v1551_v6, %v1483_v33 }
 0x104   : > { %v1191_v22 = vpop.permute.xlu2 %1190 }
 0x106   : > { %1169 = vrot.lane.b32.xlu1 %v5056_v28, %s4194_s14 }
 0x107   : > { %1134 = vrot.lane.b32.xlu0 %v4851_v15, %s4193_s13  ;;  %v1518_v11 = vpop.permute.xlu1 %1517 }
 0x108   : > { %v1630_v53 = vsel %vm1296_vm8, %v1598_v56, %v1518_v11 }
 0x109   : > { %v1507_v40 = vpop.permute.xlu0 %1506  ;;  %v1664_v5 = vsel %vm1334_vm9, %v1630_v53, 0 }
 0x10a   : > { %v1622_v47 = vsel %vm1263_vm7, %v1587_v8, %v1507_v40  ;;  %1703 = vmatpush.bf16.xpose.msra.mxu2 %v1664_v5  ;;  %1206 = vrot.lane.b32.xlu2 %v4748_v10, %s4192_s12 }
 0x10b   : > { %v1654_v24 = vsel %vm1296_vm8, %v1622_v47, %v1542_v21 }
 0x10c   : > { %v5079_v37 = vsel %vm1334_vm9, %v1654_v24, 0  ;;  %v1540_v51 = vpop.permute.xlu2 %1539 }
 0x10d   : > { %1712 = vmatpush.bf16.xpose.msra.mxu3 %v5079_v37 }
 0x10e   : > { %1167 = vrot.lane.b32.xlu1 %v5075_v29, %s4194_s14 }
 0x10f   : > { %1132 = vrot.lane.b32.xlu0 %v4938_v7, %s4193_s13  ;;  %v1156_v9 = vpop.permute.xlu1 %1155 }
 0x111   : > { %v1121_v60 = vpop.permute.xlu0 %1120  ;;  %3935 = vmatmul.msk.bf16.vlgmr.msra.gmra.mxu2 %vm1334_vm9, %v5087_v1 }
 0x112   : > { %v1229_v39 = vsel %vm1214_vm6, %v4868_v63, %v1121_v60  ;;  %1204 = vrot.lane.b32.xlu2 %v4786_v18, %s4192_s12 }
 0x113   : > { %v1273_v17 = vsel %vm1263_vm7, %v1229_v39, %v1156_v9 }
 0x114   : > { %v1306_v35 = vsel %vm1296_vm8, %v1273_v17, %v1191_v22  ;;  %v1154_v58 = vpop.permute.xlu2 %1153 }
 0x115   : > { %v5103_v31 = vsel %vm1334_vm9, %v1306_v35, 0 }
 0x116   : > { %1373 = vmatpush.bf16.xpose.msra.mxu0 %v5103_v31  ;;  %1165 = vrot.lane.b32.xlu1 %v5098_v20, %s4194_s14 }
 0x117   : > { %1130 = vrot.lane.b32.xlu0 %v5002_v44, %s4193_s13  ;;  %v1505_v10 = vpop.permute.xlu1 %1504 }
 0x119   : > { %v1473_v63 = vpop.permute.xlu0 %1472 }
 0x11a   : > { %v1584_v38 = vsel %vm1214_vm6, %v4851_v15, %v1473_v63  ;;  %1202 = vrot.lane.b32.xlu2 %v4851_v15, %s4192_s12 }
 0x11b   : > { %v1620_v16 = vsel %vm1263_vm7, %v1584_v38, %v1505_v10 }
 0x11c   : > { %v1652_v32 = vsel %vm1296_vm8, %v1620_v16, %v1540_v51  ;;  %v1213_v4 = vpop.permute.xlu2 %1212 }
 0x11d   : > { %v5120_v46 = vsel %vm1334_vm9, %v1652_v32, 0 }
 0x11e   : > { %1713 = vmatpush.bf16.xpose.msra.mxu3 %v5120_v46  ;;  %1163 = vrot.lane.b32.xlu1 %v5115_v42, %s4194_s14 }
 0x11f   : > { %1128 = vrot.lane.b32.xlu0 %v4399_v52, %s4193_s13  ;;  %v1143_v18 = vpop.permute.xlu1 %1142 }
 0x120   : > { %v1262_v56 = vsel %vm1214_vm6, %v4913_v43, %v1143_v18 }
 0x121   : > { %v1119_v33 = vpop.permute.xlu0 %1118 }
 0x122   : > { %v1226_v36 = vsel %vm1214_vm6, %v4947_v59, %v1119_v33  ;;  %1200 = vrot.lane.b32.xlu2 %v4938_v7, %s4192_s12 }
 0x123   : > { %v1271_v21 = vsel %vm1263_vm7, %v1226_v36, %v1154_v58 }
 0x124   : > { %v1538_v8 = vpop.permute.xlu2 %1537 }
 0x127   : > { %1331 = vperm.xlu0 %4105, %v393_v23   ;;  %v1189_v6 = vpop.permute.xlu1 %1188 }
 0x128   : > { %v1304_v55 = vsel %vm1296_vm8, %v1271_v21, %v1189_v6 }
 0x129   : > { %v1178_v11 = vpop.permute.xlu0 %1177  ;;  %v5139_v15 = vsel %vm1334_vm9, %v1304_v55, 0 }
 0x12a   : > { %v1295_v59 = vsel %vm1263_vm7, %v1262_v56, %v1178_v11  ;;  %1374 = vmatpush.bf16.xpose.msra.mxu0 %v5139_v15  ;;  %1198 = vrot.lane.b32.xlu2 %v5002_v44, %s4192_s12 }
 0x12b   : > { %v1328_v53 = vsel %vm1296_vm8, %v1295_v59, %v1213_v4 }
 0x12c   : > { %v5147_v40 = vsel %vm1334_vm9, %v1328_v53, 0  ;;  %v1152_v22 = vpop.permute.xlu2 %1151 }
 0x12d   : > { %1383 = vmatpush.bf16.xpose.msra.mxu1 %v5147_v40 }
 0x12f   : > { %v1503_v43 = vpop.permute.xlu1 %1502 }
 0x131   : > { %v1471_v5 = vpop.permute.xlu0 %1470 }
 0x132   : > { %v1581_v47 = vsel %vm1214_vm6, %v4938_v7, %v1471_v5 }
 0x133   : > { %v1618_v24 = vsel %vm1263_vm7, %v1581_v47, %v1503_v43 }
 0x134   : > { %v1650_v9 = vsel %vm1296_vm8, %v1618_v24, %v1538_v8  ;;  %v1211_v51 = vpop.permute.xlu2 %1210 }
 0x135   : > { %v5157_v60 = vsel %vm1334_vm9, %v1650_v9, 0 }
 0x136   : > { %1714 = vmatpush.bf16.xpose.msra.mxu3 %v5157_v60 }
 0x138   : > { %v1141_v39 = vpop.permute.xlu1 %1140 }
 0x139   : > { %v1117_v17 = vpop.permute.xlu0 %1116  ;;  %v1259_v7 = vsel %vm1214_vm6, %v4984_v34, %v1141_v39 }
 0x13a   : > { %v1223_v35 = vsel %vm1214_vm6, %v5011_v27, %v1117_v17 }
 0x13b   : > { %v1269_v10 = vsel %vm1263_vm7, %v1223_v35, %v1152_v22 }
 0x13c   : > { %v1536_v33 = vpop.permute.xlu2 %1535 }
 0x140   : > { %v1187_v63 = vpop.permute.xlu1 %1186 }
 0x141   : > { %v1176_v38 = vpop.permute.xlu0 %1175  ;;  %v1302_v16 = vsel %vm1296_vm8, %v1269_v10, %v1187_v63 }
 0x142   : > { %v1293_v58 = vsel %vm1263_vm7, %v1259_v7, %v1176_v38  ;;  %v5168_v32 = vsel %vm1334_vm9, %v1302_v16, 0  ;;  %v4016_v16 = vld [vmem:[%s4299_s11] sm:$0xff] }
 0x143   : > { %1375 = vmatpush.bf16.xpose.msra.mxu0 %v5168_v32  ;;  %v1326_v18 = vsel %vm1296_vm8, %v1293_v58, %v1211_v51 }
 0x144   : > { %v5173_v27 = vsel %vm1334_vm9, %v1326_v18, 0  ;;  %v1150_v21 = vpop.permute.xlu2 %1149 }
 0x145   : > { %1384 = vmatpush.bf16.xpose.msra.mxu1 %v5173_v27 }
 0x148   : > { %v1501_v4 = vpop.permute.xlu1 %1500 }
 0x149   : > { %v1469_v34 = vpop.permute.xlu0 %1468 }
 0x14a   : > { %v1578_v36 = vsel %vm1214_vm6, %v5002_v44, %v1469_v34 }
 0x14b   : > { %v1616_v23 = vsel %vm1263_vm7, %v1578_v36, %v1501_v4 }
 0x14c   : > { %v1648_v6 = vsel %vm1296_vm8, %v1616_v23, %v1536_v33  ;;  %v1209_v59 = vpop.permute.xlu2 %1208 }
 0x14d   : > { %v5181_v55 = vsel %vm1334_vm9, %v1648_v6, 0 }
 0x14e   : > { %1715 = vmatpush.bf16.xpose.msra.mxu3 %v5181_v55 }
 0x150   : > { %v1139_v56 = vpop.permute.xlu1 %1138 }
 0x151   : > { %v1115_v11 = vpop.permute.xlu0 %1114  ;;  %v1256_v44 = vsel %vm1214_vm6, %v5042_v49, %v1139_v56 }
 0x152   : > { %v1220_v53 = vsel %vm1214_vm6, %v5060_v0, %v1115_v11 }
 0x153   : > { %v1267_v8 = vsel %vm1263_vm7, %v1220_v53, %v1150_v21 }
 0x154   : > { %v1534_v0 = vpop.permute.xlu2 %1533 }
 0x158   : > { %v1185_v43 = vpop.permute.xlu1 %1184 }
 0x159   : > { %v1174_v5 = vpop.permute.xlu0 %1173  ;;  %v1300_v47 = vsel %vm1296_vm8, %v1267_v8, %v1185_v43 }
 0x15a   : > { %v1291_v24 = vsel %vm1263_vm7, %v1256_v44, %v1174_v5  ;;  %v5192_v22 = vsel %vm1334_vm9, %v1300_v47, 0 }
 0x15b   : > { %1376 = vmatpush.bf16.xpose.msra.mxu0 %v5192_v22  ;;  %v1324_v9 = vsel %vm1296_vm8, %v1291_v24, %v1209_v59 }
 0x15c   : > { %v5197_v39 = vsel %vm1334_vm9, %v1324_v9, 0  ;;  %v1148_v10 = vpop.permute.xlu2 %1147 }
 0x15d   : > { %1385 = vmatpush.bf16.xpose.msra.mxu1 %v5197_v39 }
 0x160   : > { %v1499_v49 = vpop.permute.xlu1 %1498 }
 0x161   : > { %v1467_v17 = vpop.permute.xlu0 %1466 }
 0x162   : > { %v1575_v51 = vsel %vm1214_vm6, %v4399_v52, %v1467_v17 }
 0x163   : > { %v1614_v35 = vsel %vm1263_vm7, %v1575_v51, %v1499_v49 }
 0x164   : > { %v1646_v63 = vsel %vm1296_vm8, %v1614_v35, %v1534_v0  ;;  %v1207_v18 = vpop.permute.xlu2 %1206 }
 0x165   : > { %v5205_v7 = vsel %vm1334_vm9, %v1646_v63, 0 }
 0x166   : > { %1716 = vmatpush.bf16.xpose.msra.mxu3 %v5205_v7 }
 0x168   : > { %v1137_v38 = vpop.permute.xlu1 %1136 }
 0x169   : > { %v1113_v58 = vpop.permute.xlu0 %1112  ;;  %v1253_v34 = vsel %vm1214_vm6, %v5056_v28, %v1137_v38  ;;  %v389_v28 = vld [vmem:[%s5951_s2] sm:$0x3] }
 0x16a   : > { %v1217_v33 = vsel %vm1214_vm6, %v4016_v16, %v1113_v58 }
 0x16b   : > { %v1265_v52 = vsel %vm1263_vm7, %v1217_v33, %v1148_v10  ;;  %v5259_v33 = vld [vmem:[%s5953_s4 + $0x10] sm:$0xff] }
 0x16c   : > { %v1205_v11 = vpop.permute.xlu2 %1204 }
 0x16d   : > { %3936 = vmatmul.msk.bf16.vlgmr.msra.gmra.mxu3 %vm1334_vm9, %v5087_v1 }
 0x170   : > { %v1183_v4 = vpop.permute.xlu1 %1182 }
 0x171   : > { %v1172_v36 = vpop.permute.xlu0 %1171  ;;  %v1298_v23 = vsel %vm1296_vm8, %v1265_v52, %v1183_v4  ;;  %v4106_v4 = vld [vmem:[%s4299_s11 + $0x60] sm:$0xff]  ;;  %s4196_s11 = smov 112  }
 0x172   : > { %v1289_v21 = vsel %vm1263_vm7, %v1253_v34, %v1172_v36  ;;  %v1338_v6 = vsel %vm1334_vm9, %v1298_v23, 0 }
 0x173   : > { %1377 = vmatpush.bf16.xpose.msra.mxu0 %v1338_v6  ;;  %v1322_v56 = vsel %vm1296_vm8, %v1289_v21, %v1207_v18  ;;  %v5254_v18 = vld [vmem:[%s5953_s4 + $0x18] sm:$0xff] }
 0x174   : > { %v5220_v59 = vsel %vm1334_vm9, %v1322_v56, 0  ;;  %v1203_v47 = vpop.permute.xlu2 %1202  ;;  %1804 = vmatpush.msrb.mxu2 %v5254_v18 }
 0x175   : > { %1386 = vmatpush.bf16.xpose.msra.mxu1 %v5220_v59 }
 0x176   : > { %1805 = vmatpush.msrb.mxu2 %v5259_v33 }
 0x178   : > { %v1170_v1 = vpop.permute.xlu1 %1169  ;;  %1922 = vmatpush.msra.mxu2 %v5254_v18 }
 0x179   : > { %v1135_v53 = vpop.permute.xlu0 %1134 }
 0x17a   : > { %v1250_v8 = vsel %vm1214_vm6, %v5075_v29, %v1135_v53  ;;  %3933 = vmatmul.msk.bf16.vlgmr.msra.gmra.mxu0 %vm1334_vm9, %v389_v28  ;;  %1923 = vmatpush.msra.mxu2 %v5259_v33 }
 0x17b   : > { %v1287_v43 = vsel %vm1263_vm7, %v1250_v8, %v1170_v1  ;;  %1745 = vmatpush.msrb.mxu0 %v5254_v18 }
 0x17c   : > { %v1320_v44 = vsel %vm1296_vm8, %v1287_v43, %v1205_v11  ;;  %v1201_v51 = vpop.permute.xlu2 %1200  ;;  %v5301_v43 = vld [vmem:[%s5953_s4] sm:$0xff] }
 0x17d   : > { %v5232_v5 = vsel %vm1334_vm9, %v1320_v44, 0  ;;  %1746 = vmatpush.msrb.mxu0 %v5259_v33 }
 0x17e   : > { %1387 = vmatpush.bf16.xpose.msra.mxu1 %v5232_v5 }
 0x17f   : > { %1863 = vmatpush.msra.mxu0 %v5254_v18 }
 0x180   : > { %v1168_v24 = vpop.permute.xlu1 %1167 }
 0x181   : > { %v1133_v9 = vpop.permute.xlu0 %1132  ;;  %1864 = vmatpush.msra.mxu0 %v5259_v33 }
 0x182   : > { %v1247_v0 = vsel %vm1214_vm6, %v5098_v20, %v1133_v9 }
 0x183   : > { %v1285_v49 = vsel %vm1263_vm7, %v1247_v0, %v1168_v24 }
 0x184   : > { %v1318_v29 = vsel %vm1296_vm8, %v1285_v49, %v1203_v47  ;;  %v1199_v52 = vpop.permute.xlu2 %1198 }
 0x185   : > { %v5240_v17 = vsel %vm1334_vm9, %v1318_v29, 0 }
 0x186   : > { %1388 = vmatpush.bf16.xpose.msra.mxu1 %v5240_v17 }
 0x188   : > { %v1166_v35 = vpop.permute.xlu1 %1165 }
 0x189   : > { %v1131_v10 = vpop.permute.xlu0 %1130 }
 0x18a   : > { %v1244_v63 = vsel %vm1214_vm6, %v5115_v42, %v1131_v10 }
 0x18b   : > { %v1283_v38 = vsel %vm1263_vm7, %v1244_v63, %v1166_v35  ;;  %v386_v63 = vld [vmem:[%s4440_s24 + $0xc] sm:$0xf] }
 0x18c   : > { %v1316_v20 = vsel %vm1296_vm8, %v1283_v38, %v1201_v51  ;;  %v387_v38 = vld [vmem:[%s4440_s24 + $0x10] sm:$0xf] }
 0x18d   : > { %v5248_v16 = vsel %vm1334_vm9, %v1316_v20, 0  ;;  %v810_v20 = vshrl.u32 %v386_v63, 16 }
 0x18e   : > { %1389 = vmatpush.bf16.xpose.msra.mxu1 %v5248_v16 }
 0x190   : > { %v1164_v58 = vpop.permute.xlu1 %1163 }
 0x191   : > { %v1129_v42 = vpop.permute.xlu0 %1128 }
 0x192   : > { %v1241_v34 = vsel %vm1214_vm6, %v4106_v4, %v1129_v42  ;;  %v819_v42 = vshll.u32 %v387_v38, 16 }
 0x193   : > { %v1281_v36 = vsel %vm1263_vm7, %v1241_v34, %v1164_v58  ;;  %v813_v58 = vshll.u32 %v386_v63, 16  ;;  %v812_v34 = vrot.slane %v810_v20, 4 }
 0x194   : > { %v1314_v23 = vsel %vm1296_vm8, %v1281_v36, %v1199_v52  ;;  %v1705_v21 = vpop.f32.mrf.mxu2  ;;  %v823_v52 = vshrl.u32 %v387_v38, 16 }
 0x195   : > { %v5272_v6 = vsel %vm1334_vm9, %v1314_v23, 0  ;;  %v815_v36 = vrot.slane %v813_v58, 5  ;;  %v821_v23 = vrot.slane %v819_v42, 5 }
 0x196   : > { %1390 = vmatpush.bf16.xpose.msra.mxu1 %v5272_v6 }
 0x199   : > { %v5277_v56 = vpop.permute.xlu0 %1331 }
 0x19a   : > { %v1706_v11 = vadd.f32 %v1705_v21, %v5277_v56  ;;  %v825_v21 = vrot.slane %v823_v52, 4 }
 0x19c   : > { %vm1722_vm10 = vcmp.gt.f32.partialorder %v1706_v11, 0.0  ;;  %v1724_v1 = vmul.f32 0.2, %v1706_v11  ;;  %v1707_v53 = vpop.f32.mrf.mxu2 }
 0x19d   : > { %3934 = vmatmul.msk.bf16.vlgmr.msra.gmra.mxu1 %vm1334_vm9, %v389_v28  ;;  %v5294_v28 = vld [vmem:[%s5953_s4 + $0x8] sm:$0xff]  ;;  %v1011_v53 = vrot.slane %v387_v38, 5 }
 0x19e   : > { %v1726_v8 = vsel %vm1722_vm10, %v1706_v11, %v1724_v1  ;;  %1768 = vmatpush.msrb.mxu1 %v5294_v28  ;;  %1828 = vmatpush.msrb.mxu3 %v5294_v28  ;;  %v388_v11 = vld [vmem:[%s4440_s24 + $0x14] sm:$0x1] }
 0x19f   : > { %1786 = vrot.lane.b32.xlu1 %v1726_v8, %s4196_s11  ;;  %1963 = vrot.lane.b32.xlu0 %v1726_v8, %s4197_s25 }
 0x1a0   : > { %1904 = vrot.lane.b32.xlu2 %v1726_v8, %s4198_s27  ;;  %3937 = vmatmul.msk.f32.vlgmr.msrb.gmra.mxu0 %vm1334_vm9, %v1726_v8 }
 0x1a1   : > { %1981 = vmatpush.msrb.mxu0 %v5254_v18  ;;  %1769 = vmatpush.msrb.mxu1 %v5301_v43 }
 0x1a2   : > { %1829 = vmatpush.msrb.mxu3 %v5301_v43 }
 0x1a3   : > { %1982 = vmatpush.msrb.mxu0 %v5259_v33  ;;  %1887 = vmatpush.msra.mxu1 %v5294_v28 }
 0x1a4   : > { %1946 = vmatpush.msra.mxu3 %v5294_v28 }
 0x1a5   : > { %1888 = vmatpush.msra.mxu1 %v5301_v43 }
 0x1a6   : > { %1947 = vmatpush.msra.mxu3 %v5301_v43 }
 0x1a7   : > { %1845 = vrot.lane.b32.xlu1 %v1726_v8, %s4199_s29 }
 0x1a8   : > { %2022 = vrot.lane.b32.xlu2 %v1726_v8, %s4200_s7 }
 0x1af   : > { %2140 = vrot.lane.b32.xlu1 %v1726_v8, %s4201_s8 }
 0x1b0   : > { %2081 = vrot.lane.b32.xlu2 %v1726_v8, %s4202_s9  ;;  %v816_v8 = vor.u32 %v815_v36, %v812_v34 }
 0x1f0   : > { %v1718_v44 = vpop.f32.mrf.mxu3 }
 0x1f1   : > { %v1719_v47 = vadd.f32 %v1718_v44, %v5277_v56  ;;  %v826_v44 = vor.u32 %v825_v21, %v821_v23 }
 0x1f3   : > { %vm1723_vm11 = vcmp.gt.f32.partialorder %v1719_v47, 0.0  ;;  %v1725_v24 = vmul.f32 0.2, %v1719_v47 }
 0x1f5   : > { %v5310_v9 = vsel %vm1723_vm11, %v1719_v47, %v1725_v24  ;;  %v829_v47 = vshll.u32 %v388_v11, 16  ;;  %v3864_v24 = vrot.slane %v386_v63, 9 }
 0x1f6   : > { %2256 = vrot.lane.b32.xlu1 %v5310_v9, %s4196_s11 }
 0x1f7   : > { %v1379_v0 = vpop.f32.mrf.mxu0  ;;  %v831_v20 = vrot.slane %v829_v47, 5  ;;  %v1012_v42 = vsel %vm4304_vm2, %v3864_v24, %v1011_v53 }
 0x1f8   : > { %v1380_v49 = vadd.f32 %v1379_v0, %v5277_v56  ;;  %v1720_v29 = vpop.f32.mrf.mxu3  ;;  %v1013_v0 = vrot.slane %v1011_v53, 4  ;;  %v2729_v3 = vunpack.c.l.b16 %v1012_v42 }
 0x1fa   : > { %vm1396_vm12 = vcmp.gt.f32.partialorder %v1380_v49, 0.0  ;;  %v1398_v51 = vmul.f32 0.2, %v1380_v49  ;;  %v1905_v1 = vpop.permute.xlu2 %1904 }
 0x1fc   : > { %v1400_v35 = vsel %vm1396_vm12, %v1380_v49, %v1398_v51  ;;  %v1014_v49 = vrot.slane %v388_v11, 5  ;;  %v817_v51 = vrot.slane %v816_v8, 4 }
 0x1fd   : > { %3938 = vmatmul.msk.f32.vlgmr.msrb.gmra.mxu1 %vm1334_vm9, %v1400_v35  ;;  %1810 = vrot.lane.b32.xlu0 %v1400_v35, %s4196_s11 }
 0x1fe   : > { %1928 = vrot.lane.b32.xlu2 %v1400_v35, %s4198_s27  ;;  %1869 = vrot.lane.b32.xlu1 %v1400_v35, %s4199_s29 }
 0x1ff   : > { %v1381_v10 = vpop.f32.mrf.mxu0  ;;  %2005 = vmatpush.msrb.mxu1 %v5294_v28 }
 0x200   : > { %v827_v10 = vrot.slane %v826_v44, 4  ;;  %v4033_v44 = vld [vmem:[%s4440_s24 + $0xc] sm:$0xff] }
 0x201   : > { %2006 = vmatpush.msrb.mxu1 %v5301_v43 }
 0x202   : > { %v2023_v52 = vpop.permute.xlu2 %2022  ;;  %v832_v34 = vsel %vm4356_vm5, %v827_v10, %v831_v20 }
 0x205   : > { %2374 = vrot.lane.b32.xlu0 %v5310_v9, %s4198_s27 }
 0x206   : > { %2315 = vrot.lane.b32.xlu2 %v5310_v9, %s4199_s29  ;;  %2492 = vrot.lane.b32.xlu1 %v5310_v9, %s4200_s7 }
 0x20a   : > { %v2082_v8 = vpop.permute.xlu2 %2081 }
 0x20d   : > { %2046 = vrot.lane.b32.xlu0 %v1400_v35, %s4200_s7 }
 0x20e   : > { %1987 = vrot.lane.b32.xlu2 %v1400_v35, %s4197_s25  ;;  %2164 = vrot.lane.b32.xlu1 %v1400_v35, %s4201_s8 }
 0x211   : > { %v1787_v4 = vpop.permute.xlu1 %1786  ;;  %v1964_v11 = vpop.permute.xlu0 %1963 }
 0x212   : > { %3939 = vmatmul.msk.f32.vlgmr.msrb.gmra.mxu2 %vm1334_vm9, %v1787_v4  ;;  %v822_v4 = vsel %vm4356_vm5, %v817_v51, %v821_v23  ;;  %v2677_v23 = vunpack.c.l.b16 %v832_v34 }
 0x213   : > { %2040 = vmatpush.msrb.mxu2 %v5254_v18  ;;  %v2676_v13 = vunpack.c.l.b16 %v822_v4 }
 0x215   : > { %2433 = vrot.lane.b32.xlu0 %v5310_v9, %s4197_s25  ;;  %2041 = vmatpush.msrb.mxu2 %v5259_v33 }
 0x216   : > { %2105 = vrot.lane.b32.xlu2 %v1400_v35, %s4202_s9  ;;  %v1015_v35 = vsel %vm4304_vm2, %v1013_v0, %v1014_v49 }
 0x217   : > { %v2730_v36 = vunpack.c.l.b16 %v1015_v35 }
 0x219   : > { %v1846_v29 = vpop.permute.xlu1 %1845  ;;  %v2731_v53 = vpack.c.b16 %v2730_v36, %v2729_v3 }
 0x21a   : > { %v1392_v38 = vpop.f32.mrf.mxu1  ;;  %3941 = vmatmul.msk.f32.vlgmr.msra.gmra.mxu0 %vm1334_vm9, %v1846_v29  ;;  %3943 = vmatmul.msk.f32.vlgmr.msra.gmra.mxu2 %vm1334_vm9, %v1905_v1 }
 0x21b   : > { %v1393_v58 = vadd.f32 %v1392_v38, %v5277_v56  ;;  %2099 = vmatpush.msra.mxu0 %v5254_v18  ;;  %2158 = vmatpush.msra.mxu2 %v5254_v18 }
 0x21d   : > { %vm1397_vm13 = vcmp.gt.f32.partialorder %v1393_v58, 0.0  ;;  %v1399_v63 = vmul.f32 0.2, %v1393_v58  ;;  %2100 = vmatpush.msra.mxu0 %v5259_v33  ;;  %2159 = vmatpush.msra.mxu2 %v5259_v33 }
 0x21e   : > { %2725 = vrot.lane.b32.xlu2 %v4577_v45, %s4193_s13  ;;  %v2678_v45 = vpack.c.b16 %v2677_v23, %v2676_v13 }
 0x21f   : > { %v5356_v21 = vsel %vm1397_vm13, %v1393_v58, %v1399_v63  ;;  %v1748_v58 = vpop.f32.mrf.mxu0 }
 0x220   : > { %2280 = vrot.lane.b32.xlu0 %v5356_v21, %s4196_s11  ;;  %2398 = vrot.lane.b32.xlu1 %v5356_v21, %s4198_s27 }
 0x221   : > { %v2141_v47 = vpop.permute.xlu1 %2140 }
 0x222   : > { %v1394_v1 = vpop.f32.mrf.mxu1  ;;  %3945 = vmatmul.msk.f32.vlgmr.msrb.gmra.mxu0 %vm1334_vm9, %v1964_v11  ;;  %3947 = vmatmul.msk.f32.vlgmr.msrb.gmra.mxu2 %vm1334_vm9, %v2023_v52 }
 0x223   : > { %2216 = vmatpush.msrb.mxu0 %v5254_v18  ;;  %2274 = vmatpush.msrb.mxu2 %v5254_v18 }
 0x225   : > { %2217 = vmatpush.msrb.mxu0 %v5259_v33  ;;  %2275 = vmatpush.msrb.mxu2 %v5259_v33 }
 0x226   : > { %2732 = vrot.lane.b32.xlu2 %v2731_v53, %s4192_s12 }
 0x228   : > { %2727 = vrot.lane.b32.xlu0 %v2678_v45, %s4194_s14  ;;  %2339 = vrot.lane.b32.xlu1 %v5356_v21, %s4199_s29 }
 0x22a   : > { %3949 = vmatmul.msk.f32.vlgmr.msra.gmra.mxu0 %vm1334_vm9, %v2082_v8  ;;  %3951 = vmatmul.msk.f32.vlgmr.msra.gmra.mxu2 %vm1334_vm9, %v2141_v47 }
 0x22b   : > { %2333 = vmatpush.msra.mxu0 %v5254_v18  ;;  %2392 = vmatpush.msra.mxu2 %v5254_v18 }
 0x22d   : > { %2334 = vmatpush.msra.mxu0 %v5259_v33  ;;  %2393 = vmatpush.msra.mxu2 %v5259_v33 }
 0x22e   : > { %2674 = vrot.lane.b32.xlu2 %v4033_v44, %s4194_s14 }
 0x230   : > { %2516 = vrot.lane.b32.xlu0 %v5356_v21, %s4200_s7  ;;  %2669 = vrot.lane.b32.xlu1 %v4515_v25, %s4193_s13 }
 0x232   : > { %3953 = vmatmul.msk.f32.vlgmr.msrb.gmra.mxu0 %vm1334_vm9, %v5310_v9 }
 0x233   : > { %2451 = vmatpush.msrb.mxu0 %v5254_v18 }
 0x235   : > { %2452 = vmatpush.msrb.mxu0 %v5259_v33 }
 0x236   : > { %2610 = vrot.lane.b32.xlu2 %v5310_v9, %s4201_s8 }
 0x238   : > { %2679 = vrot.lane.b32.xlu0 %v2678_v45, %s4192_s12  ;;  %2457 = vrot.lane.b32.xlu1 %v5356_v21, %s4197_s25  ;;  %s295_s12 = sand.u32 1, %s4174_s19   ;;  %v4107_v45 = vld [vmem:[%s4440_s24] sm:$0xff]  ;;  %s4034_s24 = sshll.u32 %s4182_s21, 7 }
 0x239   : > { %s3844_s13 = sshll.u32 %s295_s12, 7  ;;  %s3732_s21 = scalar_lea.hbm %s5954_s5, %s4034_s24 }
 0x23a   : > { %s5423_s10 = scalar_lea.vmem [#allocation2], %s3844_s13 }
 0x23b   : > { %s3733_s17 = sshll.u32 %s5423_s10, 4  ;;  %s3734_s17 = int_to_ptr.vmem [resolvable:$true] %s3733_s17 }
 0x23e   : > { %2575 = vrot.lane.b32.xlu2 %v5356_v21, %s4202_s9 }
 0x240   : > { %2551 = vrot.lane.b32.xlu0 %v5310_v9, %s4202_s9  ;;  %2634 = vrot.lane.b32.xlu1 %v5356_v21, %s4201_s8 }
 0x258   : > { %v1929_v24 = vpop.permute.xlu2 %1928 }
 0x260   : > { %v2316_v0 = vpop.permute.xlu2 %2315 }
 0x261   : > { %3957 = vmatmul.msk.f32.vlgmr.msra.gmra.mxu0 %vm1334_vm9, %v2316_v0 }
 0x262   : > { %2569 = vmatpush.msra.mxu0 %v5254_v18 }
 0x264   : > { %2570 = vmatpush.msra.mxu0 %v5259_v33 }
 0x268   : > { %v1988_v49 = vpop.permute.xlu2 %1987  ;;  %v2257_v29 = vpop.permute.xlu1 %2256 }
 0x269   : > { %3955 = vmatmul.msk.f32.vlgmr.msrb.gmra.mxu2 %vm1334_vm9, %v2257_v29 }
 0x26a   : > { %2510 = vmatpush.msrb.mxu2 %v5254_v18 }
 0x26c   : > { %2511 = vmatpush.msrb.mxu2 %v5259_v33 }
 0x26f   : > { %v1811_v9 = vpop.permute.xlu0 %1810 }
 0x270   : > { %v2106_v51 = vpop.permute.xlu2 %2105  ;;  %v1870_v10 = vpop.permute.xlu1 %1869  ;;  %3940 = vmatmul.msk.f32.vlgmr.msrb.gmra.mxu3 %vm1334_vm9, %v1811_v9 }
 0x271   : > { %3942 = vmatmul.msk.f32.vlgmr.msra.gmra.mxu1 %vm1334_vm9, %v1870_v10  ;;  %2064 = vmatpush.msrb.mxu3 %v5294_v28 }
 0x272   : > { %2123 = vmatpush.msra.mxu1 %v5294_v28 }
 0x273   : > { %2065 = vmatpush.msrb.mxu3 %v5301_v43 }
 0x274   : > { %2124 = vmatpush.msra.mxu1 %v5301_v43 }
 0x277   : > { %v2375_v20 = vpop.permute.xlu0 %2374 }
 0x278   : > { %v2726_v38 = vpop.permute.xlu2 %2725  ;;  %3944 = vmatmul.msk.f32.vlgmr.msra.gmra.mxu3 %vm1334_vm9, %v1929_v24  ;;  %3959 = vmatmul.msk.f32.vlgmr.msra.gmra.mxu2 %vm1334_vm9, %v2375_v20  ;;  %v2493_v63 = vpop.permute.xlu1 %2492 }
 0x279   : > { %3946 = vmatmul.msk.f32.vlgmr.msrb.gmra.mxu1 %vm1334_vm9, %v1988_v49  ;;  %2628 = vmatpush.msra.mxu2 %v5254_v18 }
 0x27a   : > { %v1771_v42 = vpop.f32.mrf.mxu1  ;;  %2182 = vmatpush.msra.mxu3 %v5294_v28  ;;  %2239 = vmatpush.msrb.mxu1 %v5294_v28 }
 0x27b   : > { %v1772_v35 = vadd.f32 %v1771_v42, %v1748_v58  ;;  %2629 = vmatpush.msra.mxu2 %v5259_v33 }
 0x27c   : > { %2183 = vmatpush.msra.mxu3 %v5301_v43  ;;  %2240 = vmatpush.msrb.mxu1 %v5301_v43 }
 0x27d   : > { %v1775_v52 = vrot.slane %v1772_v35, 1  ;;  %v1776_v4 = vrot.slane %v1772_v35, 2  ;;  %v1777_v34 = vrot.slane %v1772_v35, 3  ;;  %1782 = vst.msk [vmem:[%s5423_s10] sm:$0x1] %vm1781_vm14, %v1772_v35 }
 0x27f   : > { %1783 = vst.msk [vmem:[%s5423_s10 + $0x20] sm:$0x1] %vm1781_vm14, %v1775_v52  ;;  %v2047_v3 = vpop.permute.xlu0 %2046 }
 0x280   : > { %1784 = vst.msk [vmem:[%s5423_s10 + $0x40] sm:$0x1] %vm1781_vm14, %v1776_v4  ;;  %v2733_v36 = vpop.permute.xlu2 %2732  ;;  %3948 = vmatmul.msk.f32.vlgmr.msrb.gmra.mxu3 %vm1334_vm9, %v2047_v3  ;;  %3963 = vmatmul.msk.f32.vlgmr.msrb.gmra.mxu2 %vm1334_vm9, %v2493_v63  ;;  %v2165_v11 = vpop.permute.xlu1 %2164 }
 0x281   : > { %1785 = vst.msk [vmem:[%s5423_s10 + $0x60] sm:$0x1] %vm1781_vm14, %v1777_v34  ;;  %3950 = vmatmul.msk.f32.vlgmr.msra.gmra.mxu1 %vm1334_vm9, %v2106_v51  ;;  %2746 = vmatpush.bf16.xpose.msrb.mxu2 %v5205_v7 }
 0x282   : > { %2298 = vmatpush.msrb.mxu3 %v5294_v28  ;;  %2357 = vmatpush.msra.mxu1 %v5294_v28 }
 0x284   : > { %2299 = vmatpush.msrb.mxu3 %v5301_v43  ;;  %2358 = vmatpush.msra.mxu1 %v5301_v43 }
 0x287   : > { %v2434_v13 = vpop.permute.xlu0 %2433 }
 0x288   : > { %v2675_v23 = vpop.permute.xlu2 %2674  ;;  %3952 = vmatmul.msk.f32.vlgmr.msra.gmra.mxu3 %vm1334_vm9, %v2165_v11  ;;  %3961 = vmatmul.msk.f32.vlgmr.msrb.gmra.mxu0 %vm1334_vm9, %v2434_v13 }
 0x289   : > { %3954 = vmatmul.msk.f32.vlgmr.msrb.gmra.mxu1 %vm1334_vm9, %v5356_v21  ;;  %2693 = vmatpush.bf16.xpose.msrb.mxu0 %v5272_v6 }
 0x28a   : > { %2747 = vmatpush.bf16.xpose.msrb.mxu2 %v4812_v19  ;;  %2416 = vmatpush.msra.mxu3 %v5294_v28  ;;  %v2736_v19 = vsel %vm1214_vm6, %v4515_v25, %v2726_v38 }
 0x28b   : > { %2475 = vmatpush.msrb.mxu1 %v5294_v28 }
 0x28c   : > { %2417 = vmatpush.msra.mxu3 %v5301_v43 }
 0x28d   : > { %2476 = vmatpush.msrb.mxu1 %v5301_v43 }
 0x290   : > { %v2611_v7 = vpop.permute.xlu2 %2610 }
 0x291   : > { %3967 = vmatmul.msk.f32.vlgmr.msra.gmra.mxu2 %vm1334_vm9, %v2611_v7  ;;  %2694 = vmatpush.bf16.xpose.msrb.mxu0 %v4929_v50 }
 0x292   : > { %2748 = vmatpush.bf16.xpose.msrb.mxu2 %v4836_v61  ;;  %v2281_v21 = vpop.permute.xlu0 %2280  ;;  %v2399_v1 = vpop.permute.xlu1 %2398 }
 0x293   : > { %3956 = vmatmul.msk.f32.vlgmr.msrb.gmra.mxu3 %vm1334_vm9, %v2281_v21 }
 0x294   : > { %2534 = vmatpush.msrb.mxu3 %v5294_v28 }
 0x296   : > { %2535 = vmatpush.msrb.mxu3 %v5301_v43 }
 0x298   : > { %v2576_v0 = vpop.permute.xlu2 %2575 }
 0x299   : > { %2695 = vmatpush.bf16.xpose.msrb.mxu0 %v4993_v30 }
 0x29a   : > { %2749 = vmatpush.bf16.xpose.msrb.mxu2 %v4862_v41  ;;  %v2728_v6 = vpop.permute.xlu0 %2727  ;;  %v2340_v53 = vpop.permute.xlu1 %2339 }
 0x29b   : > { %3958 = vmatmul.msk.f32.vlgmr.msra.gmra.mxu1 %vm1334_vm9, %v2340_v53  ;;  %3960 = vmatmul.msk.f32.vlgmr.msra.gmra.mxu3 %vm1334_vm9, %v2399_v1  ;;  %v2738_v61 = vsel %vm1263_vm7, %v2736_v19, %v2728_v6 }
 0x29c   : > { %2652 = vmatpush.msra.mxu3 %v5294_v28  ;;  %2593 = vmatpush.msra.mxu1 %v5294_v28  ;;  %v2740_v25 = vsel %vm1296_vm8, %v2738_v61, %v2733_v36 }
 0x29d   : > { %v2744_v30 = vsel %vm1334_vm9, %v2740_v25, 0 }
 0x29e   : > { %2653 = vmatpush.msra.mxu3 %v5301_v43  ;;  %2594 = vmatpush.msra.mxu1 %v5301_v43 }
 0x2a1   : > { %2696 = vmatpush.bf16.xpose.msrb.mxu0 %v5046_v54 }
 0x2a2   : > { %2750 = vmatpush.bf16.xpose.msrb.mxu2 %v4886_v48  ;;  %v2517_v41 = vpop.permute.xlu0 %2516  ;;  %v2670_v50 = vpop.permute.xlu1 %2669 }
 0x2a3   : > { %3964 = vmatmul.msk.f32.vlgmr.msrb.gmra.mxu3 %vm1334_vm9, %v2517_v41  ;;  %v2683_v8 = vsel %vm1214_vm6, %v4107_v45, %v2670_v50 }
 0x2a4   : > { %2759 = vmatpush.bf16.xpose.msrb.mxu3 %v2744_v30  ;;  %v2685_v47 = vsel %vm1263_vm7, %v2683_v8, %v2675_v23 }
 0x2a9   : > { %2697 = vmatpush.bf16.xpose.msrb.mxu0 %v5103_v31 }
 0x2aa   : > { %2751 = vmatpush.bf16.xpose.msrb.mxu2 %v4920_v26  ;;  %v2680_v44 = vpop.permute.xlu0 %2679  ;;  %v2458_v54 = vpop.permute.xlu1 %2457 }
 0x2ab   : > { %v2687_v48 = vsel %vm1296_vm8, %v2685_v47, %v2680_v44  ;;  %3962 = vmatmul.msk.f32.vlgmr.msrb.gmra.mxu1 %vm1334_vm9, %v2458_v54 }
 0x2ac   : > { %v2691_v24 = vsel %vm1334_vm9, %v2687_v48, 0  ;;  %2760 = vmatpush.bf16.xpose.msrb.mxu3 %v4889_v14  ;;  %v392_v14 = vld [vmem:[%s5951_s2 + $0x6] sm:$0x3] }
 0x2ad   : > { %2706 = vmatpush.bf16.xpose.msrb.mxu1 %v2691_v24 }
 0x2b1   : > { %2698 = vmatpush.bf16.xpose.msrb.mxu0 %v5139_v15 }
 0x2b2   : > { %2752 = vmatpush.bf16.xpose.msrb.mxu2 %v4958_v12  ;;  %v2552_v31 = vpop.permute.xlu0 %2551  ;;  %v2635_v26 = vpop.permute.xlu1 %2634  ;;  %v391_v12 = vld [vmem:[%s5951_s2 + $0x4] sm:$0x3] }
 0x2b3   : > { %3965 = vmatmul.msk.f32.vlgmr.msra.gmra.mxu0 %vm1334_vm9, %v2552_v31  ;;  %3966 = vmatmul.msk.f32.vlgmr.msra.gmra.mxu1 %vm1334_vm9, %v2576_v0 }
 0x2b4   : > { %3968 = vmatmul.msk.f32.vlgmr.msra.gmra.mxu3 %vm1334_vm9, %v2635_v26 }
 0x2b5   : > { %2761 = vmatpush.bf16.xpose.msrb.mxu3 %v4968_v62  ;;  %2707 = vmatpush.bf16.xpose.msrb.mxu1 %v5147_v40  ;;  %v1866_v62 = vpop.f32.mrf.mxu0 }
 0x2b9   : > { %2699 = vmatpush.bf16.xpose.msrb.mxu0 %v5168_v32 }
 0x2ba   : > { %2753 = vmatpush.bf16.xpose.msrb.mxu2 %v5022_v2 }
 0x2bd   : > { %2762 = vmatpush.bf16.xpose.msrb.mxu3 %v5030_v57  ;;  %2708 = vmatpush.bf16.xpose.msrb.mxu1 %v5173_v27  ;;  %v1807_v57 = vpop.f32.mrf.mxu2 }
 0x2c1   : > { %3975 = vmatmul.msk.bf16.vlgmr.msrb.gmra.mxu2 %vm1334_vm9, %v392_v14  ;;  %2700 = vmatpush.bf16.xpose.msrb.mxu0 %v5192_v22 }
 0x2c2   : > { %2853 = vmatpush.msra.mxu2 %v5254_v18 }
 0x2c4   : > { %2854 = vmatpush.msra.mxu2 %v5259_v33 }
 0x2c5   : > { %2763 = vmatpush.bf16.xpose.msrb.mxu3 %v5079_v37  ;;  %2709 = vmatpush.bf16.xpose.msrb.mxu1 %v5197_v39 }
 0x2c6   : > { %2971 = vmatpush.msrb.mxu2 %v5254_v18 }
 0x2c8   : > { %2972 = vmatpush.msrb.mxu2 %v5259_v33  ;;  %3973 = vmatmul.msk.bf16.vlgmr.msrb.gmra.mxu0 %vm1334_vm9, %v391_v12 }
 0x2c9   : > { %2795 = vmatpush.msra.mxu0 %v5254_v18 }
 0x2cb   : > { %2796 = vmatpush.msra.mxu0 %v5259_v33 }
 0x2cd   : > { %2912 = vmatpush.msrb.mxu0 %v5254_v18  ;;  %2764 = vmatpush.bf16.xpose.msrb.mxu3 %v5120_v46 }
 0x2ce   : > { %2710 = vmatpush.bf16.xpose.msrb.mxu1 %v5220_v59 }
 0x2cf   : > { %2913 = vmatpush.msrb.mxu0 %v5259_v33 }
 0x2d5   : > { %2765 = vmatpush.bf16.xpose.msrb.mxu3 %v5157_v60  ;;  %v1984_v60 = vpop.f32.mrf.mxu0 }
 0x2d6   : > { %2711 = vmatpush.bf16.xpose.msrb.mxu1 %v5232_v5 }
 0x2dd   : > { %2766 = vmatpush.bf16.xpose.msrb.mxu3 %v5181_v55  ;;  %v2102_v51 = vpop.f32.mrf.mxu0 }
 0x2de   : > { %2712 = vmatpush.bf16.xpose.msrb.mxu1 %v5240_v17  ;;  %v1925_v17 = vpop.f32.mrf.mxu2 }
 0x2e4   : > { %3976 = vmatmul.msk.bf16.vlgmr.msrb.gmra.mxu3 %vm1334_vm9, %v392_v14 }
 0x2e5   : > { %2877 = vmatpush.msra.mxu3 %v5294_v28  ;;  %v2219_v11 = vpop.f32.mrf.mxu0 }
 0x2e6   : > { %2713 = vmatpush.bf16.xpose.msrb.mxu1 %v5248_v16  ;;  %v2043_v34 = vpop.f32.mrf.mxu2 }
 0x2e7   : > { %2878 = vmatpush.msra.mxu3 %v5301_v43 }
 0x2e9   : > { %2995 = vmatpush.msrb.mxu3 %v5294_v28 }
 0x2eb   : > { %2996 = vmatpush.msrb.mxu3 %v5301_v43 }
 0x2ed   : > { %3974 = vmatmul.msk.bf16.vlgmr.msrb.gmra.mxu1 %vm1334_vm9, %v391_v12  ;;  %v2336_v54 = vpop.f32.mrf.mxu0 }
 0x2ee   : > { %2818 = vmatpush.msra.mxu1 %v5294_v28  ;;  %v1890_v2 = vpop.f32.mrf.mxu1  ;;  %v2161_v61 = vpop.f32.mrf.mxu2 }
 0x2ef   : > { %v1891_v37 = vadd.f32 %v1890_v2, %v1866_v62 }
 0x2f0   : > { %2819 = vmatpush.msra.mxu1 %v5301_v43 }
 0x2f1   : > { %v1894_v46 = vrot.slane %v1891_v37, 1  ;;  %v1895_v15 = vrot.slane %v1891_v37, 2  ;;  %v1896_v40 = vrot.slane %v1891_v37, 3  ;;  %1900 = vst.msk [vmem:[%s5423_s10 + $0x4] sm:$0x1] %vm1781_vm14, %v1891_v37 }
 0x2f2   : > { %2936 = vmatpush.msrb.mxu1 %v5294_v28 }
 0x2f3   : > { %1901 = vst.msk [vmem:[%s5423_s10 + $0x24] sm:$0x1] %vm1781_vm14, %v1894_v46  ;;  %v1831_v32 = vpop.f32.mrf.mxu3 }
 0x2f4   : > { %2937 = vmatpush.msrb.mxu1 %v5301_v43  ;;  %1902 = vst.msk [vmem:[%s5423_s10 + $0x44] sm:$0x1] %vm1781_vm14, %v1895_v15  ;;  %v1832_v27 = vadd.f32 %v1831_v32, %v1807_v57 }
 0x2f5   : > { %1903 = vst.msk [vmem:[%s5423_s10 + $0x64] sm:$0x1] %vm1781_vm14, %v1896_v40 }
 0x2f6   : > { %v1835_v55 = vrot.slane %v1832_v27, 1  ;;  %v1836_v22 = vrot.slane %v1832_v27, 2  ;;  %v1837_v39 = vrot.slane %v1832_v27, 3  ;;  %1841 = vst.msk [vmem:[%s5423_s10 + $0x2] sm:$0x1] %vm1781_vm14, %v1832_v27  ;;  %v2008_v59 = vpop.f32.mrf.mxu1  ;;  %v2277_v8 = vpop.f32.mrf.mxu2 }
 0x2f7   : > { %v2009_v5 = vadd.f32 %v2008_v59, %v1984_v60 }
 0x2f8   : > { %1842 = vst.msk [vmem:[%s5423_s10 + $0x22] sm:$0x1] %vm1781_vm14, %v1835_v55 }
 0x2f9   : > { %1843 = vst.msk [vmem:[%s5423_s10 + $0x42] sm:$0x1] %vm1781_vm14, %v1836_v22  ;;  %v2012_v16 = vrot.slane %v2009_v5, 1  ;;  %v2013_v49 = vrot.slane %v2009_v5, 2  ;;  %v2014_v29 = vrot.slane %v2009_v5, 3 }
 0x2fa   : > { %1844 = vst.msk [vmem:[%s5423_s10 + $0x62] sm:$0x1] %vm1781_vm14, %v1837_v39 }
 0x2fb   : > { %2018 = vst.msk [vmem:[%s5423_s10 + $0x8] sm:$0x1] %vm1781_vm14, %v2009_v5  ;;  %v1949_v9 = vpop.f32.mrf.mxu3 }
 0x2fc   : > { %2019 = vst.msk [vmem:[%s5423_s10 + $0x28] sm:$0x1] %vm1781_vm14, %v2012_v16  ;;  %v1950_v10 = vadd.f32 %v1949_v9, %v1925_v17 }
 0x2fd   : > { %2020 = vst.msk [vmem:[%s5423_s10 + $0x48] sm:$0x1] %vm1781_vm14, %v2013_v49 }
 0x2fe   : > { %2021 = vst.msk [vmem:[%s5423_s10 + $0x68] sm:$0x1] %vm1781_vm14, %v2014_v29  ;;  %v1953_v20 = vrot.slane %v1950_v10, 1  ;;  %v1954_v38 = vrot.slane %v1950_v10, 2  ;;  %v1955_v58 = vrot.slane %v1950_v10, 3  ;;  %v2126_v42 = vpop.f32.mrf.mxu1  ;;  %v2395_v12 = vpop.f32.mrf.mxu2 }
 0x2ff   : > { %1959 = vst.msk [vmem:[%s5423_s10 + $0x6] sm:$0x1] %vm1781_vm14, %v1950_v10  ;;  %v2127_v35 = vadd.f32 %v2126_v42, %v2102_v51 }
 0x300   : > { %1960 = vst.msk [vmem:[%s5423_s10 + $0x26] sm:$0x1] %vm1781_vm14, %v1953_v20 }
 0x301   : > { %1961 = vst.msk [vmem:[%s5423_s10 + $0x46] sm:$0x1] %vm1781_vm14, %v1954_v38  ;;  %v2130_v63 = vrot.slane %v2127_v35, 1  ;;  %v2131_v52 = vrot.slane %v2127_v35, 2  ;;  %v2132_v4 = vrot.slane %v2127_v35, 3 }
 0x302   : > { %1962 = vst.msk [vmem:[%s5423_s10 + $0x66] sm:$0x1] %vm1781_vm14, %v1955_v58 }
 0x303   : > { %2136 = vst.msk [vmem:[%s5423_s10 + $0xc] sm:$0x1] %vm1781_vm14, %v2127_v35  ;;  %v2067_v3 = vpop.f32.mrf.mxu3 }
 0x304   : > { %2137 = vst.msk [vmem:[%s5423_s10 + $0x2c] sm:$0x1] %vm1781_vm14, %v2130_v63  ;;  %v2068_v36 = vadd.f32 %v2067_v3, %v2043_v34 }
 0x305   : > { %2138 = vst.msk [vmem:[%s5423_s10 + $0x4c] sm:$0x1] %vm1781_vm14, %v2131_v52  ;;  %v2454_v55 = vpop.f32.mrf.mxu0 }
 0x306   : > { %2139 = vst.msk [vmem:[%s5423_s10 + $0x6c] sm:$0x1] %vm1781_vm14, %v2132_v4  ;;  %v2071_v13 = vrot.slane %v2068_v36, 1  ;;  %v2072_v23 = vrot.slane %v2068_v36, 2  ;;  %v2073_v7 = vrot.slane %v2068_v36, 3  ;;  %v2242_v21 = vpop.f32.mrf.mxu1  ;;  %v2513_v60 = vpop.f32.mrf.mxu2 }
 0x307   : > { %2077 = vst.msk [vmem:[%s5423_s10 + $0xa] sm:$0x1] %vm1781_vm14, %v2068_v36  ;;  %v2243_v1 = vadd.f32 %v2242_v21, %v2219_v11 }
 0x308   : > { %2078 = vst.msk [vmem:[%s5423_s10 + $0x2a] sm:$0x1] %vm1781_vm14, %v2071_v13 }
 0x309   : > { %2079 = vst.msk [vmem:[%s5423_s10 + $0x4a] sm:$0x1] %vm1781_vm14, %v2072_v23  ;;  %v2246_v19 = vrot.slane %v2243_v1, 1  ;;  %v2247_v6 = vrot.slane %v2243_v1, 2  ;;  %v2248_v53 = vrot.slane %v2243_v1, 3 }
 0x30a   : > { %2080 = vst.msk [vmem:[%s5423_s10 + $0x6a] sm:$0x1] %vm1781_vm14, %v2073_v7 }
 0x30b   : > { %2252 = vst.msk [vmem:[%s5423_s10 + $0x10] sm:$0x1] %vm1781_vm14, %v2243_v1  ;;  %v2185_v25 = vpop.f32.mrf.mxu3 }
 0x30c   : > { %2253 = vst.msk [vmem:[%s5423_s10 + $0x30] sm:$0x1] %vm1781_vm14, %v2246_v19  ;;  %v2186_v41 = vadd.f32 %v2185_v25, %v2161_v61 }
 0x30d   : > { %2254 = vst.msk [vmem:[%s5423_s10 + $0x50] sm:$0x1] %vm1781_vm14, %v2247_v6 }
 0x30e   : > { %2255 = vst.msk [vmem:[%s5423_s10 + $0x70] sm:$0x1] %vm1781_vm14, %v2248_v53  ;;  %v2189_v50 = vrot.slane %v2186_v41, 1  ;;  %v2190_v30 = vrot.slane %v2186_v41, 2  ;;  %v2191_v45 = vrot.slane %v2186_v41, 3 }
 0x30f   : > { %2195 = vst.msk [vmem:[%s5423_s10 + $0xe] sm:$0x1] %vm1781_vm14, %v2186_v41 }
 0x310   : > { %2196 = vst.msk [vmem:[%s5423_s10 + $0x2e] sm:$0x1] %vm1781_vm14, %v2189_v50 }
 0x311   : > { %2197 = vst.msk [vmem:[%s5423_s10 + $0x4e] sm:$0x1] %vm1781_vm14, %v2190_v30 }
 0x312   : > { %2198 = vst.msk [vmem:[%s5423_s10 + $0x6e] sm:$0x1] %vm1781_vm14, %v2191_v45 }
 0x314   : > { %v2631_v42 = vpop.f32.mrf.mxu2 }
 0x316   : > { %v2301_v44 = vpop.f32.mrf.mxu3 }
 0x317   : > { %v2302_v47 = vadd.f32 %v2301_v44, %v2277_v8 }
 0x318   : > { %v2360_v48 = vpop.f32.mrf.mxu1 }
 0x319   : > { %v2305_v24 = vrot.slane %v2302_v47, 1  ;;  %v2306_v0 = vrot.slane %v2302_v47, 2  ;;  %v2307_v31 = vrot.slane %v2302_v47, 3  ;;  %2311 = vst.msk [vmem:[%s5423_s10 + $0x12] sm:$0x1] %vm1781_vm14, %v2302_v47  ;;  %v2361_v26 = vadd.f32 %v2360_v48, %v2336_v54 }
 0x31b   : > { %2312 = vst.msk [vmem:[%s5423_s10 + $0x32] sm:$0x1] %vm1781_vm14, %v2305_v24  ;;  %v2364_v14 = vrot.slane %v2361_v26, 1  ;;  %v2365_v62 = vrot.slane %v2361_v26, 2  ;;  %v2366_v2 = vrot.slane %v2361_v26, 3 }
 0x31c   : > { %2313 = vst.msk [vmem:[%s5423_s10 + $0x52] sm:$0x1] %vm1781_vm14, %v2306_v0 }
 0x31d   : > { %2314 = vst.msk [vmem:[%s5423_s10 + $0x72] sm:$0x1] %vm1781_vm14, %v2307_v31  ;;  %v5716_v31 = vld [vmem:[%s5953_s4 + $0x18] sm:$0xff] }
 0x31e   : > { %2370 = vst.msk [vmem:[%s5423_s10 + $0x14] sm:$0x1] %vm1781_vm14, %v2361_v26  ;;  %v2419_v57 = vpop.f32.mrf.mxu3 }
 0x31f   : > { %2371 = vst.msk [vmem:[%s5423_s10 + $0x34] sm:$0x1] %vm1781_vm14, %v2364_v14  ;;  %v2420_v37 = vadd.f32 %v2419_v57, %v2395_v12  ;;  %v5723_v12 = vld [vmem:[%s5953_s4 + $0x10] sm:$0xff] }
 0x320   : > { %2372 = vst.msk [vmem:[%s5423_s10 + $0x54] sm:$0x1] %vm1781_vm14, %v2365_v62 }
 0x321   : > { %2373 = vst.msk [vmem:[%s5423_s10 + $0x74] sm:$0x1] %vm1781_vm14, %v2366_v2  ;;  %v2423_v46 = vrot.slane %v2420_v37, 1  ;;  %v2424_v15 = vrot.slane %v2420_v37, 2  ;;  %v2425_v40 = vrot.slane %v2420_v37, 3 }
 0x322   : > { %2429 = vst.msk [vmem:[%s5423_s10 + $0x16] sm:$0x1] %vm1781_vm14, %v2420_v37 }
 0x323   : > { %2430 = vst.msk [vmem:[%s5423_s10 + $0x36] sm:$0x1] %vm1781_vm14, %v2423_v46 }
 0x324   : > { %2431 = vst.msk [vmem:[%s5423_s10 + $0x56] sm:$0x1] %vm1781_vm14, %v2424_v15 }
 0x325   : > { %2432 = vst.msk [vmem:[%s5423_s10 + $0x76] sm:$0x1] %vm1781_vm14, %v2425_v40  ;;  %v4111_v40 = vld [vmem:[%s5953_s4] sm:$0xff] }
 0x326   : > { %v2537_v32 = vpop.f32.mrf.mxu3 }
 0x327   : > { %v2538_v27 = vadd.f32 %v2537_v32, %v2513_v60 }
 0x328   : > { %v2478_v22 = vpop.f32.mrf.mxu1 }
 0x329   : > { %v2541_v39 = vrot.slane %v2538_v27, 1  ;;  %v2542_v59 = vrot.slane %v2538_v27, 2  ;;  %v2543_v5 = vrot.slane %v2538_v27, 3  ;;  %2547 = vst.msk [vmem:[%s5423_s10 + $0x1a] sm:$0x1] %vm1781_vm14, %v2538_v27  ;;  %v2479_v17 = vadd.f32 %v2478_v22, %v2454_v55 }
 0x32b   : > { %2548 = vst.msk [vmem:[%s5423_s10 + $0x3a] sm:$0x1] %vm1781_vm14, %v2541_v39  ;;  %v2482_v16 = vrot.slane %v2479_v17, 1  ;;  %v2483_v49 = vrot.slane %v2479_v17, 2  ;;  %v2484_v29 = vrot.slane %v2479_v17, 3 }
 0x32c   : > { %2549 = vst.msk [vmem:[%s5423_s10 + $0x5a] sm:$0x1] %vm1781_vm14, %v2542_v59 }
 0x32d   : > { %2550 = vst.msk [vmem:[%s5423_s10 + $0x7a] sm:$0x1] %vm1781_vm14, %v2543_v5 }
 0x32e   : > { %2488 = vst.msk [vmem:[%s5423_s10 + $0x18] sm:$0x1] %vm1781_vm14, %v2479_v17 }
 0x32f   : > { %2489 = vst.msk [vmem:[%s5423_s10 + $0x38] sm:$0x1] %vm1781_vm14, %v2482_v16 }
 0x330   : > { %2490 = vst.msk [vmem:[%s5423_s10 + $0x58] sm:$0x1] %vm1781_vm14, %v2483_v49  ;;  %v2572_v9 = vpop.f32.mrf.mxu0  ;;  %v2596_v51 = vpop.f32.mrf.mxu1 }
 0x331   : > { %2491 = vst.msk [vmem:[%s5423_s10 + $0x78] sm:$0x1] %vm1781_vm14, %v2484_v29  ;;  %v2597_v10 = vadd.f32 %v2596_v51, %v2572_v9 }
 0x333   : > { %v2600_v20 = vrot.slane %v2597_v10, 1  ;;  %v2601_v38 = vrot.slane %v2597_v10, 2  ;;  %v2602_v58 = vrot.slane %v2597_v10, 3  ;;  %2606 = vst.msk [vmem:[%s5423_s10 + $0x1c] sm:$0x1] %vm1781_vm14, %v2597_v10 }
 0x335   : > { %2607 = vst.msk [vmem:[%s5423_s10 + $0x3c] sm:$0x1] %vm1781_vm14, %v2600_v20 }
 0x336   : > { %2608 = vst.msk [vmem:[%s5423_s10 + $0x5c] sm:$0x1] %vm1781_vm14, %v2601_v38 }
 0x337   : > { %2609 = vst.msk [vmem:[%s5423_s10 + $0x7c] sm:$0x1] %vm1781_vm14, %v2602_v58  ;;  %v2655_v35 = vpop.f32.mrf.mxu3 }
 0x338   : > { %v2656_v63 = vadd.f32 %v2655_v35, %v2631_v42 }
 0x33a   : > { %v2659_v52 = vrot.slane %v2656_v63, 1  ;;  %v2660_v4 = vrot.slane %v2656_v63, 2  ;;  %v2661_v34 = vrot.slane %v2656_v63, 3  ;;  %2665 = vst.msk [vmem:[%s5423_s10 + $0x1e] sm:$0x1] %vm1781_vm14, %v2656_v63 }
 0x33c   : > { %2666 = vst.msk [vmem:[%s5423_s10 + $0x3e] sm:$0x1] %vm1781_vm14, %v2659_v52 }
 0x33d   : > { %2667 = vst.msk [vmem:[%s5423_s10 + $0x5e] sm:$0x1] %vm1781_vm14, %v2660_v4 }
 0x33e   : > { %2668 = vst.msk [vmem:[%s5423_s10 + $0x7e] sm:$0x1] %vm1781_vm14, %v2661_v34 }
 0x344   : > { %v2755_v3 = vpop.f32.mrf.mxu2 }
 0x345   : > { %v2756_v36 = vadd.f32 %v2755_v3, %v5277_v56  ;;  %v2702_v11 = vpop.f32.mrf.mxu0 }
 0x346   : > { %v2703_v13 = vadd.f32 %v2702_v11, %v5277_v56 }
 0x347   : > { %vm2772_vm15 = vcmp.gt.f32.partialorder %v2756_v36, 0.0  ;;  %v2774_v23 = vmul.f32 0.2, %v2756_v36 }
 0x348   : > { %vm2719_vm0 = vcmp.gt.f32.partialorder %v2703_v13, 0.0  ;;  %v2721_v7 = vmul.f32 0.2, %v2703_v13 }
 0x349   : > { %v2776_v21 = vsel %vm2772_vm15, %v2756_v36, %v2774_v23 }
 0x34a   : > { %v2723_v1 = vsel %vm2719_vm0, %v2703_v13, %v2721_v7  ;;  %3977 = vmatmul.msk.f32.vlgmr.msra.gmra.mxu0 %vm1334_vm9, %v2776_v21 }
 0x34b   : > { %2918 = vrot.lane.b32.xlu2 %v2723_v1, %s4199_s29  ;;  %2977 = vrot.lane.b32.xlu0 %v2723_v1, %s4198_s27 }
 0x34c   : > { %2859 = vrot.lane.b32.xlu1 %v2723_v1, %s4196_s11  ;;  %3978 = vmatmul.msk.f32.vlgmr.msra.gmra.mxu1 %vm1334_vm9, %v2723_v1  ;;  %v2757_v19 = vpop.f32.mrf.mxu2 }
 0x34d   : > { %v2704_v6 = vpop.f32.mrf.mxu0  ;;  %3054 = vmatpush.msra.mxu1 %v5294_v28  ;;  %3030 = vmatpush.msra.mxu0 %v5254_v18 }
 0x34f   : > { %3055 = vmatpush.msra.mxu1 %v5301_v43  ;;  %3031 = vmatpush.msra.mxu0 %v5259_v33 }
 0x353   : > { %2953 = vrot.lane.b32.xlu2 %v2776_v21, %s4198_s27  ;;  %2835 = vrot.lane.b32.xlu0 %v2776_v21, %s4196_s11 }
 0x354   : > { %3095 = vrot.lane.b32.xlu1 %v2723_v1, %s4200_s7 }
 0x35b   : > { %3213 = vrot.lane.b32.xlu2 %v2723_v1, %s4201_s8  ;;  %3036 = vrot.lane.b32.xlu0 %v2723_v1, %s4197_s25 }
 0x35c   : > { %2894 = vrot.lane.b32.xlu1 %v2776_v21, %s4199_s29 }
 0x363   : > { %3012 = vrot.lane.b32.xlu2 %v2776_v21, %s4197_s25  ;;  %3071 = vrot.lane.b32.xlu0 %v2776_v21, %s4200_s7 }
 0x364   : > { %3154 = vrot.lane.b32.xlu1 %v2723_v1, %s4202_s9 }
 0x367   : > { %v2768_v18 = vpop.f32.mrf.mxu3 }
 0x368   : > { %v2769_v33 = vadd.f32 %v2768_v18, %v5277_v56 }
 0x36a   : > { %v2715_v53 = vpop.f32.mrf.mxu1  ;;  %vm2773_vm1 = vcmp.gt.f32.partialorder %v2769_v33, 0.0  ;;  %v2775_v61 = vmul.f32 0.2, %v2769_v33 }
 0x36b   : > { %v2716_v25 = vadd.f32 %v2715_v53, %v5277_v56 }
 0x36c   : > { %v5671_v41 = vsel %vm2773_vm1, %v2769_v33, %v2775_v61  ;;  %3189 = vrot.lane.b32.xlu1 %v2776_v21, %s4201_s8 }
 0x36d   : > { %vm2720_vm2 = vcmp.gt.f32.partialorder %v2716_v25, 0.0  ;;  %v2722_v50 = vmul.f32 0.2, %v2716_v25  ;;  %3305 = vrot.lane.b32.xlu2 %v5671_v41, %s4196_s11 }
 0x36f   : > { %v5676_v30 = vsel %vm2720_vm2, %v2716_v25, %v2722_v50  ;;  %v2770_v45 = vpop.f32.mrf.mxu3 }
 0x370   : > { %3329 = vrot.lane.b32.xlu0 %v5676_v30, %s4196_s11  ;;  %s3735_s11 = sshll.u32 %s3732_s21, 4  ;;  %s3736_s11 = int_to_ptr.hbm [resolvable:$true] %s3735_s11 }
 0x372   : > { %v2717_v8 = vpop.f32.mrf.mxu1 }
 0x374   : > { %3423 = vrot.lane.b32.xlu1 %v5671_v41, %s4198_s27 }
 0x375   : > { %3447 = vrot.lane.b32.xlu2 %v5676_v30, %s4198_s27  ;;  %s4126_s27 = sshra.s32 %s3736_s11, 4  ;;  %s4127_s27 = int_to_ptr.hbm [resolvable:$true] %s4126_s27 }
 0x376   : > { %p4133_p1 = scmp.lt.s32.totalorder %s4127_s27, %s5954_s5 }
 0x378   : > { %3130 = vrot.lane.b32.xlu0 %v2776_v21, %s4202_s9 }
 0x37c   : > { %3388 = vrot.lane.b32.xlu1 %v5676_v30, %s4199_s29 }
 0x37d   : > { %3541 = vrot.lane.b32.xlu2 %v5671_v41, %s4200_s7 }
 0x380   : > { %3364 = vrot.lane.b32.xlu0 %v5671_v41, %s4199_s29  ;;  %s4128_s29 = scalar_lea.hbm %s4127_s27, 128 }
 0x381   : > { %p4129_p12 = scmp.ne.s32.totalorder %s4127_s27, %s4128_s29 }
 0x383   : > { %p4130_p13 = pnand %p4129_p12, %p4274_p4 }
 0x384   : > { %3482 = vrot.lane.b32.xlu1 %v5671_v41, %s4197_s25 }
 0x385   : > { %3506 = vrot.lane.b32.xlu2 %v5676_v30, %s4197_s25  ;;  %s3719_s25 = scalar_lea.sflag [#allocation3], %s295_s12  ;;  %p4131_p0 = pneg %p4130_p13 }
 0x388   : > { %3565 = vrot.lane.b32.xlu0 %v5676_v30, %s4200_s7 }
 0x38c   : > { %3683 = vrot.lane.b32.xlu1 %v5676_v30, %s4201_s8 }
 0x38d   : > { %3600 = vrot.lane.b32.xlu2 %v5671_v41, %s4202_s9 }
 0x390   : > { %3659 = vrot.lane.b32.xlu0 %v5671_v41, %s4201_s8 }
 0x398   : > { %3624 = vrot.lane.b32.xlu0 %v5676_v30, %s4202_s9  ;;  %s4132_s9 = scalar_lea.hbm %s5954_s5, 256 }
 0x399   : > { %p4134_p2 = scmp.lt.s32.totalorder %s4132_s9, %s4128_s29 }
 0x39b   : > { %p4135_p3 = por %p4134_p2, %p4133_p1 }
 0x39d   : > { %p4136_p5 = pnand %p4135_p3, %p4131_p0 }
 0x3a5   : > { %v2919_v56 = vpop.permute.xlu2 %2918 }
 0x3a6   : > { %3982 = vmatmul.msk.f32.vlgmr.msrb.gmra.mxu1 %vm1334_vm9, %v2919_v56 }
 0x3a7   : > { %3172 = vmatpush.msrb.mxu1 %v5294_v28 }
 0x3a9   : > { %3173 = vmatpush.msrb.mxu1 %v5301_v43 }
 0x3ad   : > { %v2954_v44 = vpop.permute.xlu2 %2953 }
 0x3b5   : > { %v3214_v48 = vpop.permute.xlu2 %3213 }
 0x3bd   : > { %v2978_v47 = vpop.permute.xlu0 %2977  ;;  %v3013_v46 = vpop.permute.xlu2 %3012 }
 0x3be   : > { %v2860_v54 = vpop.permute.xlu1 %2859 }
 0x3bf   : > { %3980 = vmatmul.msk.f32.vlgmr.msra.gmra.mxu3 %vm1334_vm9, %v2860_v54 }
 0x3c0   : > { %3113 = vmatpush.msra.mxu3 %v5294_v28 }
 0x3c2   : > { %3114 = vmatpush.msra.mxu3 %v5301_v43 }
 0x3c5   : > { %v2836_v24 = vpop.permute.xlu0 %2835 }
 0x3c6   : > { %v3096_v0 = vpop.permute.xlu1 %3095  ;;  %3979 = vmatmul.msk.f32.vlgmr.msra.gmra.mxu2 %vm1334_vm9, %v2836_v24 }
 0x3c7   : > { %3984 = vmatmul.msk.f32.vlgmr.msrb.gmra.mxu3 %vm1334_vm9, %v2978_v47  ;;  %3089 = vmatpush.msra.mxu2 %v5716_v31  ;;  %v2798_v26 = vpop.f32.mrf.mxu0  ;;  %v3306_v27 = vpop.permute.xlu2 %3305 }
 0x3c8   : > { %3231 = vmatpush.msrb.mxu3 %v5294_v28 }
 0x3c9   : > { %v2821_v14 = vpop.f32.mrf.mxu1  ;;  %3090 = vmatpush.msra.mxu2 %v5723_v12 }
 0x3ca   : > { %v2822_v62 = vadd.f32 %v2821_v14, %v2798_v26  ;;  %3232 = vmatpush.msrb.mxu3 %v5301_v43  ;;  %v4110_v43 = vld [vmem:[%s5953_s4 + $0x8] sm:$0xff] }
 0x3cc   : > { %v2825_v2 = vrot.slane %v2822_v62, 1  ;;  %v2826_v57 = vrot.slane %v2822_v62, 2  ;;  %v2827_v37 = vrot.slane %v2822_v62, 3  ;;  %2831 = vst.msk [vmem:[%s5423_s10 + $0x1] sm:$0x1] %vm1781_vm14, %v2822_v62 }
 0x3cd   : > { %v3037_v28 = vpop.permute.xlu0 %3036 }
 0x3ce   : > { %2832 = vst.msk [vmem:[%s5423_s10 + $0x21] sm:$0x1] %vm1781_vm14, %v2825_v2  ;;  %v2895_v15 = vpop.permute.xlu1 %2894  ;;  %3983 = vmatmul.msk.f32.vlgmr.msrb.gmra.mxu2 %vm1334_vm9, %v2954_v44  ;;  %3986 = vmatmul.msk.f32.vlgmr.msra.gmra.mxu1 %vm1334_vm9, %v3037_v28 }
 0x3cf   : > { %2833 = vst.msk [vmem:[%s5423_s10 + $0x41] sm:$0x1] %vm1781_vm14, %v2826_v57  ;;  %3981 = vmatmul.msk.f32.vlgmr.msrb.gmra.mxu0 %vm1334_vm9, %v2895_v15  ;;  %3988 = vmatmul.msk.f32.vlgmr.msra.gmra.mxu3 %vm1334_vm9, %v3096_v0  ;;  %v3448_v39 = vpop.permute.xlu2 %3447 }
 0x3d0   : > { %2834 = vst.msk [vmem:[%s5423_s10 + $0x61] sm:$0x1] %vm1781_vm14, %v2827_v37  ;;  %3207 = vmatpush.msrb.mxu2 %v5716_v31  ;;  %3288 = vmatpush.msra.mxu1 %v4110_v43 }
 0x3d1   : > { %3347 = vmatpush.msra.mxu3 %v4110_v43  ;;  %3148 = vmatpush.msrb.mxu0 %v5716_v31 }
 0x3d2   : > { %3208 = vmatpush.msrb.mxu2 %v5723_v12  ;;  %3289 = vmatpush.msra.mxu1 %v4111_v40 }
 0x3d3   : > { %3348 = vmatpush.msra.mxu3 %v4111_v40  ;;  %3149 = vmatpush.msrb.mxu0 %v5723_v12 }
 0x3d5   : > { %v3072_v60 = vpop.permute.xlu0 %3071 }
 0x3d6   : > { %v3155_v32 = vpop.permute.xlu1 %3154  ;;  %3987 = vmatmul.msk.f32.vlgmr.msra.gmra.mxu2 %vm1334_vm9, %v3072_v60 }
 0x3d7   : > { %3985 = vmatmul.msk.f32.vlgmr.msra.gmra.mxu0 %vm1334_vm9, %v3013_v46  ;;  %3990 = vmatmul.msk.f32.vlgmr.msrb.gmra.mxu1 %vm1334_vm9, %v3155_v32  ;;  %v3542_v17 = vpop.permute.xlu2 %3541 }
 0x3d8   : > { %3992 = vmatmul.msk.f32.vlgmr.msrb.gmra.mxu3 %vm1334_vm9, %v3214_v48  ;;  %3323 = vmatpush.msra.mxu2 %v5716_v31 }
 0x3d9   : > { %3465 = vmatpush.msrb.mxu3 %v4110_v43  ;;  %3265 = vmatpush.msra.mxu0 %v5716_v31 }
 0x3da   : > { %3324 = vmatpush.msra.mxu2 %v5723_v12  ;;  %3406 = vmatpush.msrb.mxu1 %v4110_v43 }
 0x3db   : > { %3466 = vmatpush.msrb.mxu3 %v4111_v40  ;;  %3266 = vmatpush.msra.mxu0 %v5723_v12 }
 0x3dc   : > { %3407 = vmatpush.msrb.mxu1 %v4111_v40 }
 0x3de   : > { %v3190_v55 = vpop.permute.xlu1 %3189 }
 0x3df   : > { %3991 = vmatmul.msk.f32.vlgmr.msrb.gmra.mxu2 %vm1334_vm9, %v3190_v55  ;;  %3994 = vmatmul.msk.f32.vlgmr.msra.gmra.mxu1 %vm1334_vm9, %v5676_v30  ;;  %v3507_v29 = vpop.permute.xlu2 %3506 }
 0x3e0   : > { %3441 = vmatpush.msrb.mxu2 %v5716_v31  ;;  %3524 = vmatpush.msra.mxu1 %v4110_v43 }
 0x3e2   : > { %v3330_v22 = vpop.permute.xlu0 %3329  ;;  %3442 = vmatpush.msrb.mxu2 %v5723_v12  ;;  %3525 = vmatpush.msra.mxu1 %v4111_v40 }
 0x3e3   : > { %3996 = vmatmul.msk.f32.vlgmr.msra.gmra.mxu3 %vm1334_vm9, %v3330_v22 }
 0x3e4   : > { %3583 = vmatpush.msra.mxu3 %v4110_v43 }
 0x3e6   : > { %3584 = vmatpush.msra.mxu3 %v4111_v40  ;;  %v3424_v59 = vpop.permute.xlu1 %3423 }
 0x3e7   : > { %3995 = vmatmul.msk.f32.vlgmr.msra.gmra.mxu2 %vm1334_vm9, %v3306_v27  ;;  %v3601_v38 = vpop.permute.xlu2 %3600 }
 0x3e8   : > { %3559 = vmatpush.msra.mxu2 %v5716_v31 }
 0x3ea   : > { %v3131_v5 = vpop.permute.xlu0 %3130  ;;  %3560 = vmatpush.msra.mxu2 %v5723_v12 }
 0x3eb   : > { %3989 = vmatmul.msk.f32.vlgmr.msrb.gmra.mxu0 %vm1334_vm9, %v3131_v5  ;;  %4000 = vmatmul.msk.f32.vlgmr.msrb.gmra.mxu3 %vm1334_vm9, %v3448_v39 }
 0x3ec   : > { %3382 = vmatpush.msrb.mxu0 %v5716_v31  ;;  %3701 = vmatpush.msrb.mxu3 %v4110_v43 }
 0x3ee   : > { %3383 = vmatpush.msrb.mxu0 %v5723_v12  ;;  %v3389_v16 = vpop.permute.xlu1 %3388  ;;  %3702 = vmatpush.msrb.mxu3 %v4111_v40 }
 0x3ef   : > { %3998 = vmatmul.msk.f32.vlgmr.msrb.gmra.mxu1 %vm1334_vm9, %v3389_v16  ;;  %3999 = vmatmul.msk.f32.vlgmr.msrb.gmra.mxu2 %vm1334_vm9, %v3424_v59 }
 0x3f0   : > { %3677 = vmatpush.msrb.mxu2 %v5716_v31  ;;  %3642 = vmatpush.msrb.mxu1 %v4110_v43 }
 0x3f2   : > { %v3365_v49 = vpop.permute.xlu0 %3364  ;;  %3678 = vmatpush.msrb.mxu2 %v5723_v12  ;;  %3643 = vmatpush.msrb.mxu1 %v4111_v40 }
 0x3f3   : > { %3993 = vmatmul.msk.f32.vlgmr.msra.gmra.mxu0 %vm1334_vm9, %v5671_v41 }
 0x3f4   : > { %3500 = vmatpush.msra.mxu0 %v5716_v31 }
 0x3f6   : > { %3501 = vmatpush.msra.mxu0 %v5723_v12  ;;  %v3483_v9 = vpop.permute.xlu1 %3482 }
 0x3f7   : > { %4002 = vmatmul.msk.f32.vlgmr.msra.gmra.mxu1 %vm1334_vm9, %v3507_v29  ;;  %4003 = vmatmul.msk.f32.vlgmr.msra.gmra.mxu2 %vm1334_vm9, %v3542_v17 }
 0x3fa   : > { %v3566_v51 = vpop.permute.xlu0 %3565 }
 0x3fb   : > { %3997 = vmatmul.msk.f32.vlgmr.msrb.gmra.mxu0 %vm1334_vm9, %v3365_v49  ;;  %4004 = vmatmul.msk.f32.vlgmr.msra.gmra.mxu3 %vm1334_vm9, %v3566_v51 }
 0x3fc   : > { %3618 = vmatpush.msrb.mxu0 %v5716_v31 }
 0x3fe   : > { %3619 = vmatpush.msrb.mxu0 %v5723_v12  ;;  %v3684_v20 = vpop.permute.xlu1 %3683 }
 0x402   : > { %v3660_v10 = vpop.permute.xlu0 %3659 }
 0x403   : > { %4001 = vmatmul.msk.f32.vlgmr.msra.gmra.mxu0 %vm1334_vm9, %v3483_v9  ;;  %4007 = vmatmul.msk.f32.vlgmr.msrb.gmra.mxu2 %vm1334_vm9, %v3660_v10 }
 0x404   : > { %4008 = vmatmul.msk.f32.vlgmr.msrb.gmra.mxu3 %vm1334_vm9, %v3684_v20 }
 0x40a   : > { %v3625_v58 = vpop.permute.xlu0 %3624 }
 0x40b   : > { %4005 = vmatmul.msk.f32.vlgmr.msrb.gmra.mxu0 %vm1334_vm9, %v3601_v38  ;;  %4006 = vmatmul.msk.f32.vlgmr.msrb.gmra.mxu1 %vm1334_vm9, %v3625_v58 }
 0x423   : > { %v2939_v52 = vpop.f32.mrf.mxu1 }
 0x442   : > { %v2880_v42 = vpop.f32.mrf.mxu3 }
 0x449   : > { %v2856_v35 = vpop.f32.mrf.mxu2 }
 0x44a   : > { %v2881_v63 = vadd.f32 %v2880_v42, %v2856_v35  ;;  %v2998_v36 = vpop.f32.mrf.mxu3 }
 0x44b   : > { %v3057_v6 = vpop.f32.mrf.mxu1 }
 0x44c   : > { %v2884_v4 = vrot.slane %v2881_v63, 1  ;;  %v2885_v34 = vrot.slane %v2881_v63, 2  ;;  %v2886_v3 = vrot.slane %v2881_v63, 3  ;;  %2890 = vst.msk [vmem:[%s5423_s10 + $0x3] sm:$0x1] %vm1781_vm14, %v2881_v63  ;;  %v2915_v11 = vpop.f32.mrf.mxu0 }
 0x44d   : > { %v2940_v13 = vadd.f32 %v2939_v52, %v2915_v11 }
 0x44e   : > { %2891 = vst.msk [vmem:[%s5423_s10 + $0x23] sm:$0x1] %vm1781_vm14, %v2884_v4 }
 0x44f   : > { %2892 = vst.msk [vmem:[%s5423_s10 + $0x43] sm:$0x1] %vm1781_vm14, %v2885_v34  ;;  %v2943_v23 = vrot.slane %v2940_v13, 1  ;;  %v2944_v7 = vrot.slane %v2940_v13, 2  ;;  %v2945_v21 = vrot.slane %v2940_v13, 3 }
 0x450   : > { %2893 = vst.msk [vmem:[%s5423_s10 + $0x63] sm:$0x1] %vm1781_vm14, %v2886_v3 }
 0x451   : > { %2949 = vst.msk [vmem:[%s5423_s10 + $0x5] sm:$0x1] %vm1781_vm14, %v2940_v13  ;;  %v2974_v1 = vpop.f32.mrf.mxu2 }
 0x452   : > { %2950 = vst.msk [vmem:[%s5423_s10 + $0x25] sm:$0x1] %vm1781_vm14, %v2943_v23  ;;  %v2999_v19 = vadd.f32 %v2998_v36, %v2974_v1  ;;  %v3116_v41 = vpop.f32.mrf.mxu3 }
 0x453   : > { %2951 = vst.msk [vmem:[%s5423_s10 + $0x45] sm:$0x1] %vm1781_vm14, %v2944_v7 }
 0x454   : > { %2952 = vst.msk [vmem:[%s5423_s10 + $0x65] sm:$0x1] %vm1781_vm14, %v2945_v21  ;;  %v3002_v18 = vrot.slane %v2999_v19, 1  ;;  %v3003_v33 = vrot.slane %v2999_v19, 2  ;;  %v3004_v53 = vrot.slane %v2999_v19, 3  ;;  %v3033_v61 = vpop.f32.mrf.mxu0  ;;  %v3175_v0 = vpop.f32.mrf.mxu1 }
 0x455   : > { %3008 = vst.msk [vmem:[%s5423_s10 + $0x7] sm:$0x1] %vm1781_vm14, %v2999_v19  ;;  %v3058_v25 = vadd.f32 %v3057_v6, %v3033_v61 }
 0x456   : > { %3009 = vst.msk [vmem:[%s5423_s10 + $0x27] sm:$0x1] %vm1781_vm14, %v3002_v18 }
 0x457   : > { %3010 = vst.msk [vmem:[%s5423_s10 + $0x47] sm:$0x1] %vm1781_vm14, %v3003_v33  ;;  %v3061_v50 = vrot.slane %v3058_v25, 1  ;;  %v3062_v30 = vrot.slane %v3058_v25, 2  ;;  %v3063_v45 = vrot.slane %v3058_v25, 3 }
 0x458   : > { %3011 = vst.msk [vmem:[%s5423_s10 + $0x67] sm:$0x1] %vm1781_vm14, %v3004_v53 }
 0x459   : > { %3067 = vst.msk [vmem:[%s5423_s10 + $0x9] sm:$0x1] %vm1781_vm14, %v3058_v25  ;;  %v3092_v8 = vpop.f32.mrf.mxu2 }
 0x45a   : > { %3068 = vst.msk [vmem:[%s5423_s10 + $0x29] sm:$0x1] %vm1781_vm14, %v3061_v50  ;;  %v3117_v56 = vadd.f32 %v3116_v41, %v3092_v8 }
 0x45b   : > { %3069 = vst.msk [vmem:[%s5423_s10 + $0x49] sm:$0x1] %vm1781_vm14, %v3062_v30  ;;  %v3234_v48 = vpop.f32.mrf.mxu3 }
 0x45c   : > { %3070 = vst.msk [vmem:[%s5423_s10 + $0x69] sm:$0x1] %vm1781_vm14, %v3063_v45  ;;  %v3120_v44 = vrot.slane %v3117_v56, 1  ;;  %v3121_v47 = vrot.slane %v3117_v56, 2  ;;  %v3122_v54 = vrot.slane %v3117_v56, 3  ;;  %v3291_v40 = vpop.f32.mrf.mxu1 }
 0x45d   : > { %3126 = vst.msk [vmem:[%s5423_s10 + $0xb] sm:$0x1] %vm1781_vm14, %v3117_v56 }
 0x45e   : > { %3127 = vst.msk [vmem:[%s5423_s10 + $0x2b] sm:$0x1] %vm1781_vm14, %v3120_v44 }
 0x45f   : > { %3128 = vst.msk [vmem:[%s5423_s10 + $0x4b] sm:$0x1] %vm1781_vm14, %v3121_v47 }
 0x460   : > { %3129 = vst.msk [vmem:[%s5423_s10 + $0x6b] sm:$0x1] %vm1781_vm14, %v3122_v54 }
 0x462   : > { %v3210_v24 = vpop.f32.mrf.mxu2 }
 0x463   : > { %v3235_v31 = vadd.f32 %v3234_v48, %v3210_v24 }
 0x465   : > { %v3238_v26 = vrot.slane %v3235_v31, 1  ;;  %v3239_v14 = vrot.slane %v3235_v31, 2  ;;  %v3240_v12 = vrot.slane %v3235_v31, 3  ;;  %3244 = vst.msk [vmem:[%s5423_s10 + $0xf] sm:$0x1] %vm1781_vm14, %v3235_v31 }
 0x466   : > { %v3350_v2 = vpop.f32.mrf.mxu3 }
 0x467   : > { %3245 = vst.msk [vmem:[%s5423_s10 + $0x2f] sm:$0x1] %vm1781_vm14, %v3238_v26 }
 0x468   : > { %v3151_v62 = vpop.f32.mrf.mxu0  ;;  %3246 = vst.msk [vmem:[%s5423_s10 + $0x4f] sm:$0x1] %vm1781_vm14, %v3239_v14 }
 0x469   : > { %v3176_v57 = vadd.f32 %v3175_v0, %v3151_v62  ;;  %3247 = vst.msk [vmem:[%s5423_s10 + $0x6f] sm:$0x1] %vm1781_vm14, %v3240_v12 }
 0x46a   : > { %v3326_v15 = vpop.f32.mrf.mxu2 }
 0x46b   : > { %v3179_v37 = vrot.slane %v3176_v57, 1  ;;  %v3180_v28 = vrot.slane %v3176_v57, 2  ;;  %v3181_v46 = vrot.slane %v3176_v57, 3  ;;  %3185 = vst.msk [vmem:[%s5423_s10 + $0xd] sm:$0x1] %vm1781_vm14, %v3176_v57  ;;  %v3351_v43 = vadd.f32 %v3350_v2, %v3326_v15 }
 0x46c   : > { %v3409_v29 = vpop.f32.mrf.mxu1 }
 0x46d   : > { %3186 = vst.msk [vmem:[%s5423_s10 + $0x2d] sm:$0x1] %vm1781_vm14, %v3179_v37  ;;  %v3354_v60 = vrot.slane %v3351_v43, 1  ;;  %v3355_v32 = vrot.slane %v3351_v43, 2  ;;  %v3356_v27 = vrot.slane %v3351_v43, 3 }
 0x46e   : > { %3187 = vst.msk [vmem:[%s5423_s10 + $0x4d] sm:$0x1] %vm1781_vm14, %v3180_v28  ;;  %v3468_v39 = vpop.f32.mrf.mxu3 }
 0x46f   : > { %3188 = vst.msk [vmem:[%s5423_s10 + $0x6d] sm:$0x1] %vm1781_vm14, %v3181_v46 }
 0x470   : > { %3360 = vst.msk [vmem:[%s5423_s10 + $0x13] sm:$0x1] %vm1781_vm14, %v3351_v43  ;;  %v3268_v55 = vpop.f32.mrf.mxu0 }
 0x471   : > { %3361 = vst.msk [vmem:[%s5423_s10 + $0x33] sm:$0x1] %vm1781_vm14, %v3354_v60  ;;  %v3292_v22 = vadd.f32 %v3291_v40, %v3268_v55 }
 0x472   : > { %3362 = vst.msk [vmem:[%s5423_s10 + $0x53] sm:$0x1] %vm1781_vm14, %v3355_v32  ;;  %v3444_v16 = vpop.f32.mrf.mxu2 }
 0x473   : > { %3363 = vst.msk [vmem:[%s5423_s10 + $0x73] sm:$0x1] %vm1781_vm14, %v3356_v27  ;;  %v3295_v59 = vrot.slane %v3292_v22, 1  ;;  %v3296_v5 = vrot.slane %v3292_v22, 2  ;;  %v3297_v17 = vrot.slane %v3292_v22, 3  ;;  %v3469_v49 = vadd.f32 %v3468_v39, %v3444_v16 }
 0x474   : > { %3301 = vst.msk [vmem:[%s5423_s10 + $0x11] sm:$0x1] %vm1781_vm14, %v3292_v22  ;;  %v3527_v34 = vpop.f32.mrf.mxu1 }
 0x475   : > { %3302 = vst.msk [vmem:[%s5423_s10 + $0x31] sm:$0x1] %vm1781_vm14, %v3295_v59  ;;  %v3472_v9 = vrot.slane %v3469_v49, 1  ;;  %v3473_v51 = vrot.slane %v3469_v49, 2  ;;  %v3474_v10 = vrot.slane %v3469_v49, 3 }
 0x476   : > { %3303 = vst.msk [vmem:[%s5423_s10 + $0x51] sm:$0x1] %vm1781_vm14, %v3296_v5 }
 0x477   : > { %3304 = vst.msk [vmem:[%s5423_s10 + $0x71] sm:$0x1] %vm1781_vm14, %v3297_v17 }
 0x478   : > { %3478 = vst.msk [vmem:[%s5423_s10 + $0x17] sm:$0x1] %vm1781_vm14, %v3469_v49  ;;  %v3385_v20 = vpop.f32.mrf.mxu0 }
 0x479   : > { %3479 = vst.msk [vmem:[%s5423_s10 + $0x37] sm:$0x1] %vm1781_vm14, %v3472_v9  ;;  %v3410_v38 = vadd.f32 %v3409_v29, %v3385_v20 }
 0x47a   : > { %3480 = vst.msk [vmem:[%s5423_s10 + $0x57] sm:$0x1] %vm1781_vm14, %v3473_v51  ;;  %v3562_v63 = vpop.f32.mrf.mxu2 }
 0x47b   : > { %3481 = vst.msk [vmem:[%s5423_s10 + $0x77] sm:$0x1] %vm1781_vm14, %v3474_v10  ;;  %v3413_v58 = vrot.slane %v3410_v38, 1  ;;  %v3414_v42 = vrot.slane %v3410_v38, 2  ;;  %v3415_v35 = vrot.slane %v3410_v38, 3 }
 0x47c   : > { %3419 = vst.msk [vmem:[%s5423_s10 + $0x15] sm:$0x1] %vm1781_vm14, %v3410_v38 }
 0x47d   : > { %3420 = vst.msk [vmem:[%s5423_s10 + $0x35] sm:$0x1] %vm1781_vm14, %v3413_v58 }
 0x47e   : > { %3421 = vst.msk [vmem:[%s5423_s10 + $0x55] sm:$0x1] %vm1781_vm14, %v3414_v42  ;;  %v3586_v52 = vpop.f32.mrf.mxu3 }
 0x47f   : > { %3422 = vst.msk [vmem:[%s5423_s10 + $0x75] sm:$0x1] %vm1781_vm14, %v3415_v35  ;;  %v3587_v4 = vadd.f32 %v3586_v52, %v3562_v63 }
 0x480   : > { %v3503_v3 = vpop.f32.mrf.mxu0 }
 0x481   : > { %v3590_v36 = vrot.slane %v3587_v4, 1  ;;  %v3591_v11 = vrot.slane %v3587_v4, 2  ;;  %v3592_v13 = vrot.slane %v3587_v4, 3  ;;  %3596 = vst.msk [vmem:[%s5423_s10 + $0x1b] sm:$0x1] %vm1781_vm14, %v3587_v4  ;;  %v3528_v23 = vadd.f32 %v3527_v34, %v3503_v3 }
 0x483   : > { %3597 = vst.msk [vmem:[%s5423_s10 + $0x3b] sm:$0x1] %vm1781_vm14, %v3590_v36  ;;  %v3531_v7 = vrot.slane %v3528_v23, 1  ;;  %v3532_v21 = vrot.slane %v3528_v23, 2  ;;  %v3533_v1 = vrot.slane %v3528_v23, 3 }
 0x484   : > { %3598 = vst.msk [vmem:[%s5423_s10 + $0x5b] sm:$0x1] %vm1781_vm14, %v3591_v11 }
 0x485   : > { %3599 = vst.msk [vmem:[%s5423_s10 + $0x7b] sm:$0x1] %vm1781_vm14, %v3592_v13 }
 0x486   : > { %3537 = vst.msk [vmem:[%s5423_s10 + $0x19] sm:$0x1] %vm1781_vm14, %v3528_v23  ;;  %v3680_v19 = vpop.f32.mrf.mxu2 }
 0x487   : > { %3538 = vst.msk [vmem:[%s5423_s10 + $0x39] sm:$0x1] %vm1781_vm14, %v3531_v7  ;;  %v3704_v6 = vpop.f32.mrf.mxu3 }
 0x488   : > { %3539 = vst.msk [vmem:[%s5423_s10 + $0x59] sm:$0x1] %vm1781_vm14, %v3532_v21  ;;  %v3705_v18 = vadd.f32 %v3704_v6, %v3680_v19  ;;  %v3621_v33 = vpop.f32.mrf.mxu0  ;;  %v3645_v53 = vpop.f32.mrf.mxu1 }
 0x489   : > { %3540 = vst.msk [vmem:[%s5423_s10 + $0x79] sm:$0x1] %vm1781_vm14, %v3533_v1  ;;  %v3646_v61 = vadd.f32 %v3645_v53, %v3621_v33 }
 0x48a   : > { %v3708_v25 = vrot.slane %v3705_v18, 1  ;;  %v3709_v41 = vrot.slane %v3705_v18, 2  ;;  %v3710_v50 = vrot.slane %v3705_v18, 3  ;;  %3714 = vst.msk [vmem:[%s5423_s10 + $0x1f] sm:$0x1] %vm1781_vm14, %v3705_v18 }
 0x48b   : > { %v3649_v30 = vrot.slane %v3646_v61, 1  ;;  %3655 = vst.msk [vmem:[%s5423_s10 + $0x1d] sm:$0x1] %vm1781_vm14, %v3646_v61  ;;  %v3650_v45 = vrot.slane %v3646_v61, 2  ;;  %v3651_v8 = vrot.slane %v3646_v61, 3 }
 0x48c   : > { %3715 = vst.msk [vmem:[%s5423_s10 + $0x3f] sm:$0x1] %vm1781_vm14, %v3708_v25 }
 0x48d   : > { %3716 = vst.msk [vmem:[%s5423_s10 + $0x5f] sm:$0x1] %vm1781_vm14, %v3709_v41 }
 0x48e   : > { %3717 = vst.msk [vmem:[%s5423_s10 + $0x7f] sm:$0x1] %vm1781_vm14, %v3710_v50 }
 0x48f   : > { %3656 = vst.msk [vmem:[%s5423_s10 + $0x3d] sm:$0x1] %vm1781_vm14, %v3649_v30 }
 0x490   : > { %3657 = vst.msk [vmem:[%s5423_s10 + $0x5d] sm:$0x1] %vm1781_vm14, %v3650_v45 }
 0x491   : > { %3658 = vst.msk [vmem:[%s5423_s10 + $0x7d] sm:$0x1] %vm1781_vm14, %v3651_v8 }
 0x492   : > { %4139 = shalt.err (!%p4136_p5)
}
 0x493   : > { %s4203_s12 = smov 128  }
 0x494   : > { %4037 = dma.vmem_to_hbm [thread:$0]  (%p4274_p4), %s3734_s17, 2048, %s3736_s11, %s3719_s25, %s4203_s12, %s4203_s12, %s4194_s14  }
 0x495 PF: > { %p4044_p6 = scmp.ge.s32.totalorder %s4190_s23, 2  ;;  %s3750_s10 = sand.u32 1, %s4170_s18  }
 0x496   : > { %s3751_s15 = scalar_lea.sflag [#allocation3], %s3750_s10 }
 0x497   : > { %p4040_p7 = pnand %p4044_p6, %p4281_p8 }
 0x499   : > { %p4041_p9 = pneg %p4040_p7 }
 0x49b   : > { %4165 = dma.done.wait (%p4041_p9), %s3751_s15, 2048  }
 0x49c   : > { %4167 = vsyncadd (%p4041_p9), %s3751_s15, 4294965248  ;;  %s18_s23 = sadd.s32 1, %s4190_s23   ;;  %s5961_s18 = smov %s4174_s19 }
 0x49d   : > { %p15_p10 = scmp.ge.s32.totalorder %s18_s23, 4   ;;  %s5962_s19 = smov %s4178_s20 }
 0x49e   : > { %s5963_s20 = smov %s4287_s6  ;;  %s5964_s21 = smov %s4186_s22 }
 0x49f   : > { %s5965_s22 = smov %s5967_s26  ;;  %17 = sbr.rel (!%p15_p10) target bundleno = 4 (0x4), region = 78 }
 0x4a4   :  { %3757 = vsyncpa [#allocation3], 1 }
 0x4a5   :  { %3759 = vsyncpa [#allocation3 + $0x1], 1 }

</bundles_post_ra>
